<compile_context>
chip_gen: v6e
topology: v6e:2x2x1
jax: 0.10.0
libtpu: 0.0.40
codegen_flags: <defaults>
</compile_context>

<pallas_src>
import functools

import jax
import jax.numpy as jnp
from jax.experimental import pallas as pl
from jax.experimental.pallas import tpu as pltpu


def _im2col_conv3x3(pad_ref, patches_ref, w_ref, b_ref, H, W, C, mxu_dtype):
    """3x3 'same' conv from an (H+2, W+2, C) padded VMEM scratch.

    Builds the (H*W, 9*C) im2col patch matrix in VMEM, then does a single MXU
    matmul with the flattened (9*C, Cout) weight.  Returns (H*W, Cout) f32.
    """
    for kh in range(3):
        for kw in range(3):
            col = (kh * 3 + kw) * C
            patches_ref[:, col:col + C] = (
                pad_ref[kh:kh + H, kw:kw + W, :].reshape(H * W, C))
    acc = jnp.dot(patches_ref[...].astype(mxu_dtype), w_ref[...],
                  preferred_element_type=jnp.float32)          # (H*W, Cout) f32
    return acc + b_ref[...].astype(jnp.float32)


def residual_block_kernel(x_ref, w1_ref, b1_ref, w2_ref, b2_ref,
                          out_ref, pad_ref, patches_ref, *, mxu_dtype):
    # x_ref/out_ref: (1, H, W, C)   w*_ref: (9*C, C)   b*_ref: (1, C)
    # pad_ref: (H+2, W+2, C) f32    patches_ref: (H*W, 9*C) f32
    _, H, W, C = x_ref.shape

    # Zero only the 1-px halo (interior is fully overwritten below).  Done every
    # grid step so it is correct even when the batch axis is sharded across cores.
    zrow = jnp.zeros((1, W + 2, C), jnp.float32)
    zcol = jnp.zeros((H + 2, 1, C), jnp.float32)
    pad_ref[0:1, :, :] = zrow
    pad_ref[H + 1:H + 2, :, :] = zrow
    pad_ref[:, 0:1, :] = zcol
    pad_ref[:, W + 1:W + 2, :] = zcol

    x = x_ref[0].astype(jnp.float32)                           # (H, W, C)

    # y1 = relu(conv1(x) + b1)
    pad_ref[1:H + 1, 1:W + 1, :] = x
    y1 = jnp.maximum(
        _im2col_conv3x3(pad_ref, patches_ref, w1_ref, b1_ref, H, W, C, mxu_dtype),
        0.0)                                                   # (H*W, C)

    # y2 = conv2(y1) + b2   (reuse the same padded scratch; halo is still zero)
    pad_ref[1:H + 1, 1:W + 1, :] = y1.reshape(H, W, C)
    y2 = _im2col_conv3x3(pad_ref, patches_ref, w2_ref, b2_ref, H, W, C, mxu_dtype)

    # out = relu(x + y2)
    out = jnp.maximum(x.reshape(H * W, C) + y2, 0.0)
    out_ref[0] = out.reshape(H, W, C).astype(out_ref.dtype)


def residual_block(x_nchw, w1_oihw, b1, w2_oihw, b2, *, mxu_dtype=jnp.bfloat16):
    """Pallas implementation of ResidualBlock.forward (NCHW in / NCHW out)."""
    N, C, H, W = x_nchw.shape

    # Channels-last so the channel axis sits on the lane axis inside the kernel.
    # (In a full network you would keep activations NHWC end-to-end and drop
    #  these two transposes, which are full HBM round trips.)
    x_nhwc = jnp.transpose(x_nchw, (0, 2, 3, 1))

    # PyTorch OIHW -> (kh, kw, Cin, Cout) -> im2col-flattened (9*Cin, Cout).
    w1f = jnp.transpose(w1_oihw, (2, 3, 1, 0)).reshape(9 * C, C).astype(mxu_dtype)
    w2f = jnp.transpose(w2_oihw, (2, 3, 1, 0)).reshape(9 * C, C).astype(mxu_dtype)
    b1r = b1.reshape(1, C).astype(jnp.float32)
    b2r = b2.reshape(1, C).astype(jnp.float32)

    grid_spec = pltpu.PrefetchScalarGridSpec(
        num_scalar_prefetch=0,
        grid=(N,),
        in_specs=[
            pl.BlockSpec((1, H, W, C), lambda n: (n, 0, 0, 0)),
            # Constant block index -> weights/biases stay resident in VMEM
            # (no re-DMA every grid step).
            pl.BlockSpec((9 * C, C), lambda n: (0, 0)),
            pl.BlockSpec((1, C), lambda n: (0, 0)),
            pl.BlockSpec((9 * C, C), lambda n: (0, 0)),
            pl.BlockSpec((1, C), lambda n: (0, 0)),
        ],
        out_specs=pl.BlockSpec((1, H, W, C), lambda n: (n, 0, 0, 0)),
        scratch_shapes=[
            pltpu.VMEM((H + 2, W + 2, C), jnp.float32),   # reused padded activation
            pltpu.VMEM((H * W, 9 * C), jnp.float32),      # im2col patch matrix
        ],
    )

    out_nhwc = pl.pallas_call(
        functools.partial(residual_block_kernel, mxu_dtype=mxu_dtype),
        out_shape=jax.ShapeDtypeStruct((N, H, W, C), x_nchw.dtype),
        grid_spec=grid_spec,
        compiler_params=pltpu.CompilerParams(
            dimension_semantics=("parallel",),   # batch axis -> both TCs on v7x
        ),
    )(x_nhwc, w1f, b1r, w2f, b2r)

    return jnp.transpose(out_nhwc, (0, 3, 1, 2))


def residual_block_reference(x, w1, b1, w2, b2):
    """Pure-JAX reference mirroring the PyTorch module (NCHW / OIHW, f32)."""
    dn = jax.lax.conv_dimension_numbers(x.shape, w1.shape,
                                        ("NCHW", "OIHW", "NCHW"))
    y = jax.lax.conv_general_dilated(x, w1, (1, 1), ((1, 1), (1, 1)),
                                     dimension_numbers=dn)
    y = jax.nn.relu(y + b1.reshape(1, -1, 1, 1))
    y = jax.lax.conv_general_dilated(y, w2, (1, 1), ((1, 1), (1, 1)),
                                     dimension_numbers=dn)
    y = y + b2.reshape(1, -1, 1, 1)
    return jax.nn.relu(x + y)


if __name__ == "__main__":
    N, C, H, W = 2, 4, 16, 16
    key = jax.random.PRNGKey(0)
    kx, k1, kb1, k2, kb2 = jax.random.split(key, 5)

    x = jax.random.normal(kx, (N, C, H, W), dtype=jnp.float32)
    # Deterministic synthetic parameters (shapes match nn.Conv2d(C, C, 3, padding=1)).
    w1 = 0.1 * jax.random.normal(k1, (C, C, 3, 3), dtype=jnp.float32)
    b1 = 0.1 * jax.random.normal(kb1, (C,), dtype=jnp.float32)
    w2 = 0.1 * jax.random.normal(k2, (C, C, 3, 3), dtype=jnp.float32)
    b2 = 0.1 * jax.random.normal(kb2, (C,), dtype=jnp.float32)

    ref = jax.block_until_ready(residual_block_reference(x, w1, b1, w2, b2))

    # f32-MXU path: directly comparable to the f32 reference.
    out_f32 = jax.block_until_ready(
        residual_block(x, w1, b1, w2, b2, mxu_dtype=jnp.float32))
    assert out_f32.shape == (N, C, H, W)
    assert jnp.allclose(out_f32, ref, atol=1e-4, rtol=1e-4), (
        f"f32 max abs err {jnp.max(jnp.abs(out_f32 - ref))}")

    # Default bf16-MXU path (f32 accumulation): looser tolerance for bf16 operands.
    out_bf16 = jax.block_until_ready(residual_block(x, w1, b1, w2, b2))
    assert out_bf16.shape == (N, C, H, W)
    assert jnp.allclose(out_bf16, ref, atol=5e-2, rtol=5e-2), (
        f"bf16 max abs err {jnp.max(jnp.abs(out_bf16 - ref))}")

    print("KERNEL_OK")
</pallas_src>

<mosaic_0001>
module attributes {stable_mosaic.version = 11 : i64} {
  func.func @residual_block_kernel(%arg0: i32, %arg1: memref<1x16x16x4xf32, #tpu.memory_space<vmem>>, %arg2: memref<36x4xf32, #tpu.memory_space<vmem>>, %arg3: memref<1x4xf32, #tpu.memory_space<vmem>>, %arg4: memref<36x4xf32, #tpu.memory_space<vmem>>, %arg5: memref<1x4xf32, #tpu.memory_space<vmem>>, %arg6: memref<1x16x16x4xf32, #tpu.memory_space<vmem>>, %arg7: memref<18x18x4xf32, #tpu.memory_space<vmem>>, %arg8: memref<256x36xf32, #tpu.memory_space<vmem>>) attributes {dimension_semantics = [#tpu.dimension_semantics<parallel>], iteration_bounds = array<i64: 2>, scalar_prefetch = 0 : i64, scratch_operands = 2 : i64, tpu.core_type = #tpu.core_type<tc>, window_params = [{transform_indices = @transform_0, window_bounds = array<i64: 1, 16, 16, 4>}, {pipeline_mode = #tpu.pipeline_mode<synchronous>, transform_indices = @transform_1, window_bounds = array<i64: 36, 4>}, {pipeline_mode = #tpu.pipeline_mode<synchronous>, transform_indices = @transform_2, window_bounds = array<i64: 1, 4>}, {pipeline_mode = #tpu.pipeline_mode<synchronous>, transform_indices = @transform_3, window_bounds = array<i64: 36, 4>}, {pipeline_mode = #tpu.pipeline_mode<synchronous>, transform_indices = @transform_4, window_bounds = array<i64: 1, 4>}, {transform_indices = @transform_5, window_bounds = array<i64: 1, 16, 16, 4>}]} {
    %cst = arith.constant 0.000000e+00 : f32
    %0 = vector.broadcast %cst : f32 to vector<1x18x4xf32>
    %cst_0 = arith.constant 0.000000e+00 : f32
    %1 = vector.broadcast %cst_0 : f32 to vector<18x1x4xf32>
    %c0 = arith.constant 0 : index
    %c0_1 = arith.constant 0 : index
    %c0_2 = arith.constant 0 : index
    %2 = vector.load %arg7[%c0, %c0_1, %c0_2] : memref<18x18x4xf32, #tpu.memory_space<vmem>>, vector<1x18x4xf32>
    tpu.vector_store %arg7[%c0, %c0_1, %c0_2], %0 {strides = array<i32>} : memref<18x18x4xf32, #tpu.memory_space<vmem>>, vector<1x18x4xf32>,
    %c17 = arith.constant 17 : index
    %c0_3 = arith.constant 0 : index
    %c0_4 = arith.constant 0 : index
    %3 = vector.load %arg7[%c17, %c0_3, %c0_4] : memref<18x18x4xf32, #tpu.memory_space<vmem>>, vector<1x18x4xf32>
    tpu.vector_store %arg7[%c17, %c0_3, %c0_4], %0 {strides = array<i32>} : memref<18x18x4xf32, #tpu.memory_space<vmem>>, vector<1x18x4xf32>,
    %c0_5 = arith.constant 0 : index
    %c0_6 = arith.constant 0 : index
    %c0_7 = arith.constant 0 : index
    %4 = vector.load %arg7[%c0_5, %c0_6, %c0_7] : memref<18x18x4xf32, #tpu.memory_space<vmem>>, vector<18x1x4xf32>
    tpu.vector_store %arg7[%c0_5, %c0_6, %c0_7], %1 {strides = array<i32>} : memref<18x18x4xf32, #tpu.memory_space<vmem>>, vector<18x1x4xf32>,
    %c0_8 = arith.constant 0 : index
    %c17_9 = arith.constant 17 : index
    %c0_10 = arith.constant 0 : index
    %5 = vector.load %arg7[%c0_8, %c17_9, %c0_10] : memref<18x18x4xf32, #tpu.memory_space<vmem>>, vector<18x1x4xf32>
    tpu.vector_store %arg7[%c0_8, %c17_9, %c0_10], %1 {strides = array<i32>} : memref<18x18x4xf32, #tpu.memory_space<vmem>>, vector<18x1x4xf32>,
    %c0_11 = arith.constant 0 : index
    %c0_12 = arith.constant 0 : index
    %c0_13 = arith.constant 0 : index
    %c0_14 = arith.constant 0 : index
    %6 = vector.load %arg1[%c0_11, %c0_12, %c0_13, %c0_14] : memref<1x16x16x4xf32, #tpu.memory_space<vmem>>, vector<1x16x16x4xf32>
    %7 = vector.shape_cast %6 : vector<1x16x16x4xf32> to vector<16x16x4xf32>
    %c1 = arith.constant 1 : index
    %c1_15 = arith.constant 1 : index
    %c0_16 = arith.constant 0 : index
    %8 = vector.load %arg7[%c1, %c1_15, %c0_16] : memref<18x18x4xf32, #tpu.memory_space<vmem>>, vector<16x16x4xf32>
    tpu.vector_store %arg7[%c1, %c1_15, %c0_16], %7 {strides = array<i32>} : memref<18x18x4xf32, #tpu.memory_space<vmem>>, vector<16x16x4xf32>,
    %c0_17 = arith.constant 0 : index
    %c0_18 = arith.constant 0 : index
    %c0_19 = arith.constant 0 : index
    %9 = vector.load %arg7[%c0_17, %c0_18, %c0_19] : memref<18x18x4xf32, #tpu.memory_space<vmem>>, vector<16x16x4xf32>
    %10 = vector.shape_cast %9 : vector<16x16x4xf32> to vector<256x4xf32>
    %c0_20 = arith.constant 0 : index
    %c0_21 = arith.constant 0 : index
    %11 = vector.load %arg8[%c0_20, %c0_21] : memref<256x36xf32, #tpu.memory_space<vmem>>, vector<256x4xf32>
    tpu.vector_store %arg8[%c0_20, %c0_21], %10 {strides = array<i32>} : memref<256x36xf32, #tpu.memory_space<vmem>>, vector<256x4xf32>,
    %c0_22 = arith.constant 0 : index
    %c1_23 = arith.constant 1 : index
    %c0_24 = arith.constant 0 : index
    %12 = vector.load %arg7[%c0_22, %c1_23, %c0_24] : memref<18x18x4xf32, #tpu.memory_space<vmem>>, vector<16x16x4xf32>
    %13 = vector.shape_cast %12 : vector<16x16x4xf32> to vector<256x4xf32>
    %c0_25 = arith.constant 0 : index
    %c4 = arith.constant 4 : index
    %14 = vector.load %arg8[%c0_25, %c4] : memref<256x36xf32, #tpu.memory_space<vmem>>, vector<256x4xf32>
    tpu.vector_store %arg8[%c0_25, %c4], %13 {strides = array<i32>} : memref<256x36xf32, #tpu.memory_space<vmem>>, vector<256x4xf32>,
    %c0_26 = arith.constant 0 : index
    %c2 = arith.constant 2 : index
    %c0_27 = arith.constant 0 : index
    %15 = vector.load %arg7[%c0_26, %c2, %c0_27] : memref<18x18x4xf32, #tpu.memory_space<vmem>>, vector<16x16x4xf32>
    %16 = vector.shape_cast %15 : vector<16x16x4xf32> to vector<256x4xf32>
    %c0_28 = arith.constant 0 : index
    %c8 = arith.constant 8 : index
    %17 = vector.load %arg8[%c0_28, %c8] : memref<256x36xf32, #tpu.memory_space<vmem>>, vector<256x4xf32>
    tpu.vector_store %arg8[%c0_28, %c8], %16 {strides = array<i32>} : memref<256x36xf32, #tpu.memory_space<vmem>>, vector<256x4xf32>,
    %c1_29 = arith.constant 1 : index
    %c0_30 = arith.constant 0 : index
    %c0_31 = arith.constant 0 : index
    %18 = vector.load %arg7[%c1_29, %c0_30, %c0_31] : memref<18x18x4xf32, #tpu.memory_space<vmem>>, vector<16x16x4xf32>
    %19 = vector.shape_cast %18 : vector<16x16x4xf32> to vector<256x4xf32>
    %c0_32 = arith.constant 0 : index
    %c12 = arith.constant 12 : index
    %20 = vector.load %arg8[%c0_32, %c12] : memref<256x36xf32, #tpu.memory_space<vmem>>, vector<256x4xf32>
    tpu.vector_store %arg8[%c0_32, %c12], %19 {strides = array<i32>} : memref<256x36xf32, #tpu.memory_space<vmem>>, vector<256x4xf32>,
    %c1_33 = arith.constant 1 : index
    %c1_34 = arith.constant 1 : index
    %c0_35 = arith.constant 0 : index
    %21 = vector.load %arg7[%c1_33, %c1_34, %c0_35] : memref<18x18x4xf32, #tpu.memory_space<vmem>>, vector<16x16x4xf32>
    %22 = vector.shape_cast %21 : vector<16x16x4xf32> to vector<256x4xf32>
    %c0_36 = arith.constant 0 : index
    %c16 = arith.constant 16 : index
    %23 = vector.load %arg8[%c0_36, %c16] : memref<256x36xf32, #tpu.memory_space<vmem>>, vector<256x4xf32>
    tpu.vector_store %arg8[%c0_36, %c16], %22 {strides = array<i32>} : memref<256x36xf32, #tpu.memory_space<vmem>>, vector<256x4xf32>,
    %c1_37 = arith.constant 1 : index
    %c2_38 = arith.constant 2 : index
    %c0_39 = arith.constant 0 : index
    %24 = vector.load %arg7[%c1_37, %c2_38, %c0_39] : memref<18x18x4xf32, #tpu.memory_space<vmem>>, vector<16x16x4xf32>
    %25 = vector.shape_cast %24 : vector<16x16x4xf32> to vector<256x4xf32>
    %c0_40 = arith.constant 0 : index
    %c20 = arith.constant 20 : index
    %26 = vector.load %arg8[%c0_40, %c20] : memref<256x36xf32, #tpu.memory_space<vmem>>, vector<256x4xf32>
    tpu.vector_store %arg8[%c0_40, %c20], %25 {strides = array<i32>} : memref<256x36xf32, #tpu.memory_space<vmem>>, vector<256x4xf32>,
    %c2_41 = arith.constant 2 : index
    %c0_42 = arith.constant 0 : index
    %c0_43 = arith.constant 0 : index
    %27 = vector.load %arg7[%c2_41, %c0_42, %c0_43] : memref<18x18x4xf32, #tpu.memory_space<vmem>>, vector<16x16x4xf32>
    %28 = vector.shape_cast %27 : vector<16x16x4xf32> to vector<256x4xf32>
    %c0_44 = arith.constant 0 : index
    %c24 = arith.constant 24 : index
    %29 = vector.load %arg8[%c0_44, %c24] : memref<256x36xf32, #tpu.memory_space<vmem>>, vector<256x4xf32>
    tpu.vector_store %arg8[%c0_44, %c24], %28 {strides = array<i32>} : memref<256x36xf32, #tpu.memory_space<vmem>>, vector<256x4xf32>,
    %c2_45 = arith.constant 2 : index
    %c1_46 = arith.constant 1 : index
    %c0_47 = arith.constant 0 : index
    %30 = vector.load %arg7[%c2_45, %c1_46, %c0_47] : memref<18x18x4xf32, #tpu.memory_space<vmem>>, vector<16x16x4xf32>
    %31 = vector.shape_cast %30 : vector<16x16x4xf32> to vector<256x4xf32>
    %c0_48 = arith.constant 0 : index
    %c28 = arith.constant 28 : index
    %32 = vector.load %arg8[%c0_48, %c28] : memref<256x36xf32, #tpu.memory_space<vmem>>, vector<256x4xf32>
    tpu.vector_store %arg8[%c0_48, %c28], %31 {strides = array<i32>} : memref<256x36xf32, #tpu.memory_space<vmem>>, vector<256x4xf32>,
    %c2_49 = arith.constant 2 : index
    %c2_50 = arith.constant 2 : index
    %c0_51 = arith.constant 0 : index
    %33 = vector.load %arg7[%c2_49, %c2_50, %c0_51] : memref<18x18x4xf32, #tpu.memory_space<vmem>>, vector<16x16x4xf32>
    %34 = vector.shape_cast %33 : vector<16x16x4xf32> to vector<256x4xf32>
    %c0_52 = arith.constant 0 : index
    %c32 = arith.constant 32 : index
    %35 = vector.load %arg8[%c0_52, %c32] : memref<256x36xf32, #tpu.memory_space<vmem>>, vector<256x4xf32>
    tpu.vector_store %arg8[%c0_52, %c32], %34 {strides = array<i32>} : memref<256x36xf32, #tpu.memory_space<vmem>>, vector<256x4xf32>,
    %c0_53 = arith.constant 0 : index
    %c0_54 = arith.constant 0 : index
    %36 = vector.load %arg8[%c0_53, %c0_54] : memref<256x36xf32, #tpu.memory_space<vmem>>, vector<256x36xf32>
    %c0_55 = arith.constant 0 : index
    %c0_56 = arith.constant 0 : index
    %37 = vector.load %arg2[%c0_55, %c0_56] : memref<36x4xf32, #tpu.memory_space<vmem>>, vector<36x4xf32>
    %cst_57 = arith.constant dense<0.000000e+00> : vector<256x4xf32>
    %38 = tpu.matmul %36, %37, %cst_57 {dimension_numbers = #tpu.dot_dimension_numbers<[1], [0], [0], [1], [0, 0, 1, 1], [], []>} : vector<256x36xf32>, vector<36x4xf32>, vector<256x4xf32> -> vector<256x4xf32>
    %c0_58 = arith.constant 0 : index
    %c0_59 = arith.constant 0 : index
    %39 = vector.load %arg3[%c0_58, %c0_59] : memref<1x4xf32, #tpu.memory_space<vmem>>, vector<1x4xf32>
    %40 = vector.broadcast %39 : vector<1x4xf32> to vector<256x4xf32>
    %41 = arith.addf %38, %40 : vector<256x4xf32>
    %cst_60 = arith.constant 0.000000e+00 : f32
    %42 = vector.broadcast %cst_60 : f32 to vector<256x4xf32>
    %43 = arith.maximumf %41, %42 : vector<256x4xf32>
    %44 = vector.shape_cast %43 : vector<256x4xf32> to vector<16x16x4xf32>
    %c1_61 = arith.constant 1 : index
    %c1_62 = arith.constant 1 : index
    %c0_63 = arith.constant 0 : index
    %45 = vector.load %arg7[%c1_61, %c1_62, %c0_63] : memref<18x18x4xf32, #tpu.memory_space<vmem>>, vector<16x16x4xf32>
    tpu.vector_store %arg7[%c1_61, %c1_62, %c0_63], %44 {strides = array<i32>} : memref<18x18x4xf32, #tpu.memory_space<vmem>>, vector<16x16x4xf32>,
    %c0_64 = arith.constant 0 : index
    %c0_65 = arith.constant 0 : index
    %c0_66 = arith.constant 0 : index
    %46 = vector.load %arg7[%c0_64, %c0_65, %c0_66] : memref<18x18x4xf32, #tpu.memory_space<vmem>>, vector<16x16x4xf32>
    %47 = vector.shape_cast %46 : vector<16x16x4xf32> to vector<256x4xf32>
    %c0_67 = arith.constant 0 : index
    %c0_68 = arith.constant 0 : index
    %48 = vector.load %arg8[%c0_67, %c0_68] : memref<256x36xf32, #tpu.memory_space<vmem>>, vector<256x4xf32>
    tpu.vector_store %arg8[%c0_67, %c0_68], %47 {strides = array<i32>} : memref<256x36xf32, #tpu.memory_space<vmem>>, vector<256x4xf32>,
    %c0_69 = arith.constant 0 : index
    %c1_70 = arith.constant 1 : index
    %c0_71 = arith.constant 0 : index
    %49 = vector.load %arg7[%c0_69, %c1_70, %c0_71] : memref<18x18x4xf32, #tpu.memory_space<vmem>>, vector<16x16x4xf32>
    %50 = vector.shape_cast %49 : vector<16x16x4xf32> to vector<256x4xf32>
    %c0_72 = arith.constant 0 : index
    %c4_73 = arith.constant 4 : index
    %51 = vector.load %arg8[%c0_72, %c4_73] : memref<256x36xf32, #tpu.memory_space<vmem>>, vector<256x4xf32>
    tpu.vector_store %arg8[%c0_72, %c4_73], %50 {strides = array<i32>} : memref<256x36xf32, #tpu.memory_space<vmem>>, vector<256x4xf32>,
    %c0_74 = arith.constant 0 : index
    %c2_75 = arith.constant 2 : index
    %c0_76 = arith.constant 0 : index
    %52 = vector.load %arg7[%c0_74, %c2_75, %c0_76] : memref<18x18x4xf32, #tpu.memory_space<vmem>>, vector<16x16x4xf32>
    %53 = vector.shape_cast %52 : vector<16x16x4xf32> to vector<256x4xf32>
    %c0_77 = arith.constant 0 : index
    %c8_78 = arith.constant 8 : index
    %54 = vector.load %arg8[%c0_77, %c8_78] : memref<256x36xf32, #tpu.memory_space<vmem>>, vector<256x4xf32>
    tpu.vector_store %arg8[%c0_77, %c8_78], %53 {strides = array<i32>} : memref<256x36xf32, #tpu.memory_space<vmem>>, vector<256x4xf32>,
    %c1_79 = arith.constant 1 : index
    %c0_80 = arith.constant 0 : index
    %c0_81 = arith.constant 0 : index
    %55 = vector.load %arg7[%c1_79, %c0_80, %c0_81] : memref<18x18x4xf32, #tpu.memory_space<vmem>>, vector<16x16x4xf32>
    %56 = vector.shape_cast %55 : vector<16x16x4xf32> to vector<256x4xf32>
    %c0_82 = arith.constant 0 : index
    %c12_83 = arith.constant 12 : index
    %57 = vector.load %arg8[%c0_82, %c12_83] : memref<256x36xf32, #tpu.memory_space<vmem>>, vector<256x4xf32>
    tpu.vector_store %arg8[%c0_82, %c12_83], %56 {strides = array<i32>} : memref<256x36xf32, #tpu.memory_space<vmem>>, vector<256x4xf32>,
    %c1_84 = arith.constant 1 : index
    %c1_85 = arith.constant 1 : index
    %c0_86 = arith.constant 0 : index
    %58 = vector.load %arg7[%c1_84, %c1_85, %c0_86] : memref<18x18x4xf32, #tpu.memory_space<vmem>>, vector<16x16x4xf32>
    %59 = vector.shape_cast %58 : vector<16x16x4xf32> to vector<256x4xf32>
    %c0_87 = arith.constant 0 : index
    %c16_88 = arith.constant 16 : index
    %60 = vector.load %arg8[%c0_87, %c16_88] : memref<256x36xf32, #tpu.memory_space<vmem>>, vector<256x4xf32>
    tpu.vector_store %arg8[%c0_87, %c16_88], %59 {strides = array<i32>} : memref<256x36xf32, #tpu.memory_space<vmem>>, vector<256x4xf32>,
    %c1_89 = arith.constant 1 : index
    %c2_90 = arith.constant 2 : index
    %c0_91 = arith.constant 0 : index
    %61 = vector.load %arg7[%c1_89, %c2_90, %c0_91] : memref<18x18x4xf32, #tpu.memory_space<vmem>>, vector<16x16x4xf32>
    %62 = vector.shape_cast %61 : vector<16x16x4xf32> to vector<256x4xf32>
    %c0_92 = arith.constant 0 : index
    %c20_93 = arith.constant 20 : index
    %63 = vector.load %arg8[%c0_92, %c20_93] : memref<256x36xf32, #tpu.memory_space<vmem>>, vector<256x4xf32>
    tpu.vector_store %arg8[%c0_92, %c20_93], %62 {strides = array<i32>} : memref<256x36xf32, #tpu.memory_space<vmem>>, vector<256x4xf32>,
    %c2_94 = arith.constant 2 : index
    %c0_95 = arith.constant 0 : index
    %c0_96 = arith.constant 0 : index
    %64 = vector.load %arg7[%c2_94, %c0_95, %c0_96] : memref<18x18x4xf32, #tpu.memory_space<vmem>>, vector<16x16x4xf32>
    %65 = vector.shape_cast %64 : vector<16x16x4xf32> to vector<256x4xf32>
    %c0_97 = arith.constant 0 : index
    %c24_98 = arith.constant 24 : index
    %66 = vector.load %arg8[%c0_97, %c24_98] : memref<256x36xf32, #tpu.memory_space<vmem>>, vector<256x4xf32>
    tpu.vector_store %arg8[%c0_97, %c24_98], %65 {strides = array<i32>} : memref<256x36xf32, #tpu.memory_space<vmem>>, vector<256x4xf32>,
    %c2_99 = arith.constant 2 : index
    %c1_100 = arith.constant 1 : index
    %c0_101 = arith.constant 0 : index
    %67 = vector.load %arg7[%c2_99, %c1_100, %c0_101] : memref<18x18x4xf32, #tpu.memory_space<vmem>>, vector<16x16x4xf32>
    %68 = vector.shape_cast %67 : vector<16x16x4xf32> to vector<256x4xf32>
    %c0_102 = arith.constant 0 : index
    %c28_103 = arith.constant 28 : index
    %69 = vector.load %arg8[%c0_102, %c28_103] : memref<256x36xf32, #tpu.memory_space<vmem>>, vector<256x4xf32>
    tpu.vector_store %arg8[%c0_102, %c28_103], %68 {strides = array<i32>} : memref<256x36xf32, #tpu.memory_space<vmem>>, vector<256x4xf32>,
    %c2_104 = arith.constant 2 : index
    %c2_105 = arith.constant 2 : index
    %c0_106 = arith.constant 0 : index
    %70 = vector.load %arg7[%c2_104, %c2_105, %c0_106] : memref<18x18x4xf32, #tpu.memory_space<vmem>>, vector<16x16x4xf32>
    %71 = vector.shape_cast %70 : vector<16x16x4xf32> to vector<256x4xf32>
    %c0_107 = arith.constant 0 : index
    %c32_108 = arith.constant 32 : index
    %72 = vector.load %arg8[%c0_107, %c32_108] : memref<256x36xf32, #tpu.memory_space<vmem>>, vector<256x4xf32>
    tpu.vector_store %arg8[%c0_107, %c32_108], %71 {strides = array<i32>} : memref<256x36xf32, #tpu.memory_space<vmem>>, vector<256x4xf32>,
    %c0_109 = arith.constant 0 : index
    %c0_110 = arith.constant 0 : index
    %73 = vector.load %arg8[%c0_109, %c0_110] : memref<256x36xf32, #tpu.memory_space<vmem>>, vector<256x36xf32>
    %c0_111 = arith.constant 0 : index
    %c0_112 = arith.constant 0 : index
    %74 = vector.load %arg4[%c0_111, %c0_112] : memref<36x4xf32, #tpu.memory_space<vmem>>, vector<36x4xf32>
    %cst_113 = arith.constant dense<0.000000e+00> : vector<256x4xf32>
    %75 = tpu.matmul %73, %74, %cst_113 {dimension_numbers = #tpu.dot_dimension_numbers<[1], [0], [0], [1], [0, 0, 1, 1], [], []>} : vector<256x36xf32>, vector<36x4xf32>, vector<256x4xf32> -> vector<256x4xf32>
    %c0_114 = arith.constant 0 : index
    %c0_115 = arith.constant 0 : index
    %76 = vector.load %arg5[%c0_114, %c0_115] : memref<1x4xf32, #tpu.memory_space<vmem>>, vector<1x4xf32>
    %77 = vector.broadcast %76 : vector<1x4xf32> to vector<256x4xf32>
    %78 = arith.addf %75, %77 : vector<256x4xf32>
    %79 = vector.shape_cast %7 : vector<16x16x4xf32> to vector<256x4xf32>
    %80 = arith.addf %79, %78 : vector<256x4xf32>
    %cst_116 = arith.constant 0.000000e+00 : f32
    %81 = vector.broadcast %cst_116 : f32 to vector<256x4xf32>
    %82 = arith.maximumf %80, %81 : vector<256x4xf32>
    %83 = vector.shape_cast %82 : vector<256x4xf32> to vector<16x16x4xf32>
    %c0_117 = arith.constant 0 : index
    %c0_118 = arith.constant 0 : index
    %c0_119 = arith.constant 0 : index
    %c0_120 = arith.constant 0 : index
    %84 = vector.load %arg6[%c0_117, %c0_118, %c0_119, %c0_120] : memref<1x16x16x4xf32, #tpu.memory_space<vmem>>, vector<1x16x16x4xf32>
    %85 = vector.shape_cast %84 : vector<1x16x16x4xf32> to vector<16x16x4xf32>
    %86 = vector.shape_cast %83 : vector<16x16x4xf32> to vector<1x16x16x4xf32>
    tpu.vector_store %arg6[%c0_117, %c0_118, %c0_119, %c0_120], %86 {strides = array<i32>} : memref<1x16x16x4xf32, #tpu.memory_space<vmem>>, vector<1x16x16x4xf32>,
    return
  }
  func.func @transform_0(%arg0: i32) -> (i32, i32, i32, i32) {
    %c0_i32 = arith.constant 0 : i32
    %c0_i32_0 = arith.constant 0 : i32
    %c0_i32_1 = arith.constant 0 : i32
    %c0_i32_2 = arith.constant 0 : i32
    return %arg0, %c0_i32, %c0_i32_0, %c0_i32_1 : i32, i32, i32, i32
  }
  func.func @transform_1(%arg0: i32) -> (i32, i32) {
    %c0_i32 = arith.constant 0 : i32
    %c0_i32_0 = arith.constant 0 : i32
    %c0_i32_1 = arith.constant 0 : i32
    return %c0_i32, %c0_i32_0 : i32, i32
  }
  func.func @transform_2(%arg0: i32) -> (i32, i32) {
    %c0_i32 = arith.constant 0 : i32
    %c0_i32_0 = arith.constant 0 : i32
    %c0_i32_1 = arith.constant 0 : i32
    return %c0_i32, %c0_i32_0 : i32, i32
  }
  func.func @transform_3(%arg0: i32) -> (i32, i32) {
    %c0_i32 = arith.constant 0 : i32
    %c0_i32_0 = arith.constant 0 : i32
    %c0_i32_1 = arith.constant 0 : i32
    return %c0_i32, %c0_i32_0 : i32, i32
  }
  func.func @transform_4(%arg0: i32) -> (i32, i32) {
    %c0_i32 = arith.constant 0 : i32
    %c0_i32_0 = arith.constant 0 : i32
    %c0_i32_1 = arith.constant 0 : i32
    return %c0_i32, %c0_i32_0 : i32, i32
  }
  func.func @transform_5(%arg0: i32) -> (i32, i32, i32, i32) {
    %c0_i32 = arith.constant 0 : i32
    %c0_i32_0 = arith.constant 0 : i32
    %c0_i32_1 = arith.constant 0 : i32
    %c0_i32_2 = arith.constant 0 : i32
    return %arg0, %c0_i32, %c0_i32_0, %c0_i32_1 : i32, i32, i32, i32
  }
}

</mosaic_0001>

<bundles_post_ra>
// kernel: tpu_custom_call.1
= control target key start
LH: loop header
LB: loop body
LE: loop exit
PB: predicated region body
PF: predicated region fallthrough
CT: control target
= control target key end

     0   :  { %s4833_s18 = smov 0   ;;  %s7115_s0 = inlined_call_operand.vmem [shape: f32[2,16,16,4], index: 0, kind: input, shape index: {}]   ;;  %s7116_s1 = inlined_call_operand.vmem [shape: f32[36,4], index: 1, kind: input, shape index: {}]   ;;  %s7117_s2 = inlined_call_operand.vmem [shape: f32[1,4], index: 2, kind: input, shape index: {}]   ;;  %s7118_s3 = inlined_call_operand.vmem [shape: f32[36,4], index: 3, kind: input, shape index: {}]   ;;  %s7119_s4 = inlined_call_operand.vmem [shape: f32[1,4], index: 4, kind: input, shape index: {}]   ;;  %s7120_s5 = inlined_call_operand.vmem [shape: f32[2,16,16,4], index: 5, kind: output, shape index: {}]  }
   0x1 LB: > { %s4498_s19 = sadd.s32 4294967295, %s4792_s18   ;;  %p4502_p0 = scmp.ge.s32.totalorder %s4792_s18, 1  ;;  %s4792_s18 = sphi %s4833_s18, %s15_s18  }
   0x2   : > { %p187_p1 = scmp.lt.s32.totalorder %s4792_s18, 3 }
   0x4   : > { %p188_p2 = pnand %p4502_p0, %p187_p1 }
   0x6   : > { %191 = sbr.rel (%p188_p2) target bundleno = 1646 (0x66e), region = 40 }
   0xb   : > { %vm225_vm0 = vcmask 31744   ;;  %p4843_p3 = scmp.lt.s32.totalorder %s4498_s19, 1  ;;  %vm228_vm1 = vcmask 25600   ;;  %vm234_vm2 = vcmask 24576   ;;  %v4794_v0 = vmov 0.0   ;;  %s4795_s25 = smov 4  }
   0xc   : > { %226 = vst.msk [vmem:[#allocation2] sm:$0xff] %vm225_vm0, %v4794_v0  ;;  %227 = vst.msk [vmem:[#allocation2 + $0x8] sm:$0xff] %vm225_vm0, %v4794_v0  ;;  %s4796_s26 = smov 8   ;;  %vm560_vm3 = vcmask 64544   ;;  %s4797_s27 = smov 12   ;;  %vm753_vm4 = vcmask 97344  }
   0xd   : > { %231 = vst.msk [vmem:[#allocation2 + $0x198] sm:$0xff] %vm225_vm0, %v4794_v0  ;;  %232 = vst.msk [vmem:[#allocation2 + $0x1a0] sm:$0xff] %vm225_vm0, %v4794_v0  ;;  %s7309_s19 = smov (!%p4843_p3, %s4498_s19), 1  ;;  %s4798_s28 = smov 16   ;;  %vm946_vm5 = vcmask 130144   ;;  %vm1139_vm6 = vcmask 162944  }
   0xe   : > { %229 = vst.msk [vmem:[#allocation2 + $0x10] sm:$0x3] %vm228_vm1, %v4794_v0  ;;  %233 = vst.msk [vmem:[#allocation2 + $0x1a8] sm:$0x3] %vm228_vm1, %v4794_v0  ;;  %s4577_s21 = sshll.u32 %s7309_s19, 8  ;;  %s4799_s29 = smov 20  }
   0xf   : > { %236 = vst.msk [vmem:[#allocation2 + $0x18] sm:$0x1] %vm234_vm2, %v4794_v0  ;;  %237 = vst.msk [vmem:[#allocation2 + $0x30] sm:$0x1] %vm234_vm2, %v4794_v0  ;;  %s4899_s24 = scalar_lea.vmem %s7115_s0, %s4577_s21  ;;  %s4800_s30 = smov 24   ;;  %vm1332_vm7 = vcmask 195744  }
  0x10   : > { %238 = vst.msk [vmem:[#allocation2 + $0x48] sm:$0x1] %vm234_vm2, %v4794_v0  ;;  %239 = vst.msk [vmem:[#allocation2 + $0x60] sm:$0x1] %vm234_vm2, %v4794_v0  ;;  %v4902_v1 = vld [vmem:[%s4899_s24] sm:$0xff]  ;;  %v4905_v2 = vld [vmem:[%s4899_s24 + $0x8] sm:$0xff] }
  0x11   : > { %240 = vst.msk [vmem:[#allocation2 + $0x78] sm:$0x1] %vm234_vm2, %v4794_v0  ;;  %241 = vst.msk [vmem:[#allocation2 + $0x90] sm:$0x1] %vm234_vm2, %v4794_v0  ;;  %v4908_v3 = vld [vmem:[%s4899_s24 + $0x10] sm:$0xff]  ;;  %v4917_v4 = vld [vmem:[%s4899_s24 + $0x18] sm:$0xff] }
  0x12   : > { %242 = vst.msk [vmem:[#allocation2 + $0xa8] sm:$0x1] %vm234_vm2, %v4794_v0  ;;  %243 = vst.msk [vmem:[#allocation2 + $0xc0] sm:$0x1] %vm234_vm2, %v4794_v0  ;;  %v4920_v5 = vld [vmem:[%s4899_s24 + $0x20] sm:$0xff]  ;;  %v4923_v6 = vld [vmem:[%s4899_s24 + $0x28] sm:$0xff] }
  0x13   : > { %244 = vst.msk [vmem:[#allocation2 + $0xd8] sm:$0x1] %vm234_vm2, %v4794_v0  ;;  %245 = vst.msk [vmem:[#allocation2 + $0xf0] sm:$0x1] %vm234_vm2, %v4794_v0  ;;  %v400_v7 = vld [vmem:[#allocation2 + $0x1] sm:$0xff]  ;;  %v4932_v9 = vld [vmem:[%s4899_s24 + $0x30] sm:$0xff] }
  0x14   : > { %246 = vst.msk [vmem:[#allocation2 + $0x108] sm:$0x1] %vm234_vm2, %v4794_v0  ;;  %247 = vst.msk [vmem:[#allocation2 + $0x120] sm:$0x1] %vm234_vm2, %v4794_v0  ;;  %464 = vrot.lane.b32.xlu0 %v400_v7, %s4795_s25  ;;  %v4938_v10 = vld [vmem:[%s4899_s24 + $0x38] sm:$0xff]  ;;  %v4941_v11 = vld [vmem:[%s4899_s24 + $0x40] sm:$0xff] }
  0x15   : > { %248 = vst.msk [vmem:[#allocation2 + $0x138] sm:$0x1] %vm234_vm2, %v4794_v0  ;;  %249 = vst.msk [vmem:[#allocation2 + $0x150] sm:$0x1] %vm234_vm2, %v4794_v0  ;;  %v401_v8 = vld [vmem:[#allocation2 + $0x9] sm:$0xff]  ;;  %v4956_v14 = vld [vmem:[%s4899_s24 + $0x58] sm:$0xff] }
  0x16   : > { %250 = vst.msk [vmem:[#allocation2 + $0x168] sm:$0x1] %vm234_vm2, %v4794_v0  ;;  %251 = vst.msk [vmem:[#allocation2 + $0x180] sm:$0x1] %vm234_vm2, %v4794_v0  ;;  %v4944_v12 = vld [vmem:[%s4899_s24 + $0x48] sm:$0xff]  ;;  %v4953_v13 = vld [vmem:[%s4899_s24 + $0x50] sm:$0xff] }
  0x17   : > { %254 = vst.msk [vmem:[#allocation2 + $0x29] sm:$0x1] %vm234_vm2, %v4794_v0  ;;  %255 = vst.msk [vmem:[#allocation2 + $0x41] sm:$0x1] %vm234_vm2, %v4794_v0  ;;  %v4959_v15 = vld [vmem:[%s4899_s24 + $0x60] sm:$0xff]  ;;  %v4968_v16 = vld [vmem:[%s4899_s24 + $0x68] sm:$0xff] }
  0x18   : > { %256 = vst.msk [vmem:[#allocation2 + $0x59] sm:$0x1] %vm234_vm2, %v4794_v0  ;;  %257 = vst.msk [vmem:[#allocation2 + $0x71] sm:$0x1] %vm234_vm2, %v4794_v0  ;;  %v4971_v17 = vld [vmem:[%s4899_s24 + $0x70] sm:$0xff]  ;;  %v4974_v18 = vld [vmem:[%s4899_s24 + $0x78] sm:$0xff]  ;;  %466 = vrot.lane.b32.xlu0 %v401_v8, %s4795_s25 }
  0x19   : > { %258 = vst.msk [vmem:[#allocation2 + $0x89] sm:$0x1] %vm234_vm2, %v4794_v0  ;;  %259 = vst.msk [vmem:[#allocation2 + $0xa1] sm:$0x1] %vm234_vm2, %v4794_v0  ;;  %v4983_v19 = vld [vmem:[%s4899_s24 + $0x80] sm:$0xff]  ;;  %v4986_v20 = vld [vmem:[%s4899_s24 + $0x88] sm:$0xff] }
  0x1a   : > { %260 = vst.msk [vmem:[#allocation2 + $0xb9] sm:$0x1] %vm234_vm2, %v4794_v0  ;;  %261 = vst.msk [vmem:[#allocation2 + $0xd1] sm:$0x1] %vm234_vm2, %v4794_v0  ;;  %v4989_v21 = vld [vmem:[%s4899_s24 + $0x90] sm:$0xff]  ;;  %v4999_v22 = vld [vmem:[%s4899_s24 + $0x98] sm:$0xff] }
  0x1b   : > { %262 = vst.msk [vmem:[#allocation2 + $0xe9] sm:$0x1] %vm234_vm2, %v4794_v0  ;;  %263 = vst.msk [vmem:[#allocation2 + $0x101] sm:$0x1] %vm234_vm2, %v4794_v0  ;;  %v5002_v23 = vld [vmem:[%s4899_s24 + $0xa0] sm:$0xff]  ;;  %v5005_v24 = vld [vmem:[%s4899_s24 + $0xa8] sm:$0xff] }
  0x1c   : > { %264 = vst.msk [vmem:[#allocation2 + $0x119] sm:$0x1] %vm234_vm2, %v4794_v0  ;;  %265 = vst.msk [vmem:[#allocation2 + $0x131] sm:$0x1] %vm234_vm2, %v4794_v0  ;;  %v5022_v28 = vld [vmem:[%s4899_s24 + $0xb0] sm:$0xff]  ;;  %v5025_v29 = vld [vmem:[%s4899_s24 + $0xb8] sm:$0xff] }
  0x1d   : > { %266 = vst.msk [vmem:[#allocation2 + $0x149] sm:$0x1] %vm234_vm2, %v4794_v0  ;;  %267 = vst.msk [vmem:[#allocation2 + $0x161] sm:$0x1] %vm234_vm2, %v4794_v0  ;;  %v5044_v33 = vld [vmem:[%s4899_s24 + $0xc0] sm:$0xff]  ;;  %v5047_v34 = vld [vmem:[%s4899_s24 + $0xc8] sm:$0xff] }
  0x1e   : > { %268 = vst.msk [vmem:[#allocation2 + $0x179] sm:$0x1] %vm234_vm2, %v4794_v0  ;;  %269 = vst.msk [vmem:[#allocation2 + $0x191] sm:$0x1] %vm234_vm2, %v4794_v0  ;;  %v5050_v35 = vld [vmem:[%s4899_s24 + $0xd0] sm:$0xff]  ;;  %v5061_v36 = vld [vmem:[%s4899_s24 + $0xd8] sm:$0xff] }
  0x1f   : > { %253 = vst.msk [vmem:[#allocation2 + $0x11] sm:$0x1] %vm234_vm2, %v4794_v0  ;;  %235 = vst.msk [vmem:[#allocation2] sm:$0x1] %vm234_vm2, %v4794_v0  ;;  %v5064_v37 = vld [vmem:[%s4899_s24 + $0xe0] sm:$0xff]  ;;  %v5067_v38 = vld [vmem:[%s4899_s24 + $0xe8] sm:$0xff] }
  0x20   : > { %252 = vst.msk [vmem:[#allocation2 + $0x198] sm:$0x1] %vm234_vm2, %v4794_v0  ;;  %270 = vst.msk [vmem:[#allocation2 + $0x1a9] sm:$0x1] %vm234_vm2, %v4794_v0  ;;  %v337_v48 = vld [vmem:[#allocation2 + $0x8] sm:$0xff]  ;;  %s4801_s6 = smov 28  }
  0x21   : > { %7184 = vst [vmem:[#allocation4_spill] sm:$0xff] %v4902_v1  ;;  %7185 = vst [vmem:[#allocation5_spill] sm:$0xff] %v4905_v2  ;;  %vm2086_vm8 = vcmask 1043456   ;;  %s4802_s17 = smov 32   ;;  %vm1526_vm9 = vcmask 228544   ;;  %vm1719_vm10 = vcmask 261344  }
  0x22   : > { %7186 = vst [vmem:[#allocation6_spill] sm:$0xff] %v4908_v3  ;;  %304 = vst.msk [vmem:[#allocation2 + $0x19] sm:$0xff] %vm225_vm0, %v4902_v1  ;;  %vm1912_vm11 = vcmask 294144   ;;  %vm1989_vm12 = vcmask 293888  }
  0x23   : > { %305 = vst.msk [vmem:[#allocation2 + $0x21] sm:$0xff] %vm225_vm0, %v4905_v2  ;;  %306 = vst.msk [vmem:[#allocation2 + $0x31] sm:$0xff] %vm225_vm0, %v4908_v3 }
  0x24   : > { %7187 = vst [vmem:[#allocation7_spill] sm:$0xff] %v4917_v4  ;;  %7188 = vst [vmem:[#allocation8_spill] sm:$0xff] %v4920_v5 }
  0x25   : > { %7189 = vst [vmem:[#allocation9_spill] sm:$0xff] %v4923_v6  ;;  %307 = vst.msk [vmem:[#allocation2 + $0x39] sm:$0xff] %vm225_vm0, %v4917_v4  ;;  %v593_v4 = vld [vmem:[#allocation2 + $0x2] sm:$0xff] }
  0x26   : > { %308 = vst.msk [vmem:[#allocation2 + $0x49] sm:$0xff] %vm225_vm0, %v4920_v5  ;;  %309 = vst.msk [vmem:[#allocation2 + $0x51] sm:$0xff] %vm225_vm0, %v4923_v6  ;;  %v336_v45 = vld [vmem:[#allocation2] sm:$0xff]  ;;  %v5289_v6 = vld [vmem:[%s4899_s24 + $0xf8] sm:$0xff] }
  0x27   : > { %7190 = vst [vmem:[#allocation10_spill] sm:$0xff] %v4932_v9  ;;  %310 = vst.msk [vmem:[#allocation2 + $0x61] sm:$0xff] %vm225_vm0, %v4932_v9 }
  0x28   : > { %7191 = vst [vmem:[#allocation11_spill] sm:$0xff] %v4938_v10  ;;  %7192 = vst [vmem:[#allocation12_spill] sm:$0xff] %v4941_v11 }
  0x29   : > { %7193 = vst [vmem:[#allocation13_spill] sm:$0xff] %v4944_v12  ;;  %311 = vst.msk [vmem:[#allocation2 + $0x69] sm:$0xff] %vm225_vm0, %v4938_v10  ;;  %v5007_v25 = vld [vmem:[#allocation2 + $0x19] sm:$0xff]  ;;  %v5282_v10 = vld [vmem:[%s4899_s24 + $0xf0] sm:$0xff] }
  0x2a   : > { %312 = vst.msk [vmem:[#allocation2 + $0x79] sm:$0xff] %vm225_vm0, %v4941_v11  ;;  %313 = vst.msk [vmem:[#allocation2 + $0x81] sm:$0xff] %vm225_vm0, %v4944_v12  ;;  %v5009_v26 = vld [vmem:[#allocation2 + $0x31] sm:$0xff]  ;;  %468 = vrot.lane.b32.xlu1 %v5007_v25, %s4795_s25  ;;  %v5019_v27 = vld [vmem:[#allocation2 + $0x21] sm:$0xff] }
  0x2b   : > { %7194 = vst [vmem:[#allocation14_spill] sm:$0xff] %v4953_v13  ;;  %7195 = vst [vmem:[#allocation15_spill] sm:$0xff] %v4956_v14  ;;  %472 = vrot.lane.b32.xlu0 %v5009_v26, %s4795_s25  ;;  %v5099_v46 = vld [vmem:[#allocation2 + $0x18] sm:$0xff]  ;;  %v5109_v49 = vld [vmem:[#allocation2 + $0x20] sm:$0xff] }
  0x2c   : > { %7196 = vst [vmem:[#allocation16_spill] sm:$0xff] %v4959_v15  ;;  %314 = vst.msk [vmem:[#allocation2 + $0x91] sm:$0xff] %vm225_vm0, %v4953_v13  ;;  %v5037_v31 = vld [vmem:[#allocation2 + $0x39] sm:$0xff]  ;;  %v5115_v51 = vld [vmem:[#allocation2 + $0x30] sm:$0xff] }
  0x2d   : > { %315 = vst.msk [vmem:[#allocation2 + $0x99] sm:$0xff] %vm225_vm0, %v4956_v14  ;;  %316 = vst.msk [vmem:[#allocation2 + $0xa9] sm:$0xff] %vm225_vm0, %v4959_v15  ;;  %v5033_v30 = vld [vmem:[#allocation2 + $0x49] sm:$0xff]  ;;  %v5069_v39 = vld [vmem:[#allocation2 + $0x51] sm:$0xff] }
  0x2e   : > { %7197 = vst [vmem:[#allocation17_spill] sm:$0xff] %v4968_v16  ;;  %7198 = vst [vmem:[#allocation18_spill] sm:$0xff] %v4971_v17  ;;  %470 = vrot.lane.b32.xlu1 %v5019_v27, %s4795_s25  ;;  %v5041_v32 = vld [vmem:[#allocation2 + $0x61] sm:$0xff]  ;;  %v5117_v52 = vld [vmem:[#allocation2 + $0x38] sm:$0xff] }
  0x2f   : > { %7199 = vst [vmem:[#allocation19_spill] sm:$0xff] %v4974_v18  ;;  %317 = vst.msk [vmem:[#allocation2 + $0xb1] sm:$0xff] %vm225_vm0, %v4968_v16  ;;  %476 = vrot.lane.b32.xlu0 %v5033_v30, %s4795_s25  ;;  %v5127_v54 = vld [vmem:[#allocation2 + $0x48] sm:$0xff]  ;;  %v5129_v55 = vld [vmem:[#allocation2 + $0x50] sm:$0xff] }
  0x30   : > { %318 = vst.msk [vmem:[#allocation2 + $0xc1] sm:$0xff] %vm225_vm0, %v4971_v17  ;;  %319 = vst.msk [vmem:[#allocation2 + $0xc9] sm:$0xff] %vm225_vm0, %v4974_v18  ;;  %v5083_v41 = vld [vmem:[#allocation2 + $0x69] sm:$0xff]  ;;  %v5137_v57 = vld [vmem:[#allocation2 + $0x60] sm:$0xff] }
  0x31   : > { %7200 = vst [vmem:[#allocation20_spill] sm:$0xff] %v4983_v19  ;;  %7201 = vst [vmem:[#allocation21_spill] sm:$0xff] %v4986_v20  ;;  %v5079_v40 = vld [vmem:[#allocation2 + $0x79] sm:$0xff]  ;;  %v5091_v43 = vld [vmem:[#allocation2 + $0x81] sm:$0xff] }
  0x32   : > { %7202 = vst [vmem:[#allocation22_spill] sm:$0xff] %v4989_v21  ;;  %320 = vst.msk [vmem:[#allocation2 + $0xd9] sm:$0xff] %vm225_vm0, %v4983_v19  ;;  %474 = vrot.lane.b32.xlu1 %v5037_v31, %s4795_s25  ;;  %v5139_v58 = vld [vmem:[#allocation2 + $0x68] sm:$0xff]  ;;  %v5141_v59 = vld [vmem:[#allocation2 + $0x78] sm:$0xff] }
  0x33   : > { %321 = vst.msk [vmem:[#allocation2 + $0xe1] sm:$0xff] %vm225_vm0, %v4986_v20  ;;  %322 = vst.msk [vmem:[#allocation2 + $0xf1] sm:$0xff] %vm225_vm0, %v4989_v21  ;;  %480 = vrot.lane.b32.xlu0 %v5041_v32, %s4795_s25  ;;  %v5087_v42 = vld [vmem:[#allocation2 + $0x91] sm:$0xff]  ;;  %v5151_v60 = vld [vmem:[#allocation2 + $0x80] sm:$0xff] }
  0x34   : > { %7203 = vst [vmem:[#allocation23_spill] sm:$0xff] %v4999_v22  ;;  %7204 = vst [vmem:[#allocation24_spill] sm:$0xff] %v5002_v23  ;;  %v5095_v44 = vld [vmem:[#allocation2 + $0xa9] sm:$0xff]  ;;  %v5101_v47 = vld [vmem:[#allocation2 + $0x99] sm:$0xff] }
  0x35   : > { %7205 = vst [vmem:[#allocation25_spill] sm:$0xff] %v5005_v24  ;;  %323 = vst.msk [vmem:[#allocation2 + $0xf9] sm:$0xff] %vm225_vm0, %v4999_v22  ;;  %v5153_v61 = vld [vmem:[#allocation2 + $0x90] sm:$0xff]  ;;  %v5155_v62 = vld [vmem:[#allocation2 + $0x98] sm:$0xff] }
  0x36   : > { %324 = vst.msk [vmem:[#allocation2 + $0x109] sm:$0xff] %vm225_vm0, %v5002_v23  ;;  %325 = vst.msk [vmem:[#allocation2 + $0x111] sm:$0xff] %vm225_vm0, %v5005_v24  ;;  %478 = vrot.lane.b32.xlu1 %v5069_v39, %s4795_s25  ;;  %v5121_v53 = vld [vmem:[#allocation2 + $0xb1] sm:$0xff]  ;;  %v5165_v0 = vld [vmem:[#allocation2 + $0xa8] sm:$0xff] }
  0x37   : > { %7206 = vst [vmem:[#allocation26_spill] sm:$0xff] %v5022_v28  ;;  %7207 = vst [vmem:[#allocation27_spill] sm:$0xff] %v5025_v29  ;;  %484 = vrot.lane.b32.xlu0 %v5079_v40, %s4795_s25  ;;  %v5111_v50 = vld [vmem:[#allocation2 + $0xc1] sm:$0xff]  ;;  %v5157_v63 = vld [vmem:[#allocation2 + $0xc9] sm:$0xff] }
  0x38   : > { %326 = vst.msk [vmem:[#allocation2 + $0x121] sm:$0xff] %vm225_vm0, %v5022_v28  ;;  %327 = vst.msk [vmem:[#allocation2 + $0x129] sm:$0xff] %vm225_vm0, %v5025_v29  ;;  %v5167_v7 = vld [vmem:[#allocation2 + $0xb0] sm:$0xff]  ;;  %v5169_v8 = vld [vmem:[#allocation2 + $0xc0] sm:$0xff] }
  0x39   : > { %7208 = vst [vmem:[#allocation28_spill] sm:$0xff] %v5044_v33  ;;  %7209 = vst [vmem:[#allocation29_spill] sm:$0xff] %v5047_v34  ;;  %v5131_v56 = vld [vmem:[#allocation2 + $0xd9] sm:$0xff] }
  0x3a   : > { %7210 = vst [vmem:[#allocation30_spill] sm:$0xff] %v5050_v35  ;;  %328 = vst.msk [vmem:[#allocation2 + $0x139] sm:$0xff] %vm225_vm0, %v5044_v33  ;;  %482 = vrot.lane.b32.xlu1 %v5083_v41, %s4795_s25  ;;  %v5217_v23 = vld [vmem:[#allocation2 + $0xe1] sm:$0xff]  ;;  %v5310_v2 = vld [vmem:[#allocation2 + $0x32] sm:$0xff] }
  0x3b   : > { %329 = vst.msk [vmem:[#allocation2 + $0x141] sm:$0xff] %vm225_vm0, %v5047_v34  ;;  %330 = vst.msk [vmem:[#allocation2 + $0x151] sm:$0xff] %vm225_vm0, %v5050_v35  ;;  %488 = vrot.lane.b32.xlu0 %v5087_v42, %s4795_s25  ;;  %v5207_v34 = vld [vmem:[#allocation2 + $0xf1] sm:$0xff] }
  0x3c   : > { %7211 = vst [vmem:[#allocation31_spill] sm:$0xff] %v5061_v36  ;;  %7212 = vst [vmem:[#allocation32_spill] sm:$0xff] %v5064_v37  ;;  %v5193_v35 = vld [vmem:[#allocation2 + $0xf8] sm:$0xff] }
  0x3d   : > { %7213 = vst [vmem:[#allocation33_spill] sm:$0xff] %v5067_v38  ;;  %331 = vst.msk [vmem:[#allocation2 + $0x159] sm:$0xff] %vm225_vm0, %v5061_v36  ;;  %v5195_v36 = vld [vmem:[#allocation2 + $0x108] sm:$0xff]  ;;  %v5205_v33 = vld [vmem:[#allocation2 + $0x110] sm:$0xff] }
  0x3e   : > { %332 = vst.msk [vmem:[#allocation2 + $0x169] sm:$0xff] %vm225_vm0, %v5064_v37  ;;  %333 = vst.msk [vmem:[#allocation2 + $0x171] sm:$0xff] %vm225_vm0, %v5067_v38  ;;  %486 = vrot.lane.b32.xlu1 %v5091_v43, %s4795_s25  ;;  %v5183_v37 = vld [vmem:[#allocation2 + $0xe0] sm:$0xff]  ;;  %v5191_v38 = vld [vmem:[#allocation2 + $0xf0] sm:$0xff] }
  0x3f   : > { %368 = vst.msk [vmem:[#allocation3] sm:$0xff] %vm225_vm0, %v336_v45  ;;  %370 = vst.msk [vmem:[#allocation3 + $0x10] sm:$0xff] %vm225_vm0, %v5099_v46  ;;  %492 = vrot.lane.b32.xlu0 %v5095_v44, %s4795_s25  ;;  %v5179_v45 = vld [vmem:[#allocation2 + $0xc8] sm:$0xff]  ;;  %v5213_v28 = vld [vmem:[#allocation2 + $0x120] sm:$0xff] }
  0x40   : > { %369 = vst.msk [vmem:[#allocation3 + $0x8] sm:$0xff] %vm225_vm0, %v337_v48  ;;  %371 = vst.msk [vmem:[#allocation3 + $0x18] sm:$0xff] %vm225_vm0, %v5109_v49  ;;  %v5181_v48 = vld [vmem:[#allocation2 + $0xd8] sm:$0xff]  ;;  %v5215_v29 = vld [vmem:[#allocation2 + $0x128] sm:$0xff] }
  0x41   : > { %372 = vst.msk [vmem:[#allocation3 + $0x20] sm:$0xff] %vm225_vm0, %v5115_v51  ;;  %373 = vst.msk [vmem:[#allocation3 + $0x28] sm:$0xff] %vm225_vm0, %v5117_v52  ;;  %v5225_v24 = vld [vmem:[#allocation2 + $0x109] sm:$0xff]  ;;  %v5229_v21 = vld [vmem:[#allocation2 + $0x138] sm:$0xff] }
  0x42   : > { %490 = vrot.lane.b32.xlu1 %v5101_v47, %s4795_s25  ;;  %374 = vst.msk [vmem:[#allocation3 + $0x30] sm:$0xff] %vm225_vm0, %v5127_v54  ;;  %375 = vst.msk [vmem:[#allocation3 + $0x38] sm:$0xff] %vm225_vm0, %v5129_v55  ;;  %v5231_v22 = vld [vmem:[#allocation2 + $0x140] sm:$0xff]  ;;  %v5245_v17 = vld [vmem:[#allocation2 + $0x150] sm:$0xff] }
  0x43   : > { %496 = vrot.lane.b32.xlu0 %v5111_v50, %s4795_s25  ;;  %376 = vst.msk [vmem:[#allocation3 + $0x40] sm:$0xff] %vm225_vm0, %v5137_v57  ;;  %377 = vst.msk [vmem:[#allocation3 + $0x48] sm:$0xff] %vm225_vm0, %v5139_v58  ;;  %v5233_v19 = vld [vmem:[#allocation2 + $0xf9] sm:$0xff]  ;;  %v5241_v20 = vld [vmem:[#allocation2 + $0x121] sm:$0xff] }
  0x44   : > { %378 = vst.msk [vmem:[#allocation3 + $0x50] sm:$0xff] %vm225_vm0, %v5141_v59  ;;  %379 = vst.msk [vmem:[#allocation3 + $0x58] sm:$0xff] %vm225_vm0, %v5151_v60  ;;  %v5247_v18 = vld [vmem:[#allocation2 + $0x158] sm:$0xff]  ;;  %v5265_v11 = vld [vmem:[#allocation2 + $0x129] sm:$0xff] }
  0x45   : > { %380 = vst.msk [vmem:[#allocation3 + $0x60] sm:$0xff] %vm225_vm0, %v5153_v61  ;;  %381 = vst.msk [vmem:[#allocation3 + $0x68] sm:$0xff] %vm225_vm0, %v5155_v62  ;;  %v5249_v15 = vld [vmem:[#allocation2 + $0x111] sm:$0xff]  ;;  %v5257_v16 = vld [vmem:[#allocation2 + $0x139] sm:$0xff] }
  0x46   : > { %494 = vrot.lane.b32.xlu1 %v5121_v53, %s4795_s25  ;;  %382 = vst.msk [vmem:[#allocation3 + $0x70] sm:$0xff] %vm225_vm0, %v5165_v0  ;;  %383 = vst.msk [vmem:[#allocation3 + $0x78] sm:$0xff] %vm225_vm0, %v5167_v7  ;;  %v5261_v13 = vld [vmem:[#allocation2 + $0x168] sm:$0xff]  ;;  %v5263_v14 = vld [vmem:[#allocation2 + $0x170] sm:$0xff] }
  0x47   : > { %384 = vst.msk [vmem:[#allocation3 + $0x80] sm:$0xff] %vm225_vm0, %v5169_v8  ;;  %385 = vst.msk [vmem:[#allocation3 + $0x88] sm:$0xff] %vm225_vm0, %v5179_v45  ;;  %500 = vrot.lane.b32.xlu0 %v5131_v56, %s4795_s25  ;;  %v5273_v12 = vld [vmem:[#allocation2 + $0x151] sm:$0xff]  ;;  %v5277_v9 = vld [vmem:[#allocation2 + $0x141] sm:$0xff] }
  0x48   : > { %386 = vst.msk [vmem:[#allocation3 + $0x90] sm:$0xff] %vm225_vm0, %v5181_v48  ;;  %387 = vst.msk [vmem:[#allocation3 + $0x98] sm:$0xff] %vm225_vm0, %v5183_v37  ;;  %v5284_v5 = vld [vmem:[#allocation2 + $0x169] sm:$0xff]  ;;  %v5295_v3 = vld [vmem:[#allocation2 + $0x159] sm:$0xff] }
  0x49   : > { %388 = vst.msk [vmem:[#allocation3 + $0xa0] sm:$0xff] %vm225_vm0, %v5191_v38  ;;  %389 = vst.msk [vmem:[#allocation3 + $0xa8] sm:$0xff] %vm225_vm0, %v5193_v35  ;;  %v5301_v1 = vld [vmem:[#allocation2 + $0x171] sm:$0xff] }
  0x4a   : > { %390 = vst.msk [vmem:[#allocation3 + $0xb0] sm:$0xff] %vm225_vm0, %v5195_v36  ;;  %391 = vst.msk [vmem:[#allocation3 + $0xb8] sm:$0xff] %vm225_vm0, %v5205_v33  ;;  %498 = vrot.lane.b32.xlu1 %v5157_v63, %s4795_s25 }
  0x4b   : > { %392 = vst.msk [vmem:[#allocation3 + $0xc0] sm:$0xff] %vm225_vm0, %v5213_v28  ;;  %393 = vst.msk [vmem:[#allocation3 + $0xc8] sm:$0xff] %vm225_vm0, %v5215_v29  ;;  %504 = vrot.lane.b32.xlu0 %v5207_v34, %s4795_s25 }
  0x4c   : > { %394 = vst.msk [vmem:[#allocation3 + $0xd0] sm:$0xff] %vm225_vm0, %v5229_v21  ;;  %395 = vst.msk [vmem:[#allocation3 + $0xd8] sm:$0xff] %vm225_vm0, %v5231_v22 }
  0x4d   : > { %396 = vst.msk [vmem:[#allocation3 + $0xe0] sm:$0xff] %vm225_vm0, %v5245_v17  ;;  %397 = vst.msk [vmem:[#allocation3 + $0xe8] sm:$0xff] %vm225_vm0, %v5247_v18 }
  0x4e   : > { %502 = vrot.lane.b32.xlu1 %v5217_v23, %s4795_s25  ;;  %398 = vst.msk [vmem:[#allocation3 + $0xf0] sm:$0xff] %vm225_vm0, %v5261_v13  ;;  %399 = vst.msk [vmem:[#allocation3 + $0xf8] sm:$0xff] %vm225_vm0, %v5263_v14 }
  0x4f   : > { %508 = vrot.lane.b32.xlu0 %v5225_v24, %s4795_s25  ;;  %7214 = vst [vmem:[#allocation34_spill] sm:$0xff] %v5277_v9  ;;  %7215 = vst [vmem:[#allocation35_spill] sm:$0xff] %v5282_v10 }
  0x50   : > { %7216 = vst [vmem:[#allocation36_spill] sm:$0xff] %v5284_v5  ;;  %334 = vst.msk [vmem:[#allocation2 + $0x181] sm:$0xff] %vm225_vm0, %v5282_v10  ;;  %v5304_v10 = vld [vmem:[#allocation2 + $0x1a] sm:$0xff] }
  0x51   : > { %7217 = vst [vmem:[#allocation37_spill] sm:$0xff] %v5289_v6  ;;  %335 = vst.msk [vmem:[#allocation2 + $0x189] sm:$0xff] %vm225_vm0, %v5289_v6  ;;  %v594_v6 = vld [vmem:[#allocation2 + $0xa] sm:$0xff] }
  0x52   : > { %506 = vrot.lane.b32.xlu1 %v5233_v19, %s4795_s25  ;;  %7218 = vst [vmem:[#allocation38_spill] sm:$0xff] %v5295_v3  ;;  %7219 = vst [vmem:[#allocation39_spill] sm:$0xff] %v5301_v1 }
  0x53   : > { %512 = vrot.lane.b32.xlu0 %v5241_v20, %s4795_s25  ;;  %7220 = vst [vmem:[#allocation40_spill] sm:$0xff] %v5304_v10  ;;  %7221 = vst [vmem:[#allocation41_spill] sm:$0xff] %v5310_v2 }
  0x56   : > { %510 = vrot.lane.b32.xlu1 %v5249_v15, %s4795_s25 }
  0x57   : > { %516 = vrot.lane.b32.xlu0 %v5257_v16, %s4795_s25 }
  0x5a   : > { %514 = vrot.lane.b32.xlu1 %v5265_v11, %s4795_s25 }
  0x5b   : > { %520 = vrot.lane.b32.xlu0 %v5273_v12, %s4795_s25 }
  0x5e   : > { %518 = vrot.lane.b32.xlu1 %v5277_v9, %s4795_s25 }
  0x5f   : > { %524 = vrot.lane.b32.xlu0 %v5284_v5, %s4795_s25  ;;  %v5313_v5 = vld [vmem:[#allocation2 + $0x22] sm:$0xff] }
  0x60   : > { %7222 = vst [vmem:[#allocation42_spill] sm:$0xff] %v5313_v5 }
  0x62   : > { %522 = vrot.lane.b32.xlu1 %v5295_v3, %s4795_s25  ;;  %v5317_v3 = vld [vmem:[#allocation2 + $0x4a] sm:$0xff] }
  0x63   : > { %657 = vrot.lane.b32.xlu0 %v593_v4, %s4796_s26  ;;  %7223 = vst [vmem:[#allocation43_spill] sm:$0xff] %v5317_v3  ;;  %v5321_v4 = vld [vmem:[#allocation2 + $0x3a] sm:$0xff] }
  0x64   : > { %7224 = vst [vmem:[#allocation44_spill] sm:$0xff] %v5321_v4 }
  0x66   : > { %526 = vrot.lane.b32.xlu1 %v5301_v1, %s4795_s25  ;;  %v5401_v1 = vld [vmem:[#allocation2 + $0x12a] sm:$0xff] }
  0x67   : > { %661 = vrot.lane.b32.xlu0 %v5304_v10, %s4796_s26  ;;  %v5325_v10 = vld [vmem:[#allocation2 + $0x62] sm:$0xff]  ;;  %7244 = vst [vmem:[#allocation64_spill] sm:$0xff] %v5401_v1 }
  0x68   : > { %7225 = vst [vmem:[#allocation45_spill] sm:$0xff] %v5325_v10 }
  0x6a   : > { %659 = vrot.lane.b32.xlu1 %v594_v6, %s4796_s26  ;;  %v5329_v6 = vld [vmem:[#allocation2 + $0x52] sm:$0xff] }
  0x6b   : > { %665 = vrot.lane.b32.xlu0 %v5310_v2, %s4796_s26  ;;  %7226 = vst [vmem:[#allocation46_spill] sm:$0xff] %v5329_v6  ;;  %v5333_v2 = vld [vmem:[#allocation2 + $0x7a] sm:$0xff] }
  0x6c   : > { %7227 = vst [vmem:[#allocation47_spill] sm:$0xff] %v5333_v2 }
  0x6e   : > { %663 = vrot.lane.b32.xlu1 %v5313_v5, %s4796_s26  ;;  %v5337_v5 = vld [vmem:[#allocation2 + $0x6a] sm:$0xff] }
  0x6f   : > { %669 = vrot.lane.b32.xlu0 %v5317_v3, %s4796_s26  ;;  %7228 = vst [vmem:[#allocation48_spill] sm:$0xff] %v5337_v5  ;;  %v5341_v3 = vld [vmem:[#allocation2 + $0x92] sm:$0xff] }
  0x70   : > { %7229 = vst [vmem:[#allocation49_spill] sm:$0xff] %v5341_v3 }
  0x72   : > { %667 = vrot.lane.b32.xlu1 %v5321_v4, %s4796_s26  ;;  %v5345_v4 = vld [vmem:[#allocation2 + $0x82] sm:$0xff] }
  0x73   : > { %673 = vrot.lane.b32.xlu0 %v5325_v10, %s4796_s26  ;;  %7230 = vst [vmem:[#allocation50_spill] sm:$0xff] %v5345_v4  ;;  %v5349_v10 = vld [vmem:[#allocation2 + $0xaa] sm:$0xff] }
  0x74   : > { %7231 = vst [vmem:[#allocation51_spill] sm:$0xff] %v5349_v10 }
  0x76   : > { %671 = vrot.lane.b32.xlu1 %v5329_v6, %s4796_s26  ;;  %v5353_v6 = vld [vmem:[#allocation2 + $0x9a] sm:$0xff] }
  0x77   : > { %677 = vrot.lane.b32.xlu0 %v5333_v2, %s4796_s26  ;;  %7232 = vst [vmem:[#allocation52_spill] sm:$0xff] %v5353_v6  ;;  %v5357_v2 = vld [vmem:[#allocation2 + $0xc2] sm:$0xff] }
  0x78   : > { %7233 = vst [vmem:[#allocation53_spill] sm:$0xff] %v5357_v2 }
  0x7a   : > { %675 = vrot.lane.b32.xlu1 %v5337_v5, %s4796_s26  ;;  %v5361_v5 = vld [vmem:[#allocation2 + $0xb2] sm:$0xff] }
  0x7b   : > { %681 = vrot.lane.b32.xlu0 %v5341_v3, %s4796_s26  ;;  %7234 = vst [vmem:[#allocation54_spill] sm:$0xff] %v5361_v5  ;;  %v5365_v3 = vld [vmem:[#allocation2 + $0xda] sm:$0xff] }
  0x7c   : > { %7235 = vst [vmem:[#allocation55_spill] sm:$0xff] %v5365_v3 }
  0x7e   : > { %679 = vrot.lane.b32.xlu1 %v5345_v4, %s4796_s26  ;;  %v5369_v4 = vld [vmem:[#allocation2 + $0xca] sm:$0xff] }
  0x7f   : > { %685 = vrot.lane.b32.xlu0 %v5349_v10, %s4796_s26  ;;  %7236 = vst [vmem:[#allocation56_spill] sm:$0xff] %v5369_v4  ;;  %v5373_v10 = vld [vmem:[#allocation2 + $0xf2] sm:$0xff] }
  0x80   : > { %7237 = vst [vmem:[#allocation57_spill] sm:$0xff] %v5373_v10 }
  0x82   : > { %683 = vrot.lane.b32.xlu1 %v5353_v6, %s4796_s26  ;;  %v5377_v6 = vld [vmem:[#allocation2 + $0xe2] sm:$0xff] }
  0x83   : > { %689 = vrot.lane.b32.xlu0 %v5357_v2, %s4796_s26  ;;  %7238 = vst [vmem:[#allocation58_spill] sm:$0xff] %v5377_v6  ;;  %v5381_v2 = vld [vmem:[#allocation2 + $0x10a] sm:$0xff] }
  0x84   : > { %7239 = vst [vmem:[#allocation59_spill] sm:$0xff] %v5381_v2 }
  0x86   : > { %687 = vrot.lane.b32.xlu1 %v5361_v5, %s4796_s26  ;;  %v5385_v5 = vld [vmem:[#allocation2 + $0xfa] sm:$0xff] }
  0x87   : > { %693 = vrot.lane.b32.xlu0 %v5365_v3, %s4796_s26  ;;  %7240 = vst [vmem:[#allocation60_spill] sm:$0xff] %v5385_v5  ;;  %v5389_v3 = vld [vmem:[#allocation2 + $0x122] sm:$0xff] }
  0x88   : > { %7241 = vst [vmem:[#allocation61_spill] sm:$0xff] %v5389_v3 }
  0x8a   : > { %691 = vrot.lane.b32.xlu1 %v5369_v4, %s4796_s26  ;;  %v5393_v4 = vld [vmem:[#allocation2 + $0x112] sm:$0xff] }
  0x8b   : > { %697 = vrot.lane.b32.xlu0 %v5373_v10, %s4796_s26  ;;  %7242 = vst [vmem:[#allocation62_spill] sm:$0xff] %v5393_v4  ;;  %v5397_v10 = vld [vmem:[#allocation2 + $0x13a] sm:$0xff] }
  0x8c   : > { %7243 = vst [vmem:[#allocation63_spill] sm:$0xff] %v5397_v10 }
  0x8e   : > { %695 = vrot.lane.b32.xlu1 %v5377_v6, %s4796_s26  ;;  %v465_v6 = vpop.permute.xlu0 %464 }
  0x8f   : > { %701 = vrot.lane.b32.xlu0 %v5381_v2, %s4796_s26  ;;  %561 = vst.msk [vmem:[#allocation3] sm:$0xff] %vm560_vm3, %v465_v6  ;;  %v5410_v2 = vld [vmem:[#allocation2 + $0x142] sm:$0xff]  ;;  %v5416_v6 = vld [vmem:[#allocation2 + $0x16a] sm:$0xff] }
  0x90   : > { %7245 = vst [vmem:[#allocation65_spill] sm:$0xff] %v5410_v2 }
  0x92   : > { %699 = vrot.lane.b32.xlu1 %v5385_v5, %s4796_s26  ;;  %v5406_v5 = vld [vmem:[#allocation2 + $0x152] sm:$0xff] }
  0x93   : > { %705 = vrot.lane.b32.xlu0 %v5389_v3, %s4796_s26  ;;  %v467_v3 = vpop.permute.xlu0 %466 }
  0x94   : > { %562 = vst.msk [vmem:[#allocation3 + $0x8] sm:$0xff] %vm560_vm3, %v467_v3 }
  0x96   : > { %703 = vrot.lane.b32.xlu1 %v5393_v4, %s4796_s26  ;;  %v5420_v4 = vld [vmem:[#allocation2 + $0x15a] sm:$0xff] }
  0x97   : > { %709 = vrot.lane.b32.xlu0 %v5397_v10, %s4796_s26 }
  0x9a   : > { %707 = vrot.lane.b32.xlu1 %v5401_v1, %s4796_s26 }
  0x9b   : > { %713 = vrot.lane.b32.xlu0 %v5406_v5, %s4796_s26 }
  0x9c   : > { %v469_v9 = vpop.permute.xlu1 %468 }
  0x9d   : > { %563 = vst.msk [vmem:[#allocation3 + $0x10] sm:$0xff] %vm560_vm3, %v469_v9  ;;  %v473_v10 = vpop.permute.xlu0 %472  ;;  %v5428_v9 = vld [vmem:[#allocation2 + $0x172] sm:$0xff] }
  0x9e   : > { %711 = vrot.lane.b32.xlu1 %v5410_v2, %s4796_s26  ;;  %565 = vst.msk [vmem:[#allocation3 + $0x20] sm:$0xff] %vm560_vm3, %v473_v10 }
  0x9f   : > { %717 = vrot.lane.b32.xlu0 %v5416_v6, %s4796_s26 }
  0xa0   : > { %v471_v1 = vpop.permute.xlu1 %470 }
  0xa1   : > { %564 = vst.msk [vmem:[#allocation3 + $0x18] sm:$0xff] %vm560_vm3, %v471_v1  ;;  %v477_v3 = vpop.permute.xlu0 %476 }
  0xa2   : > { %715 = vrot.lane.b32.xlu1 %v5420_v4, %s4796_s26  ;;  %567 = vst.msk [vmem:[#allocation3 + $0x30] sm:$0xff] %vm560_vm3, %v477_v3 }
  0xa3   : > { %850 = vrot.lane.b32.xlu0 %v5099_v46, %s4797_s27 }
  0xa4   : > { %v475_v2 = vpop.permute.xlu1 %474 }
  0xa5   : > { %566 = vst.msk [vmem:[#allocation3 + $0x28] sm:$0xff] %vm560_vm3, %v475_v2  ;;  %v481_v10 = vpop.permute.xlu0 %480 }
  0xa6   : > { %719 = vrot.lane.b32.xlu1 %v5428_v9, %s4796_s26  ;;  %569 = vst.msk [vmem:[#allocation3 + $0x40] sm:$0xff] %vm560_vm3, %v481_v10 }
  0xa7   : > { %854 = vrot.lane.b32.xlu0 %v5115_v51, %s4797_s27 }
  0xa8   : > { %v479_v1 = vpop.permute.xlu1 %478 }
  0xa9   : > { %568 = vst.msk [vmem:[#allocation3 + $0x38] sm:$0xff] %vm560_vm3, %v479_v1  ;;  %v485_v3 = vpop.permute.xlu0 %484 }
  0xaa   : > { %852 = vrot.lane.b32.xlu1 %v5109_v49, %s4797_s27  ;;  %571 = vst.msk [vmem:[#allocation3 + $0x50] sm:$0xff] %vm560_vm3, %v485_v3 }
  0xab   : > { %858 = vrot.lane.b32.xlu0 %v5127_v54, %s4797_s27 }
  0xac   : > { %v483_v46 = vpop.permute.xlu1 %482 }
  0xad   : > { %570 = vst.msk [vmem:[#allocation3 + $0x48] sm:$0xff] %vm560_vm3, %v483_v46  ;;  %v489_v2 = vpop.permute.xlu0 %488 }
  0xae   : > { %856 = vrot.lane.b32.xlu1 %v5117_v52, %s4797_s27  ;;  %573 = vst.msk [vmem:[#allocation3 + $0x60] sm:$0xff] %vm560_vm3, %v489_v2 }
  0xaf   : > { %862 = vrot.lane.b32.xlu0 %v5137_v57, %s4797_s27 }
  0xb0   : > { %v487_v10 = vpop.permute.xlu1 %486 }
  0xb1   : > { %572 = vst.msk [vmem:[#allocation3 + $0x58] sm:$0xff] %vm560_vm3, %v487_v10  ;;  %v493_v49 = vpop.permute.xlu0 %492 }
  0xb2   : > { %860 = vrot.lane.b32.xlu1 %v5129_v55, %s4797_s27  ;;  %575 = vst.msk [vmem:[#allocation3 + $0x70] sm:$0xff] %vm560_vm3, %v493_v49 }
  0xb3   : > { %866 = vrot.lane.b32.xlu0 %v5141_v59, %s4797_s27 }
  0xb4   : > { %v491_v1 = vpop.permute.xlu1 %490 }
  0xb5   : > { %574 = vst.msk [vmem:[#allocation3 + $0x68] sm:$0xff] %vm560_vm3, %v491_v1  ;;  %v497_v3 = vpop.permute.xlu0 %496 }
  0xb6   : > { %864 = vrot.lane.b32.xlu1 %v5139_v58, %s4797_s27  ;;  %577 = vst.msk [vmem:[#allocation3 + $0x80] sm:$0xff] %vm560_vm3, %v497_v3 }
  0xb7   : > { %870 = vrot.lane.b32.xlu0 %v5153_v61, %s4797_s27 }
  0xb8   : > { %v495_v46 = vpop.permute.xlu1 %494 }
  0xb9   : > { %576 = vst.msk [vmem:[#allocation3 + $0x78] sm:$0xff] %vm560_vm3, %v495_v46  ;;  %v501_v2 = vpop.permute.xlu0 %500 }
  0xba   : > { %868 = vrot.lane.b32.xlu1 %v5151_v60, %s4797_s27  ;;  %579 = vst.msk [vmem:[#allocation3 + $0x90] sm:$0xff] %vm560_vm3, %v501_v2 }
  0xbb   : > { %874 = vrot.lane.b32.xlu0 %v5165_v0, %s4797_s27 }
  0xbc   : > { %v499_v10 = vpop.permute.xlu1 %498 }
  0xbd   : > { %578 = vst.msk [vmem:[#allocation3 + $0x88] sm:$0xff] %vm560_vm3, %v499_v10  ;;  %v505_v49 = vpop.permute.xlu0 %504 }
  0xbe   : > { %872 = vrot.lane.b32.xlu1 %v5155_v62, %s4797_s27  ;;  %581 = vst.msk [vmem:[#allocation3 + $0xa0] sm:$0xff] %vm560_vm3, %v505_v49 }
  0xbf   : > { %878 = vrot.lane.b32.xlu0 %v5169_v8, %s4797_s27 }
  0xc0   : > { %v503_v1 = vpop.permute.xlu1 %502 }
  0xc1   : > { %580 = vst.msk [vmem:[#allocation3 + $0x98] sm:$0xff] %vm560_vm3, %v503_v1  ;;  %v509_v3 = vpop.permute.xlu0 %508 }
  0xc2   : > { %876 = vrot.lane.b32.xlu1 %v5167_v7, %s4797_s27  ;;  %583 = vst.msk [vmem:[#allocation3 + $0xb0] sm:$0xff] %vm560_vm3, %v509_v3 }
  0xc3   : > { %882 = vrot.lane.b32.xlu0 %v5181_v48, %s4797_s27 }
  0xc4   : > { %v507_v46 = vpop.permute.xlu1 %506 }
  0xc5   : > { %582 = vst.msk [vmem:[#allocation3 + $0xa8] sm:$0xff] %vm560_vm3, %v507_v46  ;;  %v513_v2 = vpop.permute.xlu0 %512 }
  0xc6   : > { %880 = vrot.lane.b32.xlu1 %v5179_v45, %s4797_s27  ;;  %585 = vst.msk [vmem:[#allocation3 + $0xc0] sm:$0xff] %vm560_vm3, %v513_v2 }
  0xc7   : > { %886 = vrot.lane.b32.xlu0 %v5191_v38, %s4797_s27 }
  0xc8   : > { %v511_v10 = vpop.permute.xlu1 %510 }
  0xc9   : > { %584 = vst.msk [vmem:[#allocation3 + $0xb8] sm:$0xff] %vm560_vm3, %v511_v10  ;;  %v517_v49 = vpop.permute.xlu0 %516 }
  0xca   : > { %884 = vrot.lane.b32.xlu1 %v5183_v37, %s4797_s27  ;;  %587 = vst.msk [vmem:[#allocation3 + $0xd0] sm:$0xff] %vm560_vm3, %v517_v49 }
  0xcb   : > { %890 = vrot.lane.b32.xlu0 %v5195_v36, %s4797_s27 }
  0xcc   : > { %v515_v1 = vpop.permute.xlu1 %514 }
  0xcd   : > { %586 = vst.msk [vmem:[#allocation3 + $0xc8] sm:$0xff] %vm560_vm3, %v515_v1  ;;  %v521_v3 = vpop.permute.xlu0 %520 }
  0xce   : > { %888 = vrot.lane.b32.xlu1 %v5193_v35, %s4797_s27  ;;  %589 = vst.msk [vmem:[#allocation3 + $0xe0] sm:$0xff] %vm560_vm3, %v521_v3 }
  0xcf   : > { %894 = vrot.lane.b32.xlu0 %v5213_v28, %s4797_s27 }
  0xd0   : > { %v519_v46 = vpop.permute.xlu1 %518 }
  0xd1   : > { %588 = vst.msk [vmem:[#allocation3 + $0xd8] sm:$0xff] %vm560_vm3, %v519_v46  ;;  %v525_v2 = vpop.permute.xlu0 %524 }
  0xd2   : > { %892 = vrot.lane.b32.xlu1 %v5205_v33, %s4797_s27  ;;  %591 = vst.msk [vmem:[#allocation3 + $0xf0] sm:$0xff] %vm560_vm3, %v525_v2  ;;  %v5518_v2 = vld [vmem:[#allocation2 + $0x180] sm:$0xff] }
  0xd3   : > { %898 = vrot.lane.b32.xlu0 %v5229_v21, %s4797_s27 }
  0xd4   : > { %v523_v10 = vpop.permute.xlu1 %522 }
  0xd5   : > { %590 = vst.msk [vmem:[#allocation3 + $0xe8] sm:$0xff] %vm560_vm3, %v523_v10  ;;  %v658_v49 = vpop.permute.xlu0 %657 }
  0xd6   : > { %896 = vrot.lane.b32.xlu1 %v5215_v29, %s4797_s27  ;;  %754 = vst.msk [vmem:[#allocation3] sm:$0xff] %vm753_vm4, %v658_v49 }
  0xd7   : > { %902 = vrot.lane.b32.xlu0 %v5245_v17, %s4797_s27 }
  0xd8   : > { %v527_v1 = vpop.permute.xlu1 %526 }
  0xd9   : > { %592 = vst.msk [vmem:[#allocation3 + $0xf8] sm:$0xff] %vm560_vm3, %v527_v1  ;;  %v662_v3 = vpop.permute.xlu0 %661 }
  0xda   : > { %900 = vrot.lane.b32.xlu1 %v5231_v22, %s4797_s27  ;;  %756 = vst.msk [vmem:[#allocation3 + $0x10] sm:$0xff] %vm753_vm4, %v662_v3  ;;  %v5528_v3 = vld [vmem:[#allocation2 + $0x188] sm:$0xff] }
  0xdb   : > { %906 = vrot.lane.b32.xlu0 %v5261_v13, %s4797_s27 }
  0xdc   : > { %v660_v46 = vpop.permute.xlu1 %659 }
  0xdd   : > { %755 = vst.msk [vmem:[#allocation3 + $0x8] sm:$0xff] %vm753_vm4, %v660_v46  ;;  %v666_v10 = vpop.permute.xlu0 %665 }
  0xde   : > { %904 = vrot.lane.b32.xlu1 %v5247_v18, %s4797_s27  ;;  %758 = vst.msk [vmem:[#allocation3 + $0x20] sm:$0xff] %vm753_vm4, %v666_v10 }
  0xdf   : > { %910 = vrot.lane.b32.xlu0 %v5518_v2, %s4797_s27 }
  0xe0   : > { %v664_v49 = vpop.permute.xlu1 %663 }
  0xe1   : > { %757 = vst.msk [vmem:[#allocation3 + $0x18] sm:$0xff] %vm753_vm4, %v664_v49  ;;  %v670_v1 = vpop.permute.xlu0 %669 }
  0xe2   : > { %908 = vrot.lane.b32.xlu1 %v5263_v14, %s4797_s27  ;;  %760 = vst.msk [vmem:[#allocation3 + $0x30] sm:$0xff] %vm753_vm4, %v670_v1 }
  0xe3   : > { %1043 = vrot.lane.b32.xlu0 %v5007_v25, %s4798_s28 }
  0xe4   : > { %v668_v46 = vpop.permute.xlu1 %667 }
  0xe5   : > { %759 = vst.msk [vmem:[#allocation3 + $0x28] sm:$0xff] %vm753_vm4, %v668_v46  ;;  %v674_v10 = vpop.permute.xlu0 %673 }
  0xe6   : > { %912 = vrot.lane.b32.xlu1 %v5528_v3, %s4797_s27  ;;  %762 = vst.msk [vmem:[#allocation3 + $0x40] sm:$0xff] %vm753_vm4, %v674_v10 }
  0xe7   : > { %1047 = vrot.lane.b32.xlu0 %v5009_v26, %s4798_s28 }
  0xe8   : > { %v672_v49 = vpop.permute.xlu1 %671 }
  0xe9   : > { %761 = vst.msk [vmem:[#allocation3 + $0x38] sm:$0xff] %vm753_vm4, %v672_v49  ;;  %v678_v1 = vpop.permute.xlu0 %677  ;;  %v7247_v49 = vld [vmem:[#allocation36_spill] sm:$0xff] }
  0xea   : > { %1045 = vrot.lane.b32.xlu1 %v5019_v27, %s4798_s28  ;;  %764 = vst.msk [vmem:[#allocation3 + $0x50] sm:$0xff] %vm753_vm4, %v678_v1  ;;  %v7248_v1 = vld [vmem:[#allocation38_spill] sm:$0xff] }
  0xeb   : > { %1051 = vrot.lane.b32.xlu0 %v5033_v30, %s4798_s28 }
  0xec   : > { %v676_v25 = vpop.permute.xlu1 %675 }
  0xed   : > { %763 = vst.msk [vmem:[#allocation3 + $0x48] sm:$0xff] %vm753_vm4, %v676_v25  ;;  %v682_v46 = vpop.permute.xlu0 %681 }
  0xee   : > { %1049 = vrot.lane.b32.xlu1 %v5037_v31, %s4798_s28  ;;  %766 = vst.msk [vmem:[#allocation3 + $0x60] sm:$0xff] %vm753_vm4, %v682_v46  ;;  %v7249_v46 = vld [vmem:[#allocation39_spill] sm:$0xff] }
  0xef   : > { %1055 = vrot.lane.b32.xlu0 %v5041_v32, %s4798_s28 }
  0xf0   : > { %v680_v26 = vpop.permute.xlu1 %679 }
  0xf1   : > { %765 = vst.msk [vmem:[#allocation3 + $0x58] sm:$0xff] %vm753_vm4, %v680_v26  ;;  %v686_v27 = vpop.permute.xlu0 %685 }
  0xf2   : > { %1053 = vrot.lane.b32.xlu1 %v5069_v39, %s4798_s28  ;;  %768 = vst.msk [vmem:[#allocation3 + $0x70] sm:$0xff] %vm753_vm4, %v686_v27  ;;  %v5628_v27 = vld [vmem:[#allocation2 + $0x189] sm:$0xff] }
  0xf3   : > { %1059 = vrot.lane.b32.xlu0 %v5079_v40, %s4798_s28 }
  0xf4   : > { %v684_v30 = vpop.permute.xlu1 %683 }
  0xf5   : > { %767 = vst.msk [vmem:[#allocation3 + $0x68] sm:$0xff] %vm753_vm4, %v684_v30  ;;  %v690_v31 = vpop.permute.xlu0 %689 }
  0xf6   : > { %1057 = vrot.lane.b32.xlu1 %v5083_v41, %s4798_s28  ;;  %770 = vst.msk [vmem:[#allocation3 + $0x80] sm:$0xff] %vm753_vm4, %v690_v31  ;;  %v7250_v31 = vld [vmem:[#allocation40_spill] sm:$0xff] }
  0xf7   : > { %1063 = vrot.lane.b32.xlu0 %v5087_v42, %s4798_s28 }
  0xf8   : > { %v688_v32 = vpop.permute.xlu1 %687 }
  0xf9   : > { %769 = vst.msk [vmem:[#allocation3 + $0x78] sm:$0xff] %vm753_vm4, %v688_v32  ;;  %v694_v39 = vpop.permute.xlu0 %693 }
  0xfa   : > { %1061 = vrot.lane.b32.xlu1 %v5091_v43, %s4798_s28  ;;  %772 = vst.msk [vmem:[#allocation3 + $0x90] sm:$0xff] %vm753_vm4, %v694_v39 }
  0xfb   : > { %1067 = vrot.lane.b32.xlu0 %v5095_v44, %s4798_s28 }
  0xfc   : > { %v692_v40 = vpop.permute.xlu1 %691 }
  0xfd   : > { %771 = vst.msk [vmem:[#allocation3 + $0x88] sm:$0xff] %vm753_vm4, %v692_v40  ;;  %v698_v41 = vpop.permute.xlu0 %697  ;;  %v7251_v40 = vld [vmem:[#allocation41_spill] sm:$0xff] }
  0xfe   : > { %1065 = vrot.lane.b32.xlu1 %v5101_v47, %s4798_s28  ;;  %774 = vst.msk [vmem:[#allocation3 + $0xa0] sm:$0xff] %vm753_vm4, %v698_v41  ;;  %v7252_v41 = vld [vmem:[#allocation42_spill] sm:$0xff] }
  0xff   : > { %1071 = vrot.lane.b32.xlu0 %v5111_v50, %s4798_s28 }
 0x100   : > { %v696_v42 = vpop.permute.xlu1 %695 }
 0x101   : > { %773 = vst.msk [vmem:[#allocation3 + $0x98] sm:$0xff] %vm753_vm4, %v696_v42  ;;  %v702_v43 = vpop.permute.xlu0 %701 }
 0x102   : > { %1069 = vrot.lane.b32.xlu1 %v5121_v53, %s4798_s28  ;;  %776 = vst.msk [vmem:[#allocation3 + $0xb0] sm:$0xff] %vm753_vm4, %v702_v43 }
 0x103   : > { %1075 = vrot.lane.b32.xlu0 %v5131_v56, %s4798_s28 }
 0x104   : > { %v700_v44 = vpop.permute.xlu1 %699 }
 0x105   : > { %775 = vst.msk [vmem:[#allocation3 + $0xa8] sm:$0xff] %vm753_vm4, %v700_v44  ;;  %v706_v47 = vpop.permute.xlu0 %705  ;;  %v7253_v44 = vld [vmem:[#allocation43_spill] sm:$0xff] }
 0x106   : > { %1073 = vrot.lane.b32.xlu1 %v5157_v63, %s4798_s28  ;;  %778 = vst.msk [vmem:[#allocation3 + $0xc0] sm:$0xff] %vm753_vm4, %v706_v47  ;;  %v7254_v47 = vld [vmem:[#allocation44_spill] sm:$0xff] }
 0x107   : > { %1079 = vrot.lane.b32.xlu0 %v5207_v34, %s4798_s28 }
 0x108   : > { %v704_v50 = vpop.permute.xlu1 %703 }
 0x109   : > { %777 = vst.msk [vmem:[#allocation3 + $0xb8] sm:$0xff] %vm753_vm4, %v704_v50  ;;  %v710_v53 = vpop.permute.xlu0 %709 }
 0x10a   : > { %1077 = vrot.lane.b32.xlu1 %v5217_v23, %s4798_s28  ;;  %780 = vst.msk [vmem:[#allocation3 + $0xd0] sm:$0xff] %vm753_vm4, %v710_v53 }
 0x10b   : > { %1083 = vrot.lane.b32.xlu0 %v5225_v24, %s4798_s28 }
 0x10c   : > { %v708_v56 = vpop.permute.xlu1 %707 }
 0x10d   : > { %779 = vst.msk [vmem:[#allocation3 + $0xc8] sm:$0xff] %vm753_vm4, %v708_v56  ;;  %v714_v63 = vpop.permute.xlu0 %713  ;;  %v7255_v56 = vld [vmem:[#allocation45_spill] sm:$0xff] }
 0x10e   : > { %1081 = vrot.lane.b32.xlu1 %v5233_v19, %s4798_s28  ;;  %782 = vst.msk [vmem:[#allocation3 + $0xe0] sm:$0xff] %vm753_vm4, %v714_v63  ;;  %v7256_v63 = vld [vmem:[#allocation46_spill] sm:$0xff] }
 0x10f   : > { %1087 = vrot.lane.b32.xlu0 %v5241_v20, %s4798_s28 }
 0x110   : > { %v712_v34 = vpop.permute.xlu1 %711 }
 0x111   : > { %781 = vst.msk [vmem:[#allocation3 + $0xd8] sm:$0xff] %vm753_vm4, %v712_v34  ;;  %v718_v23 = vpop.permute.xlu0 %717 }
 0x112   : > { %1085 = vrot.lane.b32.xlu1 %v5249_v15, %s4798_s28  ;;  %784 = vst.msk [vmem:[#allocation3 + $0xf0] sm:$0xff] %vm753_vm4, %v718_v23  ;;  %v7246_v15 = vld [vmem:[#allocation34_spill] sm:$0xff] }
 0x113   : > { %1091 = vrot.lane.b32.xlu0 %v5257_v16, %s4798_s28 }
 0x114   : > { %v716_v24 = vpop.permute.xlu1 %715 }
 0x115   : > { %783 = vst.msk [vmem:[#allocation3 + $0xe8] sm:$0xff] %vm753_vm4, %v716_v24  ;;  %v851_v19 = vpop.permute.xlu0 %850  ;;  %v7257_v24 = vld [vmem:[#allocation47_spill] sm:$0xff] }
 0x116   : > { %1089 = vrot.lane.b32.xlu1 %v5265_v11, %s4798_s28  ;;  %947 = vst.msk [vmem:[#allocation3] sm:$0xff] %vm946_vm5, %v851_v19  ;;  %v5618_v11 = vld [vmem:[#allocation2 + $0x181] sm:$0xff]  ;;  %v7258_v19 = vld [vmem:[#allocation48_spill] sm:$0xff] }
 0x117   : > { %1095 = vrot.lane.b32.xlu0 %v5273_v12, %s4798_s28 }
 0x118   : > { %v720_v20 = vpop.permute.xlu1 %719 }
 0x119   : > { %785 = vst.msk [vmem:[#allocation3 + $0xf8] sm:$0xff] %vm753_vm4, %v720_v20  ;;  %v855_v10 = vpop.permute.xlu0 %854 }
 0x11a   : > { %1093 = vrot.lane.b32.xlu1 %v7246_v15, %s4798_s28  ;;  %949 = vst.msk [vmem:[#allocation3 + $0x10] sm:$0xff] %vm946_vm5, %v855_v10  ;;  %v7259_v10 = vld [vmem:[#allocation49_spill] sm:$0xff] }
 0x11b   : > { %1099 = vrot.lane.b32.xlu0 %v7247_v49, %s4798_s28 }
 0x11c   : > { %v853_v16 = vpop.permute.xlu1 %852 }
 0x11d   : > { %948 = vst.msk [vmem:[#allocation3 + $0x8] sm:$0xff] %vm946_vm5, %v853_v16  ;;  %v859_v12 = vpop.permute.xlu0 %858  ;;  %v7260_v16 = vld [vmem:[#allocation50_spill] sm:$0xff] }
 0x11e   : > { %1097 = vrot.lane.b32.xlu1 %v7248_v1, %s4798_s28  ;;  %951 = vst.msk [vmem:[#allocation3 + $0x20] sm:$0xff] %vm946_vm5, %v859_v12  ;;  %v7261_v12 = vld [vmem:[#allocation51_spill] sm:$0xff] }
 0x11f   : > { %1103 = vrot.lane.b32.xlu0 %v5618_v11, %s4798_s28 }
 0x120   : > { %v857_v25 = vpop.permute.xlu1 %856 }
 0x121   : > { %950 = vst.msk [vmem:[#allocation3 + $0x18] sm:$0xff] %vm946_vm5, %v857_v25  ;;  %v863_v26 = vpop.permute.xlu0 %862  ;;  %v7262_v25 = vld [vmem:[#allocation52_spill] sm:$0xff] }
 0x122   : > { %1101 = vrot.lane.b32.xlu1 %v7249_v46, %s4798_s28  ;;  %953 = vst.msk [vmem:[#allocation3 + $0x30] sm:$0xff] %vm946_vm5, %v863_v26 }
 0x123   : > { %1236 = vrot.lane.b32.xlu0 %v7250_v31, %s4799_s29  ;;  %v7264_v31 = vld [vmem:[#allocation54_spill] sm:$0xff] }
 0x124   : > { %v861_v30 = vpop.permute.xlu1 %860 }
 0x125   : > { %952 = vst.msk [vmem:[#allocation3 + $0x28] sm:$0xff] %vm946_vm5, %v861_v30  ;;  %v867_v32 = vpop.permute.xlu0 %866  ;;  %v7263_v30 = vld [vmem:[#allocation53_spill] sm:$0xff] }
 0x126   : > { %1105 = vrot.lane.b32.xlu1 %v5628_v27, %s4798_s28  ;;  %955 = vst.msk [vmem:[#allocation3 + $0x40] sm:$0xff] %vm946_vm5, %v867_v32 }
 0x127   : > { %1240 = vrot.lane.b32.xlu0 %v7251_v40, %s4799_s29  ;;  %v7265_v40 = vld [vmem:[#allocation55_spill] sm:$0xff] }
 0x128   : > { %v865_v39 = vpop.permute.xlu1 %864 }
 0x129   : > { %954 = vst.msk [vmem:[#allocation3 + $0x38] sm:$0xff] %vm946_vm5, %v865_v39  ;;  %v871_v42 = vpop.permute.xlu0 %870 }
 0x12a   : > { %1238 = vrot.lane.b32.xlu1 %v7252_v41, %s4799_s29  ;;  %957 = vst.msk [vmem:[#allocation3 + $0x50] sm:$0xff] %vm946_vm5, %v871_v42  ;;  %v7266_v41 = vld [vmem:[#allocation56_spill] sm:$0xff] }
 0x12b   : > { %1244 = vrot.lane.b32.xlu0 %v7253_v44, %s4799_s29  ;;  %v7267_v44 = vld [vmem:[#allocation57_spill] sm:$0xff] }
 0x12c   : > { %v869_v43 = vpop.permute.xlu1 %868 }
 0x12d   : > { %956 = vst.msk [vmem:[#allocation3 + $0x48] sm:$0xff] %vm946_vm5, %v869_v43  ;;  %v875_v50 = vpop.permute.xlu0 %874 }
 0x12e   : > { %1242 = vrot.lane.b32.xlu1 %v7254_v47, %s4799_s29  ;;  %959 = vst.msk [vmem:[#allocation3 + $0x60] sm:$0xff] %vm946_vm5, %v875_v50  ;;  %v7268_v47 = vld [vmem:[#allocation58_spill] sm:$0xff] }
 0x12f   : > { %1248 = vrot.lane.b32.xlu0 %v7255_v56, %s4799_s29  ;;  %v7269_v56 = vld [vmem:[#allocation59_spill] sm:$0xff] }
 0x130   : > { %v873_v53 = vpop.permute.xlu1 %872 }
 0x131   : > { %958 = vst.msk [vmem:[#allocation3 + $0x58] sm:$0xff] %vm946_vm5, %v873_v53  ;;  %v879_v34 = vpop.permute.xlu0 %878 }
 0x132   : > { %1246 = vrot.lane.b32.xlu1 %v7256_v63, %s4799_s29  ;;  %961 = vst.msk [vmem:[#allocation3 + $0x70] sm:$0xff] %vm946_vm5, %v879_v34  ;;  %v7270_v63 = vld [vmem:[#allocation60_spill] sm:$0xff] }
 0x133   : > { %1252 = vrot.lane.b32.xlu0 %v7257_v24, %s4799_s29  ;;  %v7271_v24 = vld [vmem:[#allocation61_spill] sm:$0xff] }
 0x134   : > { %v877_v23 = vpop.permute.xlu1 %876 }
 0x135   : > { %960 = vst.msk [vmem:[#allocation3 + $0x68] sm:$0xff] %vm946_vm5, %v877_v23  ;;  %v883_v20 = vpop.permute.xlu0 %882 }
 0x136   : > { %1250 = vrot.lane.b32.xlu1 %v7258_v19, %s4799_s29  ;;  %963 = vst.msk [vmem:[#allocation3 + $0x80] sm:$0xff] %vm946_vm5, %v883_v20  ;;  %v7272_v19 = vld [vmem:[#allocation62_spill] sm:$0xff] }
 0x137   : > { %1256 = vrot.lane.b32.xlu0 %v7259_v10, %s4799_s29  ;;  %v7273_v10 = vld [vmem:[#allocation63_spill] sm:$0xff] }
 0x138   : > { %v881_v15 = vpop.permute.xlu1 %880 }
 0x139   : > { %962 = vst.msk [vmem:[#allocation3 + $0x78] sm:$0xff] %vm946_vm5, %v881_v15  ;;  %v887_v49 = vpop.permute.xlu0 %886 }
 0x13a   : > { %1254 = vrot.lane.b32.xlu1 %v7260_v16, %s4799_s29  ;;  %965 = vst.msk [vmem:[#allocation3 + $0x90] sm:$0xff] %vm946_vm5, %v887_v49  ;;  %v7274_v16 = vld [vmem:[#allocation64_spill] sm:$0xff] }
 0x13b   : > { %1260 = vrot.lane.b32.xlu0 %v7261_v12, %s4799_s29  ;;  %v7275_v12 = vld [vmem:[#allocation65_spill] sm:$0xff] }
 0x13c   : > { %v885_v1 = vpop.permute.xlu1 %884 }
 0x13d   : > { %964 = vst.msk [vmem:[#allocation3 + $0x88] sm:$0xff] %vm946_vm5, %v885_v1  ;;  %v891_v46 = vpop.permute.xlu0 %890 }
 0x13e   : > { %1258 = vrot.lane.b32.xlu1 %v7262_v25, %s4799_s29  ;;  %967 = vst.msk [vmem:[#allocation3 + $0xa0] sm:$0xff] %vm946_vm5, %v891_v46 }
 0x13f   : > { %1264 = vrot.lane.b32.xlu0 %v7263_v30, %s4799_s29 }
 0x140   : > { %v889_v26 = vpop.permute.xlu1 %888 }
 0x141   : > { %966 = vst.msk [vmem:[#allocation3 + $0x98] sm:$0xff] %vm946_vm5, %v889_v26  ;;  %v895_v32 = vpop.permute.xlu0 %894  ;;  %v5718_v26 = vld [vmem:[#allocation2 + $0x182] sm:$0xff] }
 0x142   : > { %1262 = vrot.lane.b32.xlu1 %v7264_v31, %s4799_s29  ;;  %969 = vst.msk [vmem:[#allocation3 + $0xb0] sm:$0xff] %vm946_vm5, %v895_v32  ;;  %v5728_v31 = vld [vmem:[#allocation2 + $0x18a] sm:$0xff] }
 0x143   : > { %1268 = vrot.lane.b32.xlu0 %v7265_v40, %s4799_s29 }
 0x144   : > { %v893_v39 = vpop.permute.xlu1 %892 }
 0x145   : > { %968 = vst.msk [vmem:[#allocation3 + $0xa8] sm:$0xff] %vm946_vm5, %v893_v39  ;;  %v899_v42 = vpop.permute.xlu0 %898 }
 0x146   : > { %1266 = vrot.lane.b32.xlu1 %v7266_v41, %s4799_s29  ;;  %971 = vst.msk [vmem:[#allocation3 + $0xc0] sm:$0xff] %vm946_vm5, %v899_v42 }
 0x147   : > { %1272 = vrot.lane.b32.xlu0 %v7267_v44, %s4799_s29 }
 0x148   : > { %v897_v43 = vpop.permute.xlu1 %896 }
 0x149   : > { %970 = vst.msk [vmem:[#allocation3 + $0xb8] sm:$0xff] %vm946_vm5, %v897_v43  ;;  %v903_v50 = vpop.permute.xlu0 %902 }
 0x14a   : > { %1270 = vrot.lane.b32.xlu1 %v7268_v47, %s4799_s29  ;;  %973 = vst.msk [vmem:[#allocation3 + $0xd0] sm:$0xff] %vm946_vm5, %v903_v50  ;;  %v1560_v47 = vld [vmem:[#allocation2 + $0x39] sm:$0xff] }
 0x14b   : > { %1276 = vrot.lane.b32.xlu0 %v7269_v56, %s4799_s29  ;;  %v1562_v56 = vld [vmem:[#allocation2 + $0x51] sm:$0xff] }
 0x14c   : > { %v901_v53 = vpop.permute.xlu1 %900 }
 0x14d   : > { %972 = vst.msk [vmem:[#allocation3 + $0xc8] sm:$0xff] %vm946_vm5, %v901_v53  ;;  %v907_v34 = vpop.permute.xlu0 %906 }
 0x14e   : > { %1274 = vrot.lane.b32.xlu1 %v7270_v63, %s4799_s29  ;;  %975 = vst.msk [vmem:[#allocation3 + $0xe0] sm:$0xff] %vm946_vm5, %v907_v34  ;;  %v1565_v34 = vld [vmem:[#allocation2 + $0x79] sm:$0xff] }
 0x14f   : > { %1280 = vrot.lane.b32.xlu0 %v7271_v24, %s4799_s29  ;;  %v1564_v24 = vld [vmem:[#allocation2 + $0x69] sm:$0xff] }
 0x150   : > { %v905_v23 = vpop.permute.xlu1 %904 }
 0x151   : > { %974 = vst.msk [vmem:[#allocation3 + $0xd8] sm:$0xff] %vm946_vm5, %v905_v23  ;;  %v911_v20 = vpop.permute.xlu0 %910 }
 0x152   : > { %1278 = vrot.lane.b32.xlu1 %v7272_v19, %s4799_s29  ;;  %977 = vst.msk [vmem:[#allocation3 + $0xf0] sm:$0xff] %vm946_vm5, %v911_v20  ;;  %v1567_v20 = vld [vmem:[#allocation2 + $0x91] sm:$0xff] }
 0x153   : > { %1284 = vrot.lane.b32.xlu0 %v7273_v10, %s4799_s29  ;;  %v1566_v10 = vld [vmem:[#allocation2 + $0x81] sm:$0xff] }
 0x154   : > { %v909_v15 = vpop.permute.xlu1 %908 }
 0x155   : > { %976 = vst.msk [vmem:[#allocation3 + $0xe8] sm:$0xff] %vm946_vm5, %v909_v15  ;;  %v1044_v49 = vpop.permute.xlu0 %1043 }
 0x156   : > { %1282 = vrot.lane.b32.xlu1 %v7274_v16, %s4799_s29  ;;  %1140 = vst.msk [vmem:[#allocation3] sm:$0xff] %vm1139_vm6, %v1044_v49  ;;  %v1569_v49 = vld [vmem:[#allocation2 + $0xa9] sm:$0xff] }
 0x157   : > { %1288 = vrot.lane.b32.xlu0 %v5406_v5, %s4799_s29 }
 0x158   : > { %v913_v1 = vpop.permute.xlu1 %912 }
 0x159   : > { %978 = vst.msk [vmem:[#allocation3 + $0xf8] sm:$0xff] %vm946_vm5, %v913_v1  ;;  %v1048_v25 = vpop.permute.xlu0 %1047 }
 0x15a   : > { %1286 = vrot.lane.b32.xlu1 %v7275_v12, %s4799_s29  ;;  %1142 = vst.msk [vmem:[#allocation3 + $0x10] sm:$0xff] %vm1139_vm6, %v1048_v25  ;;  %v1568_v12 = vld [vmem:[#allocation2 + $0x99] sm:$0xff] }
 0x15b   : > { %1292 = vrot.lane.b32.xlu0 %v5416_v6, %s4799_s29 }
 0x15c   : > { %v1046_v46 = vpop.permute.xlu1 %1045 }
 0x15d   : > { %1141 = vst.msk [vmem:[#allocation3 + $0x8] sm:$0xff] %vm1139_vm6, %v1046_v46  ;;  %v1052_v5 = vpop.permute.xlu0 %1051  ;;  %v1571_v46 = vld [vmem:[#allocation2 + $0xc1] sm:$0xff] }
 0x15e   : > { %1290 = vrot.lane.b32.xlu1 %v5420_v4, %s4799_s29  ;;  %1144 = vst.msk [vmem:[#allocation3 + $0x20] sm:$0xff] %vm1139_vm6, %v1052_v5  ;;  %v1981_v5 = vld [vmem:[%s7116_s1 + $0x20] sm:$0xf] }
 0x15f   : > { %1296 = vrot.lane.b32.xlu0 %v5718_v26, %s4799_s29  ;;  %4653 = vmatprep.subr.msk.mxu0 %vm2086_vm8, %v1981_v5 }
 0x160   : > { %v1050_v30 = vpop.permute.xlu1 %1049  ;;  %4654 = vmatpush3.msk.msra.mxu0 %vm2086_vm8, %v1981_v5  ;;  %v1579_v5 = vld [vmem:[#allocation2 + $0x121] sm:$0xff] }
 0x161   : > { %1143 = vst.msk [vmem:[#allocation3 + $0x18] sm:$0xff] %vm1139_vm6, %v1050_v30  ;;  %v1056_v6 = vpop.permute.xlu0 %1055 }
 0x162   : > { %1294 = vrot.lane.b32.xlu1 %v5428_v9, %s4799_s29  ;;  %1146 = vst.msk [vmem:[#allocation3 + $0x30] sm:$0xff] %vm1139_vm6, %v1056_v6  ;;  %v1570_v6 = vld [vmem:[#allocation2 + $0xb1] sm:$0xff] }
 0x163   : > { %1430 = vrot.lane.b32.xlu0 %v5115_v51, %s4800_s30 }
 0x164   : > { %v1054_v32 = vpop.permute.xlu1 %1053 }
 0x165   : > { %1145 = vst.msk [vmem:[#allocation3 + $0x28] sm:$0xff] %vm1139_vm6, %v1054_v32  ;;  %v1060_v4 = vpop.permute.xlu0 %1059 }
 0x166   : > { %1298 = vrot.lane.b32.xlu1 %v5728_v31, %s4799_s29  ;;  %1148 = vst.msk [vmem:[#allocation3 + $0x40] sm:$0xff] %vm1139_vm6, %v1060_v4  ;;  %v1980_v4 = vld [vmem:[%s7116_s1 + $0x18] sm:$0xff] }
 0x167   : > { %1434 = vrot.lane.b32.xlu0 %v5127_v54, %s4800_s30  ;;  %4655 = vmatprep.subr.mxu0 %v1980_v4 }
 0x168   : > { %v1058_v39 = vpop.permute.xlu1 %1057  ;;  %4656 = vmatpush3.msra.mxu0 %v1980_v4  ;;  %v1772_v4 = vld [vmem:[#allocation2 + $0x122] sm:$0xff] }
 0x169   : > { %1147 = vst.msk [vmem:[#allocation3 + $0x38] sm:$0xff] %vm1139_vm6, %v1058_v39  ;;  %v1064_v9 = vpop.permute.xlu0 %1063  ;;  %v1573_v39 = vld [vmem:[#allocation2 + $0xd9] sm:$0xff] }
 0x16a   : > { %1432 = vrot.lane.b32.xlu1 %v5117_v52, %s4800_s30  ;;  %1150 = vst.msk [vmem:[#allocation3 + $0x50] sm:$0xff] %vm1139_vm6, %v1064_v9  ;;  %v1979_v9 = vld [vmem:[%s7116_s1 + $0x10] sm:$0xff] }
 0x16b   : > { %1438 = vrot.lane.b32.xlu0 %v5137_v57, %s4800_s30  ;;  %4657 = vmatprep.subr.mxu0 %v1979_v9 }
 0x16c   : > { %v1062_v51 = vpop.permute.xlu1 %1061  ;;  %4658 = vmatpush3.msra.mxu0 %v1979_v9  ;;  %v1580_v9 = vld [vmem:[#allocation2 + $0x129] sm:$0xff] }
 0x16d   : > { %1149 = vst.msk [vmem:[#allocation3 + $0x48] sm:$0xff] %vm1139_vm6, %v1062_v51  ;;  %v1068_v40 = vpop.permute.xlu0 %1067 }
 0x16e   : > { %1436 = vrot.lane.b32.xlu1 %v5129_v55, %s4800_s30  ;;  %1152 = vst.msk [vmem:[#allocation3 + $0x60] sm:$0xff] %vm1139_vm6, %v1068_v40  ;;  %v1572_v40 = vld [vmem:[#allocation2 + $0xc9] sm:$0xff] }
 0x16f   : > { %1442 = vrot.lane.b32.xlu0 %v5141_v59, %s4800_s30 }
 0x170   : > { %v1066_v54 = vpop.permute.xlu1 %1065 }
 0x171   : > { %1151 = vst.msk [vmem:[#allocation3 + $0x58] sm:$0xff] %vm1139_vm6, %v1066_v54  ;;  %v1072_v52 = vpop.permute.xlu0 %1071 }
 0x172   : > { %1440 = vrot.lane.b32.xlu1 %v5139_v58, %s4800_s30  ;;  %1154 = vst.msk [vmem:[#allocation3 + $0x70] sm:$0xff] %vm1139_vm6, %v1072_v52  ;;  %v1978_v52 = vld [vmem:[%s7116_s1 + $0x8] sm:$0xff] }
 0x173   : > { %1446 = vrot.lane.b32.xlu0 %v5153_v61, %s4800_s30  ;;  %4659 = vmatprep.subr.mxu0 %v1978_v52 }
 0x174   : > { %v1070_v57 = vpop.permute.xlu1 %1069  ;;  %4660 = vmatpush3.msra.mxu0 %v1978_v52  ;;  %v1773_v52 = vld [vmem:[#allocation2 + $0x12a] sm:$0xff] }
 0x175   : > { %1153 = vst.msk [vmem:[#allocation3 + $0x68] sm:$0xff] %vm1139_vm6, %v1070_v57  ;;  %v1076_v55 = vpop.permute.xlu0 %1075  ;;  %v1752_v57 = vld [vmem:[#allocation2 + $0x32] sm:$0xff] }
 0x176   : > { %1444 = vrot.lane.b32.xlu1 %v5151_v60, %s4800_s30  ;;  %1156 = vst.msk [vmem:[#allocation3 + $0x80] sm:$0xff] %vm1139_vm6, %v1076_v55  ;;  %v1977_v55 = vld [vmem:[%s7116_s1] sm:$0xff] }
 0x177   : > { %1450 = vrot.lane.b32.xlu0 %v5165_v0, %s4800_s30  ;;  %4661 = vmatprep.subr.mxu0 %v1977_v55 }
 0x178   : > { %v1074_v59 = vpop.permute.xlu1 %1073  ;;  %4662 = vmatpush3.msra.mxu0 %v1977_v55  ;;  %v1774_v55 = vld [vmem:[#allocation2 + $0x13a] sm:$0xff] }
 0x179   : > { %1155 = vst.msk [vmem:[#allocation3 + $0x78] sm:$0xff] %vm1139_vm6, %v1074_v59  ;;  %v1080_v58 = vpop.permute.xlu0 %1079 }
 0x17a   : > { %1448 = vrot.lane.b32.xlu1 %v5155_v62, %s4800_s30  ;;  %1158 = vst.msk [vmem:[#allocation3 + $0x90] sm:$0xff] %vm1139_vm6, %v1080_v58  ;;  %v1574_v58 = vld [vmem:[#allocation2 + $0xe1] sm:$0xff] }
 0x17b   : > { %1454 = vrot.lane.b32.xlu0 %v5169_v8, %s4800_s30 }
 0x17c   : > { %v1078_v61 = vpop.permute.xlu1 %1077 }
 0x17d   : > { %1157 = vst.msk [vmem:[#allocation3 + $0x88] sm:$0xff] %vm1139_vm6, %v1078_v61  ;;  %v1084_v60 = vpop.permute.xlu0 %1083 }
 0x17e   : > { %1452 = vrot.lane.b32.xlu1 %v5167_v7, %s4800_s30  ;;  %1160 = vst.msk [vmem:[#allocation3 + $0xa0] sm:$0xff] %vm1139_vm6, %v1084_v60  ;;  %v1754_v60 = vld [vmem:[#allocation2 + $0x4a] sm:$0xff] }
 0x17f   : > { %1458 = vrot.lane.b32.xlu0 %v5181_v48, %s4800_s30 }
 0x180   : > { %v1082_v0 = vpop.permute.xlu1 %1081 }
 0x181   : > { %1159 = vst.msk [vmem:[#allocation3 + $0x98] sm:$0xff] %vm1139_vm6, %v1082_v0  ;;  %v1088_v62 = vpop.permute.xlu0 %1087 }
 0x182   : > { %1456 = vrot.lane.b32.xlu1 %v5179_v45, %s4800_s30  ;;  %1162 = vst.msk [vmem:[#allocation3 + $0xb0] sm:$0xff] %vm1139_vm6, %v1088_v62  ;;  %v1753_v62 = vld [vmem:[#allocation2 + $0x3a] sm:$0xff] }
 0x183   : > { %1462 = vrot.lane.b32.xlu0 %v5191_v38, %s4800_s30 }
 0x184   : > { %v1086_v8 = vpop.permute.xlu1 %1085 }
 0x185   : > { %1161 = vst.msk [vmem:[#allocation3 + $0xa8] sm:$0xff] %vm1139_vm6, %v1086_v8  ;;  %v1092_v7 = vpop.permute.xlu0 %1091 }
 0x186   : > { %1460 = vrot.lane.b32.xlu1 %v5183_v37, %s4800_s30  ;;  %1164 = vst.msk [vmem:[#allocation3 + $0xc0] sm:$0xff] %vm1139_vm6, %v1092_v7  ;;  %v1756_v7 = vld [vmem:[#allocation2 + $0x62] sm:$0xff] }
 0x187   : > { %1466 = vrot.lane.b32.xlu0 %v5195_v36, %s4800_s30 }
 0x188   : > { %v1090_v48 = vpop.permute.xlu1 %1089 }
 0x189   : > { %1163 = vst.msk [vmem:[#allocation3 + $0xb8] sm:$0xff] %vm1139_vm6, %v1090_v48  ;;  %v1096_v45 = vpop.permute.xlu0 %1095 }
 0x18a   : > { %1464 = vrot.lane.b32.xlu1 %v5193_v35, %s4800_s30  ;;  %1166 = vst.msk [vmem:[#allocation3 + $0xd0] sm:$0xff] %vm1139_vm6, %v1096_v45  ;;  %v1755_v45 = vld [vmem:[#allocation2 + $0x52] sm:$0xff] }
 0x18b   : > { %1470 = vrot.lane.b32.xlu0 %v5213_v28, %s4800_s30 }
 0x18c   : > { %v1094_v38 = vpop.permute.xlu1 %1093 }
 0x18d   : > { %1165 = vst.msk [vmem:[#allocation3 + $0xc8] sm:$0xff] %vm1139_vm6, %v1094_v38  ;;  %v1100_v37 = vpop.permute.xlu0 %1099 }
 0x18e   : > { %1468 = vrot.lane.b32.xlu1 %v5205_v33, %s4800_s30  ;;  %1168 = vst.msk [vmem:[#allocation3 + $0xe0] sm:$0xff] %vm1139_vm6, %v1100_v37  ;;  %v1758_v37 = vld [vmem:[#allocation2 + $0x7a] sm:$0xff] }
 0x18f   : > { %1474 = vrot.lane.b32.xlu0 %v5229_v21, %s4800_s30 }
 0x190   : > { %v1098_v36 = vpop.permute.xlu1 %1097 }
 0x191   : > { %1167 = vst.msk [vmem:[#allocation3 + $0xd8] sm:$0xff] %vm1139_vm6, %v1098_v36  ;;  %v1104_v35 = vpop.permute.xlu0 %1103 }
 0x192   : > { %1472 = vrot.lane.b32.xlu1 %v5215_v29, %s4800_s30  ;;  %1170 = vst.msk [vmem:[#allocation3 + $0xf0] sm:$0xff] %vm1139_vm6, %v1104_v35  ;;  %v1757_v35 = vld [vmem:[#allocation2 + $0x6a] sm:$0xff] }
 0x193   : > { %1478 = vrot.lane.b32.xlu0 %v5245_v17, %s4800_s30 }
 0x194   : > { %v1102_v28 = vpop.permute.xlu1 %1101 }
 0x195   : > { %1169 = vst.msk [vmem:[#allocation3 + $0xe8] sm:$0xff] %vm1139_vm6, %v1102_v28  ;;  %v1237_v33 = vpop.permute.xlu0 %1236 }
 0x196   : > { %1476 = vrot.lane.b32.xlu1 %v5231_v22, %s4800_s30  ;;  %1333 = vst.msk [vmem:[#allocation3] sm:$0xff] %vm1332_vm7, %v1237_v33  ;;  %v1396_v22 = vld [vmem:[#allocation2 + $0x198] sm:$0xff] }
 0x197   : > { %1482 = vrot.lane.b32.xlu0 %v5261_v13, %s4800_s30  ;;  %v1760_v33 = vld [vmem:[#allocation2 + $0x92] sm:$0xff] }
 0x198   : > { %v1106_v21 = vpop.permute.xlu1 %1105 }
 0x199   : > { %1171 = vst.msk [vmem:[#allocation3 + $0xf8] sm:$0xff] %vm1139_vm6, %v1106_v21  ;;  %v1241_v29 = vpop.permute.xlu0 %1240 }
 0x19a   : > { %1480 = vrot.lane.b32.xlu1 %v5247_v18, %s4800_s30  ;;  %1335 = vst.msk [vmem:[#allocation3 + $0x10] sm:$0xff] %vm1332_vm7, %v1241_v29  ;;  %v1559_v18 = vld [vmem:[#allocation2 + $0x31] sm:$0xff]  ;;  %v1759_v29 = vld [vmem:[#allocation2 + $0x82] sm:$0xff] }
 0x19b   : > { %1486 = vrot.lane.b32.xlu0 %v5518_v2, %s4800_s30  ;;  %v1397_v2 = vld [vmem:[#allocation2 + $0x1a0] sm:$0xff] }
 0x19c   : > { %v1239_v17 = vpop.permute.xlu1 %1238 }
 0x19d   : > { %1334 = vst.msk [vmem:[#allocation3 + $0x8] sm:$0xff] %vm1332_vm7, %v1239_v17  ;;  %v1245_v41 = vpop.permute.xlu0 %1244 }
 0x19e   : > { %1484 = vrot.lane.b32.xlu1 %v5263_v14, %s4800_s30  ;;  %1337 = vst.msk [vmem:[#allocation3 + $0x20] sm:$0xff] %vm1332_vm7, %v1245_v41  ;;  %v1561_v14 = vld [vmem:[#allocation2 + $0x49] sm:$0xff] }
 0x19f   : > { %1490 = vrot.lane.b32.xlu0 %v1396_v22, %s4800_s30  ;;  %v1762_v22 = vld [vmem:[#allocation2 + $0xaa] sm:$0xff] }
 0x1a0   : > { %v1243_v13 = vpop.permute.xlu1 %1242 }
 0x1a1   : > { %1336 = vst.msk [vmem:[#allocation3 + $0x18] sm:$0xff] %vm1332_vm7, %v1243_v13  ;;  %v1249_v42 = vpop.permute.xlu0 %1248  ;;  %v1761_v13 = vld [vmem:[#allocation2 + $0x9a] sm:$0xff] }
 0x1a2   : > { %1488 = vrot.lane.b32.xlu1 %v5528_v3, %s4800_s30  ;;  %1339 = vst.msk [vmem:[#allocation3 + $0x30] sm:$0xff] %vm1332_vm7, %v1249_v42  ;;  %v1563_v3 = vld [vmem:[#allocation2 + $0x61] sm:$0xff] }
 0x1a3   : > { %1623 = vrot.lane.b32.xlu0 %v1559_v18, %s4801_s6  ;;  %v1764_v42 = vld [vmem:[#allocation2 + $0xc2] sm:$0xff] }
 0x1a4   : > { %v1247_v43 = vpop.permute.xlu1 %1246 }
 0x1a5   : > { %1338 = vst.msk [vmem:[#allocation3 + $0x28] sm:$0xff] %vm1332_vm7, %v1247_v43  ;;  %v1253_v44 = vpop.permute.xlu0 %1252  ;;  %v1763_v43 = vld [vmem:[#allocation2 + $0xb2] sm:$0xff] }
 0x1a6   : > { %1492 = vrot.lane.b32.xlu1 %v1397_v2, %s4800_s30  ;;  %1341 = vst.msk [vmem:[#allocation3 + $0x40] sm:$0xff] %vm1332_vm7, %v1253_v44  ;;  %v1766_v44 = vld [vmem:[#allocation2 + $0xda] sm:$0xff] }
 0x1a7   : > { %1627 = vrot.lane.b32.xlu0 %v1561_v14, %s4801_s6 }
 0x1a8   : > { %v1251_v50 = vpop.permute.xlu1 %1250 }
 0x1a9   : > { %1340 = vst.msk [vmem:[#allocation3 + $0x38] sm:$0xff] %vm1332_vm7, %v1251_v50  ;;  %v1257_v53 = vpop.permute.xlu0 %1256  ;;  %v1765_v50 = vld [vmem:[#allocation2 + $0xca] sm:$0xff] }
 0x1aa   : > { %1625 = vrot.lane.b32.xlu1 %v1560_v47, %s4801_s6  ;;  %1343 = vst.msk [vmem:[#allocation3 + $0x50] sm:$0xff] %vm1332_vm7, %v1257_v53  ;;  %v1575_v53 = vld [vmem:[#allocation2 + $0xf1] sm:$0xff] }
 0x1ab   : > { %1631 = vrot.lane.b32.xlu0 %v1563_v3, %s4801_s6 }
 0x1ac   : > { %v1255_v63 = vpop.permute.xlu1 %1254 }
 0x1ad   : > { %1342 = vst.msk [vmem:[#allocation3 + $0x48] sm:$0xff] %vm1332_vm7, %v1255_v63  ;;  %v1261_v23 = vpop.permute.xlu0 %1260  ;;  %v1767_v63 = vld [vmem:[#allocation2 + $0xe2] sm:$0xff] }
 0x1ae   : > { %1629 = vrot.lane.b32.xlu1 %v1562_v56, %s4801_s6  ;;  %1345 = vst.msk [vmem:[#allocation3 + $0x60] sm:$0xff] %vm1332_vm7, %v1261_v23  ;;  %v1768_v23 = vld [vmem:[#allocation2 + $0xf2] sm:$0xff] }
 0x1af   : > { %1635 = vrot.lane.b32.xlu0 %v1565_v34, %s4801_s6 }
 0x1b0   : > { %v1259_v19 = vpop.permute.xlu1 %1258 }
 0x1b1   : > { %1344 = vst.msk [vmem:[#allocation3 + $0x58] sm:$0xff] %vm1332_vm7, %v1259_v19  ;;  %v1265_v15 = vpop.permute.xlu0 %1264  ;;  %v1576_v19 = vld [vmem:[#allocation2 + $0xf9] sm:$0xff] }
 0x1b2   : > { %1633 = vrot.lane.b32.xlu1 %v1564_v24, %s4801_s6  ;;  %1347 = vst.msk [vmem:[#allocation3 + $0x70] sm:$0xff] %vm1332_vm7, %v1265_v15  ;;  %v1577_v15 = vld [vmem:[#allocation2 + $0x109] sm:$0xff] }
 0x1b3   : > { %1639 = vrot.lane.b32.xlu0 %v1567_v20, %s4801_s6 }
 0x1b4   : > { %v1263_v16 = vpop.permute.xlu1 %1262 }
 0x1b5   : > { %1346 = vst.msk [vmem:[#allocation3 + $0x68] sm:$0xff] %vm1332_vm7, %v1263_v16  ;;  %v1269_v1 = vpop.permute.xlu0 %1268  ;;  %v1769_v16 = vld [vmem:[#allocation2 + $0xfa] sm:$0xff] }
 0x1b6   : > { %1637 = vrot.lane.b32.xlu1 %v1566_v10, %s4801_s6  ;;  %1349 = vst.msk [vmem:[#allocation3 + $0x80] sm:$0xff] %vm1332_vm7, %v1269_v1  ;;  %v1770_v1 = vld [vmem:[#allocation2 + $0x10a] sm:$0xff] }
 0x1b7   : > { %1643 = vrot.lane.b32.xlu0 %v1569_v49, %s4801_s6 }
 0x1b8   : > { %v1267_v25 = vpop.permute.xlu1 %1266 }
 0x1b9   : > { %1348 = vst.msk [vmem:[#allocation3 + $0x78] sm:$0xff] %vm1332_vm7, %v1267_v25  ;;  %v1273_v30 = vpop.permute.xlu0 %1272  ;;  %v1578_v25 = vld [vmem:[#allocation2 + $0x111] sm:$0xff] }
 0x1ba   : > { %1641 = vrot.lane.b32.xlu1 %v1568_v12, %s4801_s6  ;;  %1351 = vst.msk [vmem:[#allocation3 + $0x90] sm:$0xff] %vm1332_vm7, %v1273_v30 }
 0x1bb   : > { %1647 = vrot.lane.b32.xlu0 %v1571_v46, %s4801_s6 }
 0x1bc   : > { %v1271_v32 = vpop.permute.xlu1 %1270 }
 0x1bd   : > { %1350 = vst.msk [vmem:[#allocation3 + $0x88] sm:$0xff] %vm1332_vm7, %v1271_v32  ;;  %v1277_v51 = vpop.permute.xlu0 %1276 }
 0x1be   : > { %1645 = vrot.lane.b32.xlu1 %v1570_v6, %s4801_s6  ;;  %1353 = vst.msk [vmem:[#allocation3 + $0xa0] sm:$0xff] %vm1332_vm7, %v1277_v51  ;;  %v1771_v6 = vld [vmem:[#allocation2 + $0x112] sm:$0xff] }
 0x1bf   : > { %1651 = vrot.lane.b32.xlu0 %v1573_v39, %s4801_s6 }
 0x1c0   : > { %v1275_v54 = vpop.permute.xlu1 %1274 }
 0x1c1   : > { %1352 = vst.msk [vmem:[#allocation3 + $0x98] sm:$0xff] %vm1332_vm7, %v1275_v54  ;;  %v1281_v59 = vpop.permute.xlu0 %1280 }
 0x1c2   : > { %1649 = vrot.lane.b32.xlu1 %v1572_v40, %s4801_s6  ;;  %1355 = vst.msk [vmem:[#allocation3 + $0xb0] sm:$0xff] %vm1332_vm7, %v1281_v59  ;;  %v1581_v40 = vld [vmem:[#allocation2 + $0x139] sm:$0xff] }
 0x1c3   : > { %1816 = vrot.lane.b32.xlu0 %v1752_v57, %s4802_s17 }
 0x1c4   : > { %v1279_v61 = vpop.permute.xlu1 %1278 }
 0x1c5   : > { %1354 = vst.msk [vmem:[#allocation3 + $0xa8] sm:$0xff] %vm1332_vm7, %v1279_v61  ;;  %v1285_v0 = vpop.permute.xlu0 %1284 }
 0x1c6   : > { %1653 = vrot.lane.b32.xlu1 %v1574_v58, %s4801_s6  ;;  %1357 = vst.msk [vmem:[#allocation3 + $0xc0] sm:$0xff] %vm1332_vm7, %v1285_v0  ;;  %v1582_v58 = vld [vmem:[#allocation2 + $0x141] sm:$0xff] }
 0x1c7   : > { %1820 = vrot.lane.b32.xlu0 %v1754_v60, %s4802_s17  ;;  %v1583_v60 = vld [vmem:[#allocation2 + $0x151] sm:$0xff] }
 0x1c8   : > { %v1283_v8 = vpop.permute.xlu1 %1282 }
 0x1c9   : > { %1356 = vst.msk [vmem:[#allocation3 + $0xb8] sm:$0xff] %vm1332_vm7, %v1283_v8  ;;  %v1289_v48 = vpop.permute.xlu0 %1288 }
 0x1ca   : > { %1818 = vrot.lane.b32.xlu1 %v1753_v62, %s4802_s17  ;;  %1359 = vst.msk [vmem:[#allocation3 + $0xd0] sm:$0xff] %vm1332_vm7, %v1289_v48  ;;  %v1775_v62 = vld [vmem:[#allocation2 + $0x142] sm:$0xff] }
 0x1cb   : > { %1824 = vrot.lane.b32.xlu0 %v1756_v7, %s4802_s17  ;;  %v1776_v7 = vld [vmem:[#allocation2 + $0x152] sm:$0xff] }
 0x1cc   : > { %v1287_v38 = vpop.permute.xlu1 %1286 }
 0x1cd   : > { %1358 = vst.msk [vmem:[#allocation3 + $0xc8] sm:$0xff] %vm1332_vm7, %v1287_v38  ;;  %v1293_v36 = vpop.permute.xlu0 %1292 }
 0x1ce   : > { %1822 = vrot.lane.b32.xlu1 %v1755_v45, %s4802_s17  ;;  %1361 = vst.msk [vmem:[#allocation3 + $0xe0] sm:$0xff] %vm1332_vm7, %v1293_v36  ;;  %v1584_v45 = vld [vmem:[#allocation2 + $0x159] sm:$0xff] }
 0x1cf   : > { %1828 = vrot.lane.b32.xlu0 %v1758_v37, %s4802_s17  ;;  %v1585_v37 = vld [vmem:[#allocation2 + $0x169] sm:$0xff] }
 0x1d0   : > { %v1291_v28 = vpop.permute.xlu1 %1290 }
 0x1d1   : > { %1360 = vst.msk [vmem:[#allocation3 + $0xd8] sm:$0xff] %vm1332_vm7, %v1291_v28  ;;  %v1297_v21 = vpop.permute.xlu0 %1296 }
 0x1d2   : > { %1826 = vrot.lane.b32.xlu1 %v1757_v35, %s4802_s17  ;;  %1363 = vst.msk [vmem:[#allocation3 + $0xf0] sm:$0xff] %vm1332_vm7, %v1297_v21  ;;  %v1777_v35 = vld [vmem:[#allocation2 + $0x15a] sm:$0xff] }
 0x1d3   : > { %1832 = vrot.lane.b32.xlu0 %v1760_v33, %s4802_s17  ;;  %v1778_v33 = vld [vmem:[#allocation2 + $0x16a] sm:$0xff] }
 0x1d4   : > { %v1295_v17 = vpop.permute.xlu1 %1294 }
 0x1d5   : > { %1362 = vst.msk [vmem:[#allocation3 + $0xe8] sm:$0xff] %vm1332_vm7, %v1295_v17  ;;  %v1431_v41 = vpop.permute.xlu0 %1430 }
 0x1d6   : > { %1830 = vrot.lane.b32.xlu1 %v1759_v29, %s4802_s17  ;;  %1527 = vst.msk [vmem:[#allocation3] sm:$0xff] %vm1526_vm9, %v1431_v41  ;;  %v1586_v29 = vld [vmem:[#allocation2 + $0x171] sm:$0xff] }
 0x1d7   : > { %1836 = vrot.lane.b32.xlu0 %v1762_v22, %s4802_s17  ;;  %v1779_v41 = vld [vmem:[#allocation2 + $0x172] sm:$0xff] }
 0x1d8   : > { %v1299_v18 = vpop.permute.xlu1 %1298 }
 0x1d9   : > { %1364 = vst.msk [vmem:[#allocation3 + $0xf8] sm:$0xff] %vm1332_vm7, %v1299_v18  ;;  %v1435_v2 = vpop.permute.xlu0 %1434 }
 0x1da   : > { %1834 = vrot.lane.b32.xlu1 %v1761_v13, %s4802_s17  ;;  %1529 = vst.msk [vmem:[#allocation3 + $0x10] sm:$0xff] %vm1526_vm9, %v1435_v2  ;;  %v1589_v2 = vld [vmem:[#allocation2 + $0x199] sm:$0xff] }
 0x1db   : > { %1840 = vrot.lane.b32.xlu0 %v1764_v42, %s4802_s17 }
 0x1dc   : > { %v1433_v14 = vpop.permute.xlu1 %1432 }
 0x1dd   : > { %1528 = vst.msk [vmem:[#allocation3 + $0x8] sm:$0xff] %vm1526_vm9, %v1433_v14  ;;  %v1439_v47 = vpop.permute.xlu0 %1438  ;;  %v1782_v14 = vld [vmem:[#allocation2 + $0x19a] sm:$0xff] }
 0x1de   : > { %1838 = vrot.lane.b32.xlu1 %v1763_v43, %s4802_s17  ;;  %1531 = vst.msk [vmem:[#allocation3 + $0x20] sm:$0xff] %vm1526_vm9, %v1439_v47 }
 0x1df   : > { %1844 = vrot.lane.b32.xlu0 %v1766_v44, %s4802_s17 }
 0x1e0   : > { %v1437_v3 = vpop.permute.xlu1 %1436 }
 0x1e1   : > { %1530 = vst.msk [vmem:[#allocation3 + $0x18] sm:$0xff] %vm1526_vm9, %v1437_v3  ;;  %v1443_v56 = vpop.permute.xlu0 %1442 }
 0x1e2   : > { %1842 = vrot.lane.b32.xlu1 %v1765_v50, %s4802_s17  ;;  %1533 = vst.msk [vmem:[#allocation3 + $0x30] sm:$0xff] %vm1526_vm9, %v1443_v56  ;;  %v1783_v50 = vld [vmem:[#allocation2 + $0x1a2] sm:$0xff] }
 0x1e3   : > { %1655 = vrot.lane.b32.xlu0 %v1575_v53, %s4801_s6 }
 0x1e4   : > { %v1441_v34 = vpop.permute.xlu1 %1440 }
 0x1e5   : > { %1532 = vst.msk [vmem:[#allocation3 + $0x28] sm:$0xff] %vm1526_vm9, %v1441_v34  ;;  %v1447_v24 = vpop.permute.xlu0 %1446 }
 0x1e6   : > { %1846 = vrot.lane.b32.xlu1 %v1767_v63, %s4802_s17  ;;  %1535 = vst.msk [vmem:[#allocation3 + $0x40] sm:$0xff] %vm1526_vm9, %v1447_v24 }
 0x1e7   : > { %1848 = vrot.lane.b32.xlu0 %v1768_v23, %s4802_s17 }
 0x1e8   : > { %v1445_v20 = vpop.permute.xlu1 %1444 }
 0x1e9   : > { %1534 = vst.msk [vmem:[#allocation3 + $0x38] sm:$0xff] %vm1526_vm9, %v1445_v20  ;;  %v1451_v10 = vpop.permute.xlu0 %1450 }
 0x1ea   : > { %1657 = vrot.lane.b32.xlu1 %v1576_v19, %s4801_s6  ;;  %1537 = vst.msk [vmem:[#allocation3 + $0x50] sm:$0xff] %vm1526_vm9, %v1451_v10 }
 0x1eb   : > { %1659 = vrot.lane.b32.xlu0 %v1577_v15, %s4801_s6 }
 0x1ec   : > { %v1449_v49 = vpop.permute.xlu1 %1448 }
 0x1ed   : > { %1536 = vst.msk [vmem:[#allocation3 + $0x48] sm:$0xff] %vm1526_vm9, %v1449_v49  ;;  %v1455_v12 = vpop.permute.xlu0 %1454 }
 0x1ee   : > { %1850 = vrot.lane.b32.xlu1 %v1769_v16, %s4802_s17  ;;  %1539 = vst.msk [vmem:[#allocation3 + $0x60] sm:$0xff] %vm1526_vm9, %v1455_v12 }
 0x1ef   : > { %1852 = vrot.lane.b32.xlu0 %v1770_v1, %s4802_s17 }
 0x1f0   : > { %v1453_v46 = vpop.permute.xlu1 %1452 }
 0x1f1   : > { %1538 = vst.msk [vmem:[#allocation3 + $0x58] sm:$0xff] %vm1526_vm9, %v1453_v46  ;;  %v1459_v30 = vpop.permute.xlu0 %1458 }
 0x1f2   : > { %1661 = vrot.lane.b32.xlu1 %v1578_v25, %s4801_s6  ;;  %1541 = vst.msk [vmem:[#allocation3 + $0x70] sm:$0xff] %vm1526_vm9, %v1459_v30 }
 0x1f3   : > { %1663 = vrot.lane.b32.xlu0 %v1579_v5, %s4801_s6 }
 0x1f4   : > { %v1457_v32 = vpop.permute.xlu1 %1456 }
 0x1f5   : > { %1540 = vst.msk [vmem:[#allocation3 + $0x68] sm:$0xff] %vm1526_vm9, %v1457_v32  ;;  %v1463_v39 = vpop.permute.xlu0 %1462 }
 0x1f6   : > { %1854 = vrot.lane.b32.xlu1 %v1771_v6, %s4802_s17  ;;  %1543 = vst.msk [vmem:[#allocation3 + $0x80] sm:$0xff] %vm1526_vm9, %v1463_v39 }
 0x1f7   : > { %1856 = vrot.lane.b32.xlu0 %v1772_v4, %s4802_s17 }
 0x1f8   : > { %v1461_v51 = vpop.permute.xlu1 %1460 }
 0x1f9   : > { %1542 = vst.msk [vmem:[#allocation3 + $0x78] sm:$0xff] %vm1526_vm9, %v1461_v51  ;;  %v1467_v54 = vpop.permute.xlu0 %1466 }
 0x1fa   : > { %1665 = vrot.lane.b32.xlu1 %v1580_v9, %s4801_s6  ;;  %1545 = vst.msk [vmem:[#allocation3 + $0x90] sm:$0xff] %vm1526_vm9, %v1467_v54 }
 0x1fb   : > { %1667 = vrot.lane.b32.xlu0 %v1581_v40, %s4801_s6 }
 0x1fc   : > { %v1465_v57 = vpop.permute.xlu1 %1464 }
 0x1fd   : > { %1544 = vst.msk [vmem:[#allocation3 + $0x88] sm:$0xff] %vm1526_vm9, %v1465_v57  ;;  %v1471_v59 = vpop.permute.xlu0 %1470 }
 0x1fe   : > { %1858 = vrot.lane.b32.xlu1 %v1773_v52, %s4802_s17  ;;  %1547 = vst.msk [vmem:[#allocation3 + $0xa0] sm:$0xff] %vm1526_vm9, %v1471_v59 }
 0x1ff   : > { %1860 = vrot.lane.b32.xlu0 %v1774_v55, %s4802_s17 }
 0x200   : > { %v1469_v61 = vpop.permute.xlu1 %1468 }
 0x201   : > { %1546 = vst.msk [vmem:[#allocation3 + $0x98] sm:$0xff] %vm1526_vm9, %v1469_v61  ;;  %v1475_v0 = vpop.permute.xlu0 %1474 }
 0x202   : > { %1669 = vrot.lane.b32.xlu1 %v1582_v58, %s4801_s6  ;;  %1549 = vst.msk [vmem:[#allocation3 + $0xb0] sm:$0xff] %vm1526_vm9, %v1475_v0 }
 0x203   : > { %1671 = vrot.lane.b32.xlu0 %v1583_v60, %s4801_s6 }
 0x204   : > { %v1473_v8 = vpop.permute.xlu1 %1472 }
 0x205   : > { %1548 = vst.msk [vmem:[#allocation3 + $0xa8] sm:$0xff] %vm1526_vm9, %v1473_v8  ;;  %v1479_v48 = vpop.permute.xlu0 %1478 }
 0x206   : > { %1862 = vrot.lane.b32.xlu1 %v1775_v62, %s4802_s17  ;;  %1551 = vst.msk [vmem:[#allocation3 + $0xc0] sm:$0xff] %vm1526_vm9, %v1479_v48 }
 0x207   : > { %1864 = vrot.lane.b32.xlu0 %v1776_v7, %s4802_s17 }
 0x208   : > { %v1477_v38 = vpop.permute.xlu1 %1476 }
 0x209   : > { %1550 = vst.msk [vmem:[#allocation3 + $0xb8] sm:$0xff] %vm1526_vm9, %v1477_v38  ;;  %v1483_v36 = vpop.permute.xlu0 %1482 }
 0x20a   : > { %1673 = vrot.lane.b32.xlu1 %v1584_v45, %s4801_s6  ;;  %1553 = vst.msk [vmem:[#allocation3 + $0xd0] sm:$0xff] %vm1526_vm9, %v1483_v36 }
 0x20b   : > { %1675 = vrot.lane.b32.xlu0 %v1585_v37, %s4801_s6 }
 0x20c   : > { %v1481_v28 = vpop.permute.xlu1 %1480 }
 0x20d   : > { %1552 = vst.msk [vmem:[#allocation3 + $0xc8] sm:$0xff] %vm1526_vm9, %v1481_v28  ;;  %v1487_v21 = vpop.permute.xlu0 %1486 }
 0x20e   : > { %1866 = vrot.lane.b32.xlu1 %v1777_v35, %s4802_s17  ;;  %1555 = vst.msk [vmem:[#allocation3 + $0xe0] sm:$0xff] %vm1526_vm9, %v1487_v21 }
 0x20f   : > { %1868 = vrot.lane.b32.xlu0 %v1778_v33, %s4802_s17 }
 0x210   : > { %v1485_v17 = vpop.permute.xlu1 %1484 }
 0x211   : > { %1554 = vst.msk [vmem:[#allocation3 + $0xd8] sm:$0xff] %vm1526_vm9, %v1485_v17  ;;  %v1491_v22 = vpop.permute.xlu0 %1490 }
 0x212   : > { %1677 = vrot.lane.b32.xlu1 %v1586_v29, %s4801_s6  ;;  %1557 = vst.msk [vmem:[#allocation3 + $0xf0] sm:$0xff] %vm1526_vm9, %v1491_v22 }
 0x213   : > { %1679 = vrot.lane.b32.xlu0 %v5618_v11, %s4801_s6 }
 0x214   : > { %v1489_v13 = vpop.permute.xlu1 %1488 }
 0x215   : > { %1556 = vst.msk [vmem:[#allocation3 + $0xe8] sm:$0xff] %vm1526_vm9, %v1489_v13  ;;  %v1624_v18 = vpop.permute.xlu0 %1623 }
 0x216   : > { %1870 = vrot.lane.b32.xlu1 %v1779_v41, %s4802_s17  ;;  %1720 = vst.msk [vmem:[#allocation3] sm:$0xff] %vm1719_vm10, %v1624_v18 }
 0x217   : > { %1872 = vrot.lane.b32.xlu0 %v5718_v26, %s4802_s17  ;;  %v1590_v26 = vld [vmem:[#allocation2 + $0x1a1] sm:$0xff] }
 0x218   : > { %v1493_v42 = vpop.permute.xlu1 %1492 }
 0x219   : > { %1558 = vst.msk [vmem:[#allocation3 + $0xf8] sm:$0xff] %vm1526_vm9, %v1493_v42  ;;  %v1628_v43 = vpop.permute.xlu0 %1627 }
 0x21a   : > { %1681 = vrot.lane.b32.xlu1 %v5628_v27, %s4801_s6  ;;  %1722 = vst.msk [vmem:[#allocation3 + $0x10] sm:$0xff] %vm1719_vm10, %v1628_v43 }
 0x21b   : > { %1683 = vrot.lane.b32.xlu0 %v1589_v2, %s4801_s6 }
 0x21c   : > { %v1626_v11 = vpop.permute.xlu1 %1625 }
 0x21d   : > { %1721 = vst.msk [vmem:[#allocation3 + $0x8] sm:$0xff] %vm1719_vm10, %v1626_v11  ;;  %v1632_v44 = vpop.permute.xlu0 %1631 }
 0x21e   : > { %1874 = vrot.lane.b32.xlu1 %v5728_v31, %s4802_s17  ;;  %1724 = vst.msk [vmem:[#allocation3 + $0x20] sm:$0xff] %vm1719_vm10, %v1632_v44 }
 0x21f   : > { %1876 = vrot.lane.b32.xlu0 %v1782_v14, %s4802_s17 }
 0x220   : > { %v1630_v47 = vpop.permute.xlu1 %1629 }
 0x221   : > { %1723 = vst.msk [vmem:[#allocation3 + $0x18] sm:$0xff] %vm1719_vm10, %v1630_v47  ;;  %v1636_v27 = vpop.permute.xlu0 %1635 }
 0x222   : > { %1685 = vrot.lane.b32.xlu1 %v1590_v26, %s4801_s6  ;;  %1726 = vst.msk [vmem:[#allocation3 + $0x30] sm:$0xff] %vm1719_vm10, %v1636_v27 }
 0x224   : > { %v1634_v3 = vpop.permute.xlu1 %1633 }
 0x225   : > { %1725 = vst.msk [vmem:[#allocation3 + $0x28] sm:$0xff] %vm1719_vm10, %v1634_v3  ;;  %v1640_v53 = vpop.permute.xlu0 %1639 }
 0x226   : > { %1878 = vrot.lane.b32.xlu1 %v1783_v50, %s4802_s17  ;;  %1728 = vst.msk [vmem:[#allocation3 + $0x40] sm:$0xff] %vm1719_vm10, %v1640_v53 }
 0x228   : > { %v1638_v31 = vpop.permute.xlu1 %1637 }
 0x229   : > { %1727 = vst.msk [vmem:[#allocation3 + $0x38] sm:$0xff] %vm1719_vm10, %v1638_v31  ;;  %v1644_v56 = vpop.permute.xlu0 %1643 }
 0x22a   : > { %1730 = vst.msk [vmem:[#allocation3 + $0x50] sm:$0xff] %vm1719_vm10, %v1644_v56 }
 0x22c   : > { %v1642_v63 = vpop.permute.xlu1 %1641 }
 0x22d   : > { %1729 = vst.msk [vmem:[#allocation3 + $0x48] sm:$0xff] %vm1719_vm10, %v1642_v63  ;;  %v1648_v34 = vpop.permute.xlu0 %1647 }
 0x22e   : > { %1732 = vst.msk [vmem:[#allocation3 + $0x60] sm:$0xff] %vm1719_vm10, %v1648_v34 }
 0x230   : > { %v1646_v23 = vpop.permute.xlu1 %1645 }
 0x231   : > { %1731 = vst.msk [vmem:[#allocation3 + $0x58] sm:$0xff] %vm1719_vm10, %v1646_v23  ;;  %v1652_v24 = vpop.permute.xlu0 %1651 }
 0x232   : > { %1734 = vst.msk [vmem:[#allocation3 + $0x70] sm:$0xff] %vm1719_vm10, %v1652_v24 }
 0x234   : > { %v1650_v19 = vpop.permute.xlu1 %1649 }
 0x235   : > { %1733 = vst.msk [vmem:[#allocation3 + $0x68] sm:$0xff] %vm1719_vm10, %v1650_v19  ;;  %v1817_v20 = vpop.permute.xlu0 %1816 }
 0x236   : > { %1913 = vst.msk [vmem:[#allocation3] sm:$0xff] %vm1912_vm11, %v1817_v20 }
 0x238   : > { %v1654_v15 = vpop.permute.xlu1 %1653 }
 0x239   : > { %1735 = vst.msk [vmem:[#allocation3 + $0x78] sm:$0xff] %vm1719_vm10, %v1654_v15  ;;  %v1821_v10 = vpop.permute.xlu0 %1820 }
 0x23a   : > { %1915 = vst.msk [vmem:[#allocation3 + $0x10] sm:$0xff] %vm1912_vm11, %v1821_v10 }
 0x23c   : > { %v1819_v16 = vpop.permute.xlu1 %1818 }
 0x23d   : > { %1914 = vst.msk [vmem:[#allocation3 + $0x8] sm:$0xff] %vm1912_vm11, %v1819_v16  ;;  %v1825_v49 = vpop.permute.xlu0 %1824  ;;  %v1945_v1 = vld [vmem:[#allocation3] sm:$0xff] }
 0x23e   : > { %1917 = vst.msk [vmem:[#allocation3 + $0x20] sm:$0xff] %vm1912_vm11, %v1825_v49  ;;  %4663 = vmatprep.mubr.msk.f32.mxu0 %vm1989_vm12, %v1945_v1 }
 0x240   : > { %v1823_v12 = vpop.permute.xlu1 %1822 }
 0x241   : > { %1916 = vst.msk [vmem:[#allocation3 + $0x18] sm:$0xff] %vm1912_vm11, %v1823_v12  ;;  %v1829_v25 = vpop.permute.xlu0 %1828  ;;  %v1947_v46 = vld [vmem:[#allocation3 + $0x10] sm:$0xff] }
 0x242   : > { %1919 = vst.msk [vmem:[#allocation3 + $0x30] sm:$0xff] %vm1912_vm11, %v1829_v25  ;;  %v2444_v25 = vld [vmem:[#allocation2 + $0x9] sm:$0xff] }
 0x243   : > { %2509 = vrot.lane.b32.xlu1 %v2444_v25, %s4795_s25 }
 0x244   : > { %v1827_v5 = vpop.permute.xlu1 %1826  ;;  %v1946_v30 = vld [vmem:[#allocation3 + $0x8] sm:$0xff] }
 0x245   : > { %1918 = vst.msk [vmem:[#allocation3 + $0x28] sm:$0xff] %vm1912_vm11, %v1827_v5  ;;  %4664 = vmatmul.mubr.msk.f32.vlgmr.msra.gmra.mxu0 %vm1989_vm12, %v1946_v30  ;;  %v1833_v6 = vpop.permute.xlu0 %1832  ;;  %v1949_v32 = vld [vmem:[#allocation3 + $0x20] sm:$0xff] }
 0x246   : > { %4666 = vmatprep.mubr.msk.f32.mxu0 %vm1989_vm12, %v1947_v46  ;;  %1921 = vst.msk [vmem:[#allocation3 + $0x40] sm:$0xff] %vm1912_vm11, %v1833_v6  ;;  %v2443_v46 = vld [vmem:[#allocation2 + $0x1] sm:$0xff] }
 0x247   : > { %2507 = vrot.lane.b32.xlu0 %v2443_v46, %s4795_s25 }
 0x248   : > { %v1831_v4 = vpop.permute.xlu1 %1830  ;;  %v1948_v39 = vld [vmem:[#allocation3 + $0x18] sm:$0xff] }
 0x249   : > { %1920 = vst.msk [vmem:[#allocation3 + $0x38] sm:$0xff] %vm1912_vm11, %v1831_v4  ;;  %4667 = vmatmul.mubr.msk.f32.gmra.mxu0 %vm1989_vm12, %v1948_v39  ;;  %v1837_v9 = vpop.permute.xlu0 %1836  ;;  %v1951_v51 = vld [vmem:[#allocation3 + $0x30] sm:$0xff] }
 0x24a   : > { %4669 = vmatprep.mubr.msk.f32.mxu0 %vm1989_vm12, %v1949_v32  ;;  %1923 = vst.msk [vmem:[#allocation3 + $0x50] sm:$0xff] %vm1912_vm11, %v1837_v9 }
 0x24c   : > { %v1835_v40 = vpop.permute.xlu1 %1834  ;;  %v1950_v54 = vld [vmem:[#allocation3 + $0x28] sm:$0xff] }
 0x24d   : > { %1922 = vst.msk [vmem:[#allocation3 + $0x48] sm:$0xff] %vm1912_vm11, %v1835_v40  ;;  %4670 = vmatmul.mubr.msk.f32.gmra.mxu0 %vm1989_vm12, %v1950_v54  ;;  %v1841_v52 = vpop.permute.xlu0 %1840  ;;  %v1953_v57 = vld [vmem:[#allocation3 + $0x40] sm:$0xff] }
 0x24e   : > { %4672 = vmatprep.mubr.msk.f32.mxu0 %vm1989_vm12, %v1951_v51  ;;  %1925 = vst.msk [vmem:[#allocation3 + $0x60] sm:$0xff] %vm1912_vm11, %v1841_v52  ;;  %v2380_v52 = vld [vmem:[#allocation2 + $0x8] sm:$0xff] }
 0x24f   : > { %2412 = vst.msk [vmem:[#allocation3 + $0x8] sm:$0xff] %vm225_vm0, %v2380_v52 }
 0x250   : > { %v1839_v55 = vpop.permute.xlu1 %1838  ;;  %v1952_v59 = vld [vmem:[#allocation3 + $0x38] sm:$0xff] }
 0x251   : > { %1924 = vst.msk [vmem:[#allocation3 + $0x58] sm:$0xff] %vm1912_vm11, %v1839_v55  ;;  %4673 = vmatmul.mubr.msk.f32.gmra.mxu0 %vm1989_vm12, %v1952_v59  ;;  %v1845_v58 = vpop.permute.xlu0 %1844  ;;  %v1955_v61 = vld [vmem:[#allocation3 + $0x50] sm:$0xff] }
 0x252   : > { %4675 = vmatprep.mubr.msk.f32.mxu0 %vm1989_vm12, %v1953_v57  ;;  %1927 = vst.msk [vmem:[#allocation3 + $0x70] sm:$0xff] %vm1912_vm11, %v1845_v58  ;;  %v2379_v55 = vld [vmem:[#allocation2] sm:$0xff] }
 0x253   : > { %2411 = vst.msk [vmem:[#allocation3] sm:$0xff] %vm225_vm0, %v2379_v55  ;;  %v6074_v58 = vld [vmem:[%s7117_s2] ss:$0 sm:$0xff] }
 0x254   : > { %v1843_v60 = vpop.permute.xlu1 %1842  ;;  %v1954_v0 = vld [vmem:[#allocation3 + $0x48] sm:$0xff] }
 0x255   : > { %1926 = vst.msk [vmem:[#allocation3 + $0x68] sm:$0xff] %vm1912_vm11, %v1843_v60  ;;  %4676 = vmatmul.mubr.msk.f32.gmra.mxu0 %vm1989_vm12, %v1954_v0  ;;  %v1656_v62 = vpop.permute.xlu0 %1655  ;;  %v1957_v8 = vld [vmem:[#allocation3 + $0x60] sm:$0xff] }
 0x256   : > { %4678 = vmatprep.mubr.msk.f32.mxu0 %vm1989_vm12, %v1955_v61  ;;  %1736 = vst.msk [vmem:[#allocation3 + $0x80] sm:$0xff] %vm1719_vm10, %v1656_v62 }
 0x258   : > { %v1847_v7 = vpop.permute.xlu1 %1846  ;;  %v1956_v48 = vld [vmem:[#allocation3 + $0x58] sm:$0xff] }
 0x259   : > { %1928 = vst.msk [vmem:[#allocation3 + $0x78] sm:$0xff] %vm1912_vm11, %v1847_v7  ;;  %4679 = vmatmul.mubr.msk.f32.gmra.mxu0 %vm1989_vm12, %v1956_v48  ;;  %v1849_v45 = vpop.permute.xlu0 %1848  ;;  %v1959_v38 = vld [vmem:[#allocation3 + $0x70] sm:$0xff] }
 0x25a   : > { %4681 = vmatprep.mubr.msk.f32.mxu0 %vm1989_vm12, %v1957_v8  ;;  %1929 = vst.msk [vmem:[#allocation3 + $0x80] sm:$0xff] %vm1912_vm11, %v1849_v45 }
 0x25c   : > { %v1658_v37 = vpop.permute.xlu1 %1657  ;;  %v1958_v36 = vld [vmem:[#allocation3 + $0x68] sm:$0xff] }
 0x25d   : > { %1737 = vst.msk [vmem:[#allocation3 + $0x88] sm:$0xff] %vm1719_vm10, %v1658_v37  ;;  %4682 = vmatmul.mubr.msk.f32.gmra.mxu0 %vm1989_vm12, %v1958_v36  ;;  %v1660_v35 = vpop.permute.xlu0 %1659 }
 0x25e   : > { %4684 = vmatprep.mubr.msk.f32.mxu0 %vm1989_vm12, %v1959_v38  ;;  %1738 = vst.msk [vmem:[#allocation3 + $0x90] sm:$0xff] %vm1719_vm10, %v1660_v35 }
 0x260   : > { %v1851_v28 = vpop.permute.xlu1 %1850  ;;  %v1960_v33 = vld [vmem:[#allocation3 + $0x78] sm:$0xff] }
 0x261   : > { %1930 = vst.msk [vmem:[#allocation3 + $0x88] sm:$0xff] %vm1912_vm11, %v1851_v28  ;;  %4685 = vmatmul.mubr.msk.f32.gmra.mxu0 %vm1989_vm12, %v1960_v33  ;;  %v1853_v21 = vpop.permute.xlu0 %1852  ;;  %v1961_v29 = vld [vmem:[#allocation3 + $0x80] sm:$0xff] }
 0x262   : > { %1931 = vst.msk [vmem:[#allocation3 + $0x90] sm:$0xff] %vm1912_vm11, %v1853_v21  ;;  %4687 = vmatprep.mubr.msk.f32.mxu0 %vm1989_vm12, %v1961_v29 }
 0x264   : > { %v1662_v17 = vpop.permute.xlu1 %1661 }
 0x265   : > { %1739 = vst.msk [vmem:[#allocation3 + $0x98] sm:$0xff] %vm1719_vm10, %v1662_v17  ;;  %v1664_v22 = vpop.permute.xlu0 %1663 }
 0x266   : > { %1740 = vst.msk [vmem:[#allocation3 + $0xa0] sm:$0xff] %vm1719_vm10, %v1664_v22 }
 0x268   : > { %v1855_v41 = vpop.permute.xlu1 %1854  ;;  %v1962_v13 = vld [vmem:[#allocation3 + $0x88] sm:$0xff] }
 0x269   : > { %1932 = vst.msk [vmem:[#allocation3 + $0x98] sm:$0xff] %vm1912_vm11, %v1855_v41  ;;  %4688 = vmatmul.mubr.msk.f32.gmra.mxu0 %vm1989_vm12, %v1962_v13  ;;  %v1857_v18 = vpop.permute.xlu0 %1856  ;;  %v1963_v42 = vld [vmem:[#allocation3 + $0x90] sm:$0xff] }
 0x26a   : > { %1933 = vst.msk [vmem:[#allocation3 + $0xa0] sm:$0xff] %vm1912_vm11, %v1857_v18  ;;  %4690 = vmatprep.mubr.msk.f32.mxu0 %vm1989_vm12, %v1963_v42 }
 0x26c   : > { %v1666_v2 = vpop.permute.xlu1 %1665 }
 0x26d   : > { %1741 = vst.msk [vmem:[#allocation3 + $0xa8] sm:$0xff] %vm1719_vm10, %v1666_v2  ;;  %v1668_v43 = vpop.permute.xlu0 %1667 }
 0x26e   : > { %1742 = vst.msk [vmem:[#allocation3 + $0xb0] sm:$0xff] %vm1719_vm10, %v1668_v43 }
 0x270   : > { %v1859_v11 = vpop.permute.xlu1 %1858  ;;  %v1964_v14 = vld [vmem:[#allocation3 + $0x98] sm:$0xff] }
 0x271   : > { %1934 = vst.msk [vmem:[#allocation3 + $0xa8] sm:$0xff] %vm1912_vm11, %v1859_v11  ;;  %4691 = vmatmul.mubr.msk.f32.gmra.mxu0 %vm1989_vm12, %v1964_v14  ;;  %v1861_v44 = vpop.permute.xlu0 %1860  ;;  %v1965_v26 = vld [vmem:[#allocation3 + $0xa0] sm:$0xff] }
 0x272   : > { %1935 = vst.msk [vmem:[#allocation3 + $0xb0] sm:$0xff] %vm1912_vm11, %v1861_v44  ;;  %4693 = vmatprep.mubr.msk.f32.mxu0 %vm1989_vm12, %v1965_v26 }
 0x274   : > { %v1670_v47 = vpop.permute.xlu1 %1669 }
 0x275   : > { %1743 = vst.msk [vmem:[#allocation3 + $0xb8] sm:$0xff] %vm1719_vm10, %v1670_v47  ;;  %v1672_v27 = vpop.permute.xlu0 %1671 }
 0x276   : > { %1744 = vst.msk [vmem:[#allocation3 + $0xc0] sm:$0xff] %vm1719_vm10, %v1672_v27 }
 0x278   : > { %v1863_v50 = vpop.permute.xlu1 %1862  ;;  %v1966_v3 = vld [vmem:[#allocation3 + $0xa8] sm:$0xff] }
 0x279   : > { %1936 = vst.msk [vmem:[#allocation3 + $0xb8] sm:$0xff] %vm1912_vm11, %v1863_v50  ;;  %4694 = vmatmul.mubr.msk.f32.gmra.mxu0 %vm1989_vm12, %v1966_v3  ;;  %v1865_v53 = vpop.permute.xlu0 %1864  ;;  %v1967_v31 = vld [vmem:[#allocation3 + $0xb0] sm:$0xff] }
 0x27a   : > { %1937 = vst.msk [vmem:[#allocation3 + $0xc0] sm:$0xff] %vm1912_vm11, %v1865_v53  ;;  %4696 = vmatprep.mubr.msk.f32.mxu0 %vm1989_vm12, %v1967_v31 }
 0x27c   : > { %v1674_v56 = vpop.permute.xlu1 %1673 }
 0x27d   : > { %1745 = vst.msk [vmem:[#allocation3 + $0xc8] sm:$0xff] %vm1719_vm10, %v1674_v56  ;;  %v1676_v63 = vpop.permute.xlu0 %1675 }
 0x27e   : > { %1746 = vst.msk [vmem:[#allocation3 + $0xd0] sm:$0xff] %vm1719_vm10, %v1676_v63 }
 0x280   : > { %v1867_v34 = vpop.permute.xlu1 %1866  ;;  %v1968_v23 = vld [vmem:[#allocation3 + $0xb8] sm:$0xff] }
 0x281   : > { %1938 = vst.msk [vmem:[#allocation3 + $0xc8] sm:$0xff] %vm1912_vm11, %v1867_v34  ;;  %4697 = vmatmul.mubr.msk.f32.gmra.mxu0 %vm1989_vm12, %v1968_v23  ;;  %v1869_v24 = vpop.permute.xlu0 %1868  ;;  %v1969_v19 = vld [vmem:[#allocation3 + $0xc0] sm:$0xff] }
 0x282   : > { %1939 = vst.msk [vmem:[#allocation3 + $0xd0] sm:$0xff] %vm1912_vm11, %v1869_v24  ;;  %4699 = vmatprep.mubr.msk.f32.mxu0 %vm1989_vm12, %v1969_v19 }
 0x284   : > { %v1678_v20 = vpop.permute.xlu1 %1677 }
 0x285   : > { %1747 = vst.msk [vmem:[#allocation3 + $0xd8] sm:$0xff] %vm1719_vm10, %v1678_v20  ;;  %v1680_v15 = vpop.permute.xlu0 %1679 }
 0x286   : > { %1748 = vst.msk [vmem:[#allocation3 + $0xe0] sm:$0xff] %vm1719_vm10, %v1680_v15 }
 0x288   : > { %v1871_v10 = vpop.permute.xlu1 %1870  ;;  %v1970_v16 = vld [vmem:[#allocation3 + $0xc8] sm:$0xff] }
 0x289   : > { %1940 = vst.msk [vmem:[#allocation3 + $0xd8] sm:$0xff] %vm1912_vm11, %v1871_v10  ;;  %4700 = vmatmul.mubr.msk.f32.gmra.mxu0 %vm1989_vm12, %v1970_v16  ;;  %v1873_v49 = vpop.permute.xlu0 %1872  ;;  %v1971_v1 = vld [vmem:[#allocation3 + $0xd0] sm:$0xff] }
 0x28a   : > { %1941 = vst.msk [vmem:[#allocation3 + $0xe0] sm:$0xff] %vm1912_vm11, %v1873_v49  ;;  %4702 = vmatprep.mubr.msk.f32.mxu0 %vm1989_vm12, %v1971_v1 }
 0x28c   : > { %v1682_v12 = vpop.permute.xlu1 %1681 }
 0x28d   : > { %1749 = vst.msk [vmem:[#allocation3 + $0xe8] sm:$0xff] %vm1719_vm10, %v1682_v12  ;;  %v1684_v4 = vpop.permute.xlu0 %1683 }
 0x28e   : > { %1750 = vst.msk [vmem:[#allocation3 + $0xf0] sm:$0xff] %vm1719_vm10, %v1684_v4 }
 0x290   : > { %v1875_v5 = vpop.permute.xlu1 %1874  ;;  %v1972_v30 = vld [vmem:[#allocation3 + $0xd8] sm:$0xff] }
 0x291   : > { %1942 = vst.msk [vmem:[#allocation3 + $0xe8] sm:$0xff] %vm1912_vm11, %v1875_v5  ;;  %4703 = vmatmul.mubr.msk.f32.gmra.mxu0 %vm1989_vm12, %v1972_v30  ;;  %v1973_v6 = vld [vmem:[#allocation3 + $0xe0] sm:$0xff]  ;;  %v1877_v9 = vpop.permute.xlu0 %1876 }
 0x292   : > { %4705 = vmatprep.mubr.msk.f32.mxu0 %vm1989_vm12, %v1973_v6  ;;  %1943 = vst.msk [vmem:[#allocation3 + $0xf0] sm:$0xff] %vm1912_vm11, %v1877_v9 }
 0x294   : > { %v1686_v39 = vpop.permute.xlu1 %1685 }
 0x295   : > { %1751 = vst.msk [vmem:[#allocation3 + $0xf8] sm:$0xff] %vm1719_vm10, %v1686_v39 }
 0x298   : > { %v1974_v32 = vld [vmem:[#allocation3 + $0xe8] sm:$0xff]  ;;  %v1879_v51 = vpop.permute.xlu1 %1878 }
 0x299   : > { %4706 = vmatmul.mubr.msk.f32.gmra.mxu0 %vm1989_vm12, %v1974_v32  ;;  %1944 = vst.msk [vmem:[#allocation3 + $0xf8] sm:$0xff] %vm1912_vm11, %v1879_v51  ;;  %v1975_v40 = vld [vmem:[#allocation3 + $0xf0] sm:$0xff] }
 0x29a   : > { %4708 = vmatprep.mubr.msk.f32.mxu0 %vm1989_vm12, %v1975_v40 }
 0x2a0   : > { %v1976_v54 = vld [vmem:[#allocation3 + $0xf8] sm:$0xff] }
 0x2a1   : > { %4709 = vmatmul.mubr.msk.f32.gmra.mxu0 %vm1989_vm12, %v1976_v54 }
 0x2b5   : > { %v2510_v57 = vpop.permute.xlu1 %2509 }
 0x2b6   : > { %2604 = vst.msk [vmem:[#allocation3 + $0x8] sm:$0xff] %vm560_vm3, %v2510_v57 }
 0x2b9   : > { %v2508_v59 = vpop.permute.xlu0 %2507 }
 0x2ba   : > { %2603 = vst.msk [vmem:[#allocation3] sm:$0xff] %vm560_vm3, %v2508_v59 }
 0x305   : > { %v4665_v61 = vpop.f32.mrf.mxu0 }
 0x306   : > { %v2162_v60 = vadd.f32 %v4665_v61, %v6074_v58 }
 0x307   : > { %v2156_v0 = vpop.f32.mrf.mxu0 }
 0x308   : > { %v2316_v62 = vmax.f32 %v2162_v60, 0.0  ;;  %v2157_v8 = vadd.f32 %v6074_v58, %v2156_v0 }
 0x309   : > { %v4668_v7 = vpop.f32.mrf.mxu0 }
 0x30a   : > { %2348 = vst.msk [vmem:[#allocation2 + $0x21] sm:$0xff] %vm225_vm0, %v2316_v62  ;;  %v2315_v48 = vmax.f32 %v2157_v8, 0.0  ;;  %v2172_v45 = vadd.f32 %v4668_v7, %v6074_v58 }
 0x30b   : > { %v2166_v38 = vpop.f32.mrf.mxu0 }
 0x30c   : > { %2347 = vst.msk [vmem:[#allocation2 + $0x19] sm:$0xff] %vm225_vm0, %v2315_v48  ;;  %v2318_v37 = vmax.f32 %v2172_v45, 0.0  ;;  %v2167_v36 = vadd.f32 %v6074_v58, %v2166_v38 }
 0x30d   : > { %v4671_v35 = vpop.f32.mrf.mxu0 }
 0x30e   : > { %2350 = vst.msk [vmem:[#allocation2 + $0x39] sm:$0xff] %vm225_vm0, %v2318_v37  ;;  %v2317_v28 = vmax.f32 %v2167_v36, 0.0  ;;  %v2182_v33 = vadd.f32 %v4671_v35, %v6074_v58 }
 0x30f   : > { %v2176_v21 = vpop.f32.mrf.mxu0 }
 0x310   : > { %2349 = vst.msk [vmem:[#allocation2 + $0x31] sm:$0xff] %vm225_vm0, %v2317_v28  ;;  %v2320_v29 = vmax.f32 %v2182_v33, 0.0  ;;  %v2177_v17 = vadd.f32 %v6074_v58, %v2176_v21 }
 0x311   : > { %v4674_v22 = vpop.f32.mrf.mxu0  ;;  %v6087_v41 = vld [vmem:[#allocation2 + $0x21] sm:$0xff] }
 0x312   : > { %2352 = vst.msk [vmem:[#allocation2 + $0x51] sm:$0xff] %vm225_vm0, %v2320_v29  ;;  %v2319_v13 = vmax.f32 %v2177_v17, 0.0  ;;  %v2192_v18 = vadd.f32 %v4674_v22, %v6074_v58  ;;  %2513 = vrot.lane.b32.xlu1 %v6087_v41, %s4795_s25 }
 0x313   : > { %v2186_v42 = vpop.f32.mrf.mxu0  ;;  %v6093_v2 = vld [vmem:[#allocation2 + $0x19] sm:$0xff] }
 0x314   : > { %v6095_v43 = vld [vmem:[#allocation2 + $0x20] sm:$0xff]  ;;  %2351 = vst.msk [vmem:[#allocation2 + $0x49] sm:$0xff] %vm225_vm0, %v2319_v13  ;;  %v2322_v11 = vmax.f32 %v2192_v18, 0.0  ;;  %v2187_v14 = vadd.f32 %v6074_v58, %v2186_v42  ;;  %2511 = vrot.lane.b32.xlu0 %v6093_v2, %s4795_s25  ;;  %v6103_v44 = vld [vmem:[#allocation2 + $0x18] sm:$0xff] }
 0x315   : > { %2414 = vst.msk [vmem:[#allocation3 + $0x18] sm:$0xff] %vm225_vm0, %v6095_v43  ;;  %v4677_v26 = vpop.f32.mrf.mxu0  ;;  %v6105_v47 = vld [vmem:[#allocation2 + $0x39] sm:$0xff]  ;;  %2413 = vst.msk [vmem:[#allocation3 + $0x10] sm:$0xff] %vm225_vm0, %v6103_v44 }
 0x316   : > { %2354 = vst.msk [vmem:[#allocation2 + $0x69] sm:$0xff] %vm225_vm0, %v2322_v11  ;;  %v2321_v27 = vmax.f32 %v2187_v14, 0.0  ;;  %v2202_v50 = vadd.f32 %v4677_v26, %v6074_v58  ;;  %2517 = vrot.lane.b32.xlu1 %v6105_v47, %s4795_s25 }
 0x317   : > { %v2196_v3 = vpop.f32.mrf.mxu0  ;;  %v6113_v53 = vld [vmem:[#allocation2 + $0x31] sm:$0xff] }
 0x318   : > { %v6115_v31 = vld [vmem:[#allocation2 + $0x38] sm:$0xff]  ;;  %2353 = vst.msk [vmem:[#allocation2 + $0x61] sm:$0xff] %vm225_vm0, %v2321_v27  ;;  %v2324_v56 = vmax.f32 %v2202_v50, 0.0  ;;  %v2197_v63 = vadd.f32 %v6074_v58, %v2196_v3  ;;  %2515 = vrot.lane.b32.xlu0 %v6113_v53, %s4795_s25  ;;  %v6123_v34 = vld [vmem:[#allocation2 + $0x30] sm:$0xff] }
 0x319   : > { %2416 = vst.msk [vmem:[#allocation3 + $0x28] sm:$0xff] %vm225_vm0, %v6115_v31  ;;  %v4680_v23 = vpop.f32.mrf.mxu0  ;;  %v6125_v24 = vld [vmem:[#allocation2 + $0x51] sm:$0xff]  ;;  %2415 = vst.msk [vmem:[#allocation3 + $0x20] sm:$0xff] %vm225_vm0, %v6123_v34 }
 0x31a   : > { %2356 = vst.msk [vmem:[#allocation2 + $0x81] sm:$0xff] %vm225_vm0, %v2324_v56  ;;  %v2323_v19 = vmax.f32 %v2197_v63, 0.0  ;;  %v2212_v20 = vadd.f32 %v4680_v23, %v6074_v58  ;;  %2521 = vrot.lane.b32.xlu1 %v6125_v24, %s4795_s25 }
 0x31b   : > { %v2206_v15 = vpop.f32.mrf.mxu0  ;;  %v6133_v10 = vld [vmem:[#allocation2 + $0x49] sm:$0xff] }
 0x31c   : > { %v6135_v16 = vld [vmem:[#allocation2 + $0x50] sm:$0xff]  ;;  %2355 = vst.msk [vmem:[#allocation2 + $0x79] sm:$0xff] %vm225_vm0, %v2323_v19  ;;  %v2326_v49 = vmax.f32 %v2212_v20, 0.0  ;;  %v2207_v1 = vadd.f32 %v6074_v58, %v2206_v15  ;;  %2519 = vrot.lane.b32.xlu0 %v6133_v10, %s4795_s25  ;;  %v6143_v12 = vld [vmem:[#allocation2 + $0x48] sm:$0xff] }
 0x31d   : > { %2418 = vst.msk [vmem:[#allocation3 + $0x38] sm:$0xff] %vm225_vm0, %v6135_v16  ;;  %v4683_v25 = vpop.f32.mrf.mxu0  ;;  %v6145_v46 = vld [vmem:[#allocation2 + $0x69] sm:$0xff]  ;;  %2417 = vst.msk [vmem:[#allocation3 + $0x30] sm:$0xff] %vm225_vm0, %v6143_v12 }
 0x31e   : > { %2358 = vst.msk [vmem:[#allocation2 + $0x99] sm:$0xff] %vm225_vm0, %v2326_v49  ;;  %v2325_v5 = vmax.f32 %v2207_v1, 0.0  ;;  %v2222_v30 = vadd.f32 %v4683_v25, %v6074_v58  ;;  %2525 = vrot.lane.b32.xlu1 %v6145_v46, %s4795_s25 }
 0x31f   : > { %v2216_v6 = vpop.f32.mrf.mxu0  ;;  %v6153_v32 = vld [vmem:[#allocation2 + $0x61] sm:$0xff] }
 0x320   : > { %v6155_v4 = vld [vmem:[#allocation2 + $0x68] sm:$0xff]  ;;  %2357 = vst.msk [vmem:[#allocation2 + $0x91] sm:$0xff] %vm225_vm0, %v2325_v5  ;;  %v2328_v39 = vmax.f32 %v2222_v30, 0.0  ;;  %v2217_v9 = vadd.f32 %v6074_v58, %v2216_v6  ;;  %2523 = vrot.lane.b32.xlu0 %v6153_v32, %s4795_s25  ;;  %v6163_v51 = vld [vmem:[#allocation2 + $0x60] sm:$0xff] }
 0x321   : > { %2420 = vst.msk [vmem:[#allocation3 + $0x48] sm:$0xff] %vm225_vm0, %v6155_v4  ;;  %v4686_v40 = vpop.f32.mrf.mxu0  ;;  %v2454_v54 = vld [vmem:[#allocation2 + $0x81] sm:$0xff]  ;;  %2419 = vst.msk [vmem:[#allocation3 + $0x40] sm:$0xff] %vm225_vm0, %v6163_v51 }
 0x322   : > { %2360 = vst.msk [vmem:[#allocation2 + $0xb1] sm:$0xff] %vm225_vm0, %v2328_v39  ;;  %v2327_v52 = vmax.f32 %v2217_v9, 0.0  ;;  %v2232_v57 = vadd.f32 %v4686_v40, %v6074_v58  ;;  %2529 = vrot.lane.b32.xlu1 %v2454_v54, %s4795_s25 }
 0x323   : > { %v2226_v55 = vpop.f32.mrf.mxu0  ;;  %v6170_v59 = vld [vmem:[#allocation2 + $0x79] sm:$0xff] }
 0x324   : > { %v6172_v61 = vld [vmem:[#allocation2 + $0x80] sm:$0xff]  ;;  %2359 = vst.msk [vmem:[#allocation2 + $0xa9] sm:$0xff] %vm225_vm0, %v2327_v52  ;;  %v2330_v60 = vmax.f32 %v2232_v57, 0.0  ;;  %v2227_v0 = vadd.f32 %v6074_v58, %v2226_v55  ;;  %2527 = vrot.lane.b32.xlu0 %v6170_v59, %s4795_s25  ;;  %v6180_v62 = vld [vmem:[#allocation2 + $0x78] sm:$0xff] }
 0x325   : > { %2422 = vst.msk [vmem:[#allocation3 + $0x58] sm:$0xff] %vm225_vm0, %v6172_v61  ;;  %v2456_v8 = vld [vmem:[#allocation2 + $0x99] sm:$0xff]  ;;  %2421 = vst.msk [vmem:[#allocation3 + $0x50] sm:$0xff] %vm225_vm0, %v6180_v62 }
 0x326   : > { %2362 = vst.msk [vmem:[#allocation2 + $0xc9] sm:$0xff] %vm225_vm0, %v2330_v60  ;;  %v2329_v7 = vmax.f32 %v2227_v0, 0.0  ;;  %2533 = vrot.lane.b32.xlu1 %v2456_v8, %s4795_s25 }
 0x327   : > { %v2455_v48 = vld [vmem:[#allocation2 + $0x91] sm:$0xff] }
 0x328   : > { %v6186_v45 = vld [vmem:[#allocation2 + $0x98] sm:$0xff]  ;;  %2361 = vst.msk [vmem:[#allocation2 + $0xc1] sm:$0xff] %vm225_vm0, %v2329_v7  ;;  %2531 = vrot.lane.b32.xlu0 %v2455_v48, %s4795_s25  ;;  %v6192_v38 = vld [vmem:[#allocation2 + $0x90] sm:$0xff] }
 0x329   : > { %2424 = vst.msk [vmem:[#allocation3 + $0x68] sm:$0xff] %vm225_vm0, %v6186_v45  ;;  %v4689_v37 = vpop.f32.mrf.mxu0  ;;  %v2458_v36 = vld [vmem:[#allocation2 + $0xb1] sm:$0xff]  ;;  %2423 = vst.msk [vmem:[#allocation3 + $0x60] sm:$0xff] %vm225_vm0, %v6192_v38 }
 0x32a   : > { %v2242_v35 = vadd.f32 %v4689_v37, %v6074_v58  ;;  %2537 = vrot.lane.b32.xlu1 %v2458_v36, %s4795_s25 }
 0x32b   : > { %v2236_v28 = vpop.f32.mrf.mxu0  ;;  %v2457_v33 = vld [vmem:[#allocation2 + $0xa9] sm:$0xff] }
 0x32c   : > { %v6198_v21 = vld [vmem:[#allocation2 + $0xb0] sm:$0xff]  ;;  %v2332_v29 = vmax.f32 %v2242_v35, 0.0  ;;  %v2237_v17 = vadd.f32 %v6074_v58, %v2236_v28  ;;  %2535 = vrot.lane.b32.xlu0 %v2457_v33, %s4795_s25  ;;  %v6204_v22 = vld [vmem:[#allocation2 + $0xa8] sm:$0xff] }
 0x32d   : > { %2426 = vst.msk [vmem:[#allocation3 + $0x78] sm:$0xff] %vm225_vm0, %v6198_v21  ;;  %v2460_v13 = vld [vmem:[#allocation2 + $0xc9] sm:$0xff]  ;;  %2425 = vst.msk [vmem:[#allocation3 + $0x70] sm:$0xff] %vm225_vm0, %v6204_v22 }
 0x32e   : > { %2364 = vst.msk [vmem:[#allocation2 + $0xe1] sm:$0xff] %vm225_vm0, %v2332_v29  ;;  %v2331_v18 = vmax.f32 %v2237_v17, 0.0  ;;  %2541 = vrot.lane.b32.xlu1 %v2460_v13, %s4795_s25 }
 0x32f   : > { %v2459_v42 = vld [vmem:[#allocation2 + $0xc1] sm:$0xff] }
 0x330   : > { %v6210_v11 = vld [vmem:[#allocation2 + $0xc8] sm:$0xff]  ;;  %2363 = vst.msk [vmem:[#allocation2 + $0xd9] sm:$0xff] %vm225_vm0, %v2331_v18  ;;  %2539 = vrot.lane.b32.xlu0 %v2459_v42, %s4795_s25  ;;  %v6216_v14 = vld [vmem:[#allocation2 + $0xc0] sm:$0xff] }
 0x331   : > { %2428 = vst.msk [vmem:[#allocation3 + $0x88] sm:$0xff] %vm225_vm0, %v6210_v11  ;;  %v4692_v26 = vpop.f32.mrf.mxu0  ;;  %2427 = vst.msk [vmem:[#allocation3 + $0x80] sm:$0xff] %vm225_vm0, %v6216_v14 }
 0x332   : > { %v2252_v27 = vadd.f32 %v4692_v26, %v6074_v58 }
 0x333   : > { %v2246_v50 = vpop.f32.mrf.mxu0 }
 0x334   : > { %v2334_v3 = vmax.f32 %v2252_v27, 0.0  ;;  %v2247_v56 = vadd.f32 %v6074_v58, %v2246_v50 }
 0x335   : > { %v2462_v63 = vld [vmem:[#allocation2 + $0xe1] sm:$0xff] }
 0x336   : > { %2366 = vst.msk [vmem:[#allocation2 + $0xf9] sm:$0xff] %vm225_vm0, %v2334_v3  ;;  %v2333_v23 = vmax.f32 %v2247_v56, 0.0  ;;  %2545 = vrot.lane.b32.xlu1 %v2462_v63, %s4795_s25 }
 0x337   : > { %v2461_v19 = vld [vmem:[#allocation2 + $0xd9] sm:$0xff] }
 0x338   : > { %v6224_v20 = vld [vmem:[#allocation2 + $0xe0] sm:$0xff]  ;;  %2365 = vst.msk [vmem:[#allocation2 + $0xf1] sm:$0xff] %vm225_vm0, %v2333_v23  ;;  %2543 = vrot.lane.b32.xlu0 %v2461_v19, %s4795_s25  ;;  %v6230_v15 = vld [vmem:[#allocation2 + $0xd8] sm:$0xff] }
 0x339   : > { %2430 = vst.msk [vmem:[#allocation3 + $0x98] sm:$0xff] %vm225_vm0, %v6224_v20  ;;  %v4695_v49 = vpop.f32.mrf.mxu0  ;;  %2429 = vst.msk [vmem:[#allocation3 + $0x90] sm:$0xff] %vm225_vm0, %v6230_v15 }
 0x33a   : > { %v2262_v1 = vadd.f32 %v4695_v49, %v6074_v58 }
 0x33b   : > { %v2256_v25 = vpop.f32.mrf.mxu0 }
 0x33c   : > { %v2336_v5 = vmax.f32 %v2262_v1, 0.0  ;;  %v2257_v30 = vadd.f32 %v6074_v58, %v2256_v25 }
 0x33d   : > { %v2464_v6 = vld [vmem:[#allocation2 + $0xf9] sm:$0xff] }
 0x33e   : > { %2368 = vst.msk [vmem:[#allocation2 + $0x111] sm:$0xff] %vm225_vm0, %v2336_v5  ;;  %v2335_v39 = vmax.f32 %v2257_v30, 0.0  ;;  %2549 = vrot.lane.b32.xlu1 %v2464_v6, %s4795_s25 }
 0x33f   : > { %v2463_v9 = vld [vmem:[#allocation2 + $0xf1] sm:$0xff] }
 0x340   : > { %v6238_v40 = vld [vmem:[#allocation2 + $0xf8] sm:$0xff]  ;;  %2367 = vst.msk [vmem:[#allocation2 + $0x109] sm:$0xff] %vm225_vm0, %v2335_v39  ;;  %2547 = vrot.lane.b32.xlu0 %v2463_v9, %s4795_s25  ;;  %v6244_v54 = vld [vmem:[#allocation2 + $0xf0] sm:$0xff] }
 0x341   : > { %2432 = vst.msk [vmem:[#allocation3 + $0xa8] sm:$0xff] %vm225_vm0, %v6238_v40  ;;  %v4698_v52 = vpop.f32.mrf.mxu0  ;;  %2431 = vst.msk [vmem:[#allocation3 + $0xa0] sm:$0xff] %vm225_vm0, %v6244_v54 }
 0x342   : > { %v2272_v57 = vadd.f32 %v4698_v52, %v6074_v58 }
 0x343   : > { %v2266_v55 = vpop.f32.mrf.mxu0 }
 0x344   : > { %v2338_v60 = vmax.f32 %v2272_v57, 0.0  ;;  %v2267_v0 = vadd.f32 %v6074_v58, %v2266_v55 }
 0x345   : > { %v2466_v8 = vld [vmem:[#allocation2 + $0x111] sm:$0xff] }
 0x346   : > { %2370 = vst.msk [vmem:[#allocation2 + $0x129] sm:$0xff] %vm225_vm0, %v2338_v60  ;;  %v2337_v7 = vmax.f32 %v2267_v0, 0.0  ;;  %2553 = vrot.lane.b32.xlu1 %v2466_v8, %s4795_s25 }
 0x347   : > { %v2465_v48 = vld [vmem:[#allocation2 + $0x109] sm:$0xff] }
 0x348   : > { %v6252_v37 = vld [vmem:[#allocation2 + $0x110] sm:$0xff]  ;;  %2369 = vst.msk [vmem:[#allocation2 + $0x121] sm:$0xff] %vm225_vm0, %v2337_v7  ;;  %2551 = vrot.lane.b32.xlu0 %v2465_v48, %s4795_s25  ;;  %v6258_v36 = vld [vmem:[#allocation2 + $0x108] sm:$0xff] }
 0x349   : > { %2434 = vst.msk [vmem:[#allocation3 + $0xb8] sm:$0xff] %vm225_vm0, %v6252_v37  ;;  %v4701_v35 = vpop.f32.mrf.mxu0  ;;  %2433 = vst.msk [vmem:[#allocation3 + $0xb0] sm:$0xff] %vm225_vm0, %v6258_v36 }
 0x34a   : > { %v2282_v28 = vadd.f32 %v4701_v35, %v6074_v58  ;;  %v2636_v35 = vld [vmem:[#allocation2 + $0xa] sm:$0xff] }
 0x34b   : > { %v2276_v33 = vpop.f32.mrf.mxu0 }
 0x34c   : > { %v2340_v29 = vmax.f32 %v2282_v28, 0.0  ;;  %v2277_v17 = vadd.f32 %v6074_v58, %v2276_v33 }
 0x34d   : > { %v2468_v13 = vld [vmem:[#allocation2 + $0x129] sm:$0xff] }
 0x34e   : > { %2372 = vst.msk [vmem:[#allocation2 + $0x141] sm:$0xff] %vm225_vm0, %v2340_v29  ;;  %v2339_v18 = vmax.f32 %v2277_v17, 0.0  ;;  %2557 = vrot.lane.b32.xlu1 %v2468_v13, %s4795_s25  ;;  %v2635_v29 = vld [vmem:[#allocation2 + $0x2] sm:$0xff]  ;;  %v6308_v13 = vld [vmem:[#allocation2 + $0x1a] sm:$0xff] }
 0x34f   : > { %v2467_v42 = vld [vmem:[#allocation2 + $0x121] sm:$0xff] }
 0x350   : > { %v6266_v26 = vld [vmem:[#allocation2 + $0x128] sm:$0xff]  ;;  %2371 = vst.msk [vmem:[#allocation2 + $0x139] sm:$0xff] %vm225_vm0, %v2339_v18  ;;  %2555 = vrot.lane.b32.xlu0 %v2467_v42, %s4795_s25  ;;  %v6272_v27 = vld [vmem:[#allocation2 + $0x120] sm:$0xff]  ;;  %v6316_v42 = vld [vmem:[#allocation2 + $0x32] sm:$0xff] }
 0x351   : > { %2436 = vst.msk [vmem:[#allocation3 + $0xc8] sm:$0xff] %vm225_vm0, %v6266_v26  ;;  %v4704_v50 = vpop.f32.mrf.mxu0  ;;  %2435 = vst.msk [vmem:[#allocation3 + $0xc0] sm:$0xff] %vm225_vm0, %v6272_v27  ;;  %v6304_v17 = vld [vmem:[#allocation2 + $0x22] sm:$0xff]  ;;  %v6312_v18 = vld [vmem:[#allocation2 + $0x3a] sm:$0xff] }
 0x352   : > { %v2292_v3 = vadd.f32 %v4704_v50, %v6074_v58  ;;  %v6320_v50 = vld [vmem:[#allocation2 + $0x52] sm:$0xff] }
 0x353   : > { %v2286_v56 = vpop.f32.mrf.mxu0 }
 0x354   : > { %v2342_v63 = vmax.f32 %v2292_v3, 0.0  ;;  %v2287_v23 = vadd.f32 %v6074_v58, %v2286_v56  ;;  %v6324_v3 = vld [vmem:[#allocation2 + $0x4a] sm:$0xff] }
 0x355   : > { %v2470_v19 = vld [vmem:[#allocation2 + $0x141] sm:$0xff]  ;;  %v6328_v56 = vld [vmem:[#allocation2 + $0x6a] sm:$0xff] }
 0x356   : > { %2374 = vst.msk [vmem:[#allocation2 + $0x159] sm:$0xff] %vm225_vm0, %v2342_v63  ;;  %v2341_v49 = vmax.f32 %v2287_v23, 0.0  ;;  %2561 = vrot.lane.b32.xlu1 %v2470_v19, %s4795_s25  ;;  %v6332_v63 = vld [vmem:[#allocation2 + $0x62] sm:$0xff]  ;;  %v6340_v19 = vld [vmem:[#allocation2 + $0x7a] sm:$0xff] }
 0x357   : > { %v2469_v1 = vld [vmem:[#allocation2 + $0x139] sm:$0xff]  ;;  %v6336_v23 = vld [vmem:[#allocation2 + $0x82] sm:$0xff] }
 0x358   : > { %v6280_v25 = vld [vmem:[#allocation2 + $0x140] sm:$0xff]  ;;  %2373 = vst.msk [vmem:[#allocation2 + $0x151] sm:$0xff] %vm225_vm0, %v2341_v49  ;;  %2559 = vrot.lane.b32.xlu0 %v2469_v1, %s4795_s25  ;;  %v6286_v5 = vld [vmem:[#allocation2 + $0x138] sm:$0xff] }
 0x359   : > { %2438 = vst.msk [vmem:[#allocation3 + $0xd8] sm:$0xff] %vm225_vm0, %v6280_v25  ;;  %v4707_v30 = vpop.f32.mrf.mxu0  ;;  %2437 = vst.msk [vmem:[#allocation3 + $0xd0] sm:$0xff] %vm225_vm0, %v6286_v5  ;;  %v6344_v49 = vld [vmem:[#allocation2 + $0x9a] sm:$0xff]  ;;  %v6348_v1 = vld [vmem:[#allocation2 + $0x92] sm:$0xff] }
 0x35a   : > { %v2302_v6 = vadd.f32 %v4707_v30, %v6074_v58 }
 0x35b   : > { %v2296_v39 = vpop.f32.mrf.mxu0 }
 0x35c   : > { %v2344_v9 = vmax.f32 %v2302_v6, 0.0  ;;  %v2297_v52 = vadd.f32 %v6074_v58, %v2296_v39  ;;  %v6353_v6 = vld [vmem:[#allocation2 + $0xb2] sm:$0xff] }
 0x35d   : > { %v2472_v57 = vld [vmem:[#allocation2 + $0x159] sm:$0xff] }
 0x35e   : > { %2376 = vst.msk [vmem:[#allocation2 + $0x171] sm:$0xff] %vm225_vm0, %v2344_v9  ;;  %v2343_v55 = vmax.f32 %v2297_v52, 0.0  ;;  %2565 = vrot.lane.b32.xlu1 %v2472_v57, %s4795_s25  ;;  %v6358_v9 = vld [vmem:[#allocation2 + $0xaa] sm:$0xff] }
 0x35f   : > { %v2471_v60 = vld [vmem:[#allocation2 + $0x151] sm:$0xff] }
 0x360   : > { %v2408_v0 = vld [vmem:[#allocation2 + $0x158] sm:$0xff]  ;;  %2375 = vst.msk [vmem:[#allocation2 + $0x169] sm:$0xff] %vm225_vm0, %v2343_v55  ;;  %2563 = vrot.lane.b32.xlu0 %v2471_v60, %s4795_s25  ;;  %v2407_v8 = vld [vmem:[#allocation2 + $0x150] sm:$0xff]  ;;  %v6368_v60 = vld [vmem:[#allocation2 + $0xc2] sm:$0xff] }
 0x361   : > { %2440 = vst.msk [vmem:[#allocation3 + $0xe8] sm:$0xff] %vm225_vm0, %v2408_v0  ;;  %2439 = vst.msk [vmem:[#allocation3 + $0xe0] sm:$0xff] %vm225_vm0, %v2407_v8  ;;  %v6363_v57 = vld [vmem:[#allocation2 + $0xca] sm:$0xff]  ;;  %v2654_v8 = vld [vmem:[#allocation2 + $0xe2] sm:$0xff] }
 0x365   : > { %v2474_v7 = vld [vmem:[#allocation2 + $0x171] sm:$0xff] }
 0x366   : > { %2569 = vrot.lane.b32.xlu1 %v2474_v7, %s4795_s25 }
 0x367   : > { %v2473_v48 = vld [vmem:[#allocation2 + $0x169] sm:$0xff] }
 0x368   : > { %v2410_v28 = vld [vmem:[#allocation2 + $0x170] sm:$0xff]  ;;  %2567 = vrot.lane.b32.xlu0 %v2473_v48, %s4795_s25  ;;  %v2409_v33 = vld [vmem:[#allocation2 + $0x168] sm:$0xff]  ;;  %v2653_v48 = vld [vmem:[#allocation2 + $0xda] sm:$0xff] }
 0x369   : > { %2442 = vst.msk [vmem:[#allocation3 + $0xf8] sm:$0xff] %vm225_vm0, %v2410_v28  ;;  %2441 = vst.msk [vmem:[#allocation3 + $0xf0] sm:$0xff] %vm225_vm0, %v2409_v33  ;;  %v2656_v28 = vld [vmem:[#allocation2 + $0xfa] sm:$0xff] }
 0x36a   : > { %2701 = vrot.lane.b32.xlu1 %v2636_v35, %s4796_s26 }
 0x36c   : > { %2699 = vrot.lane.b32.xlu0 %v2635_v29, %s4796_s26  ;;  %v2655_v29 = vld [vmem:[#allocation2 + $0xf2] sm:$0xff] }
 0x36e   : > { %2705 = vrot.lane.b32.xlu1 %v6304_v17, %s4796_s26 }
 0x370   : > { %2703 = vrot.lane.b32.xlu0 %v6308_v13, %s4796_s26 }
 0x372   : > { %2709 = vrot.lane.b32.xlu1 %v6312_v18, %s4796_s26 }
 0x374   : > { %2707 = vrot.lane.b32.xlu0 %v6316_v42, %s4796_s26 }
 0x376   : > { %2713 = vrot.lane.b32.xlu1 %v6320_v50, %s4796_s26 }
 0x378   : > { %2711 = vrot.lane.b32.xlu0 %v6324_v3, %s4796_s26 }
 0x37a   : > { %2717 = vrot.lane.b32.xlu1 %v6328_v56, %s4796_s26 }
 0x37c   : > { %2715 = vrot.lane.b32.xlu0 %v6332_v63, %s4796_s26 }
 0x37e   : > { %2721 = vrot.lane.b32.xlu1 %v6336_v23, %s4796_s26 }
 0x380   : > { %2719 = vrot.lane.b32.xlu0 %v6340_v19, %s4796_s26 }
 0x382   : > { %2725 = vrot.lane.b32.xlu1 %v6344_v49, %s4796_s26 }
 0x384   : > { %v2514_v30 = vpop.permute.xlu1 %2513  ;;  %2723 = vrot.lane.b32.xlu0 %v6348_v1, %s4796_s26 }
 0x385   : > { %2606 = vst.msk [vmem:[#allocation3 + $0x18] sm:$0xff] %vm560_vm3, %v2514_v30 }
 0x386   : > { %v2512_v39 = vpop.permute.xlu0 %2511  ;;  %2729 = vrot.lane.b32.xlu1 %v6353_v6, %s4796_s26 }
 0x387   : > { %2605 = vst.msk [vmem:[#allocation3 + $0x10] sm:$0xff] %vm560_vm3, %v2512_v39  ;;  %v2658_v39 = vld [vmem:[#allocation2 + $0x112] sm:$0xff] }
 0x388   : > { %v2518_v52 = vpop.permute.xlu1 %2517  ;;  %2727 = vrot.lane.b32.xlu0 %v6358_v9, %s4796_s26 }
 0x389   : > { %2608 = vst.msk [vmem:[#allocation3 + $0x28] sm:$0xff] %vm560_vm3, %v2518_v52 }
 0x38a   : > { %2733 = vrot.lane.b32.xlu1 %v6363_v57, %s4796_s26  ;;  %v2516_v55 = vpop.permute.xlu0 %2515 }
 0x38b   : > { %2607 = vst.msk [vmem:[#allocation3 + $0x20] sm:$0xff] %vm560_vm3, %v2516_v55  ;;  %v2657_v55 = vld [vmem:[#allocation2 + $0x10a] sm:$0xff] }
 0x38c   : > { %v2522_v0 = vpop.permute.xlu1 %2521  ;;  %2731 = vrot.lane.b32.xlu0 %v6368_v60, %s4796_s26 }
 0x38d   : > { %2610 = vst.msk [vmem:[#allocation3 + $0x38] sm:$0xff] %vm560_vm3, %v2522_v0 }
 0x38e   : > { %2737 = vrot.lane.b32.xlu1 %v2654_v8, %s4796_s26  ;;  %v2520_v7 = vpop.permute.xlu0 %2519  ;;  %v2660_v8 = vld [vmem:[#allocation2 + $0x12a] sm:$0xff] }
 0x38f   : > { %2609 = vst.msk [vmem:[#allocation3 + $0x30] sm:$0xff] %vm560_vm3, %v2520_v7 }
 0x390   : > { %v2526_v35 = vpop.permute.xlu1 %2525  ;;  %2735 = vrot.lane.b32.xlu0 %v2653_v48, %s4796_s26  ;;  %v2659_v48 = vld [vmem:[#allocation2 + $0x122] sm:$0xff] }
 0x391   : > { %2612 = vst.msk [vmem:[#allocation3 + $0x48] sm:$0xff] %vm560_vm3, %v2526_v35 }
 0x392   : > { %2741 = vrot.lane.b32.xlu1 %v2656_v28, %s4796_s26  ;;  %v2524_v33 = vpop.permute.xlu0 %2523  ;;  %v2662_v28 = vld [vmem:[#allocation2 + $0x142] sm:$0xff] }
 0x393   : > { %2611 = vst.msk [vmem:[#allocation3 + $0x40] sm:$0xff] %vm560_vm3, %v2524_v33 }
 0x394   : > { %v2530_v30 = vpop.permute.xlu1 %2529  ;;  %2739 = vrot.lane.b32.xlu0 %v2655_v29, %s4796_s26  ;;  %v2661_v29 = vld [vmem:[#allocation2 + $0x13a] sm:$0xff] }
 0x395   : > { %2614 = vst.msk [vmem:[#allocation3 + $0x58] sm:$0xff] %vm560_vm3, %v2530_v30 }
 0x396   : > { %2745 = vrot.lane.b32.xlu1 %v2658_v39, %s4796_s26  ;;  %v2528_v52 = vpop.permute.xlu0 %2527  ;;  %v2664_v39 = vld [vmem:[#allocation2 + $0x15a] sm:$0xff] }
 0x397   : > { %2613 = vst.msk [vmem:[#allocation3 + $0x50] sm:$0xff] %vm560_vm3, %v2528_v52 }
 0x398   : > { %v2534_v0 = vpop.permute.xlu1 %2533  ;;  %2743 = vrot.lane.b32.xlu0 %v2657_v55, %s4796_s26  ;;  %v2663_v55 = vld [vmem:[#allocation2 + $0x152] sm:$0xff] }
 0x399   : > { %2616 = vst.msk [vmem:[#allocation3 + $0x68] sm:$0xff] %vm560_vm3, %v2534_v0  ;;  %v2666_v0 = vld [vmem:[#allocation2 + $0x172] sm:$0xff] }
 0x39a   : > { %2749 = vrot.lane.b32.xlu1 %v2660_v8, %s4796_s26  ;;  %v2532_v7 = vpop.permute.xlu0 %2531  ;;  %v2665_v8 = vld [vmem:[#allocation2 + $0x16a] sm:$0xff] }
 0x39b   : > { %2615 = vst.msk [vmem:[#allocation3 + $0x60] sm:$0xff] %vm560_vm3, %v2532_v7 }
 0x39c   : > { %v2538_v35 = vpop.permute.xlu1 %2537  ;;  %2747 = vrot.lane.b32.xlu0 %v2659_v48, %s4796_s26 }
 0x39d   : > { %2618 = vst.msk [vmem:[#allocation3 + $0x78] sm:$0xff] %vm560_vm3, %v2538_v35 }
 0x39e   : > { %2753 = vrot.lane.b32.xlu1 %v2662_v28, %s4796_s26  ;;  %v2536_v33 = vpop.permute.xlu0 %2535 }
 0x39f   : > { %2617 = vst.msk [vmem:[#allocation3 + $0x70] sm:$0xff] %vm560_vm3, %v2536_v33 }
 0x3a0   : > { %v2542_v30 = vpop.permute.xlu1 %2541  ;;  %2751 = vrot.lane.b32.xlu0 %v2661_v29, %s4796_s26 }
 0x3a1   : > { %2620 = vst.msk [vmem:[#allocation3 + $0x88] sm:$0xff] %vm560_vm3, %v2542_v30 }
 0x3a2   : > { %2757 = vrot.lane.b32.xlu1 %v2664_v39, %s4796_s26  ;;  %v2540_v52 = vpop.permute.xlu0 %2539 }
 0x3a3   : > { %2619 = vst.msk [vmem:[#allocation3 + $0x80] sm:$0xff] %vm560_vm3, %v2540_v52 }
 0x3a4   : > { %2755 = vrot.lane.b32.xlu0 %v2663_v55, %s4796_s26 }
 0x3a6   : > { %2761 = vrot.lane.b32.xlu1 %v2666_v0, %s4796_s26 }
 0x3a8   : > { %v2546_v7 = vpop.permute.xlu1 %2545  ;;  %2759 = vrot.lane.b32.xlu0 %v2665_v8, %s4796_s26 }
 0x3a9   : > { %2622 = vst.msk [vmem:[#allocation3 + $0x98] sm:$0xff] %vm560_vm3, %v2546_v7 }
 0x3aa   : > { %2893 = vrot.lane.b32.xlu1 %v6095_v43, %s4797_s27  ;;  %v2544_v48 = vpop.permute.xlu0 %2543 }
 0x3ab   : > { %2621 = vst.msk [vmem:[#allocation3 + $0x90] sm:$0xff] %vm560_vm3, %v2544_v48 }
 0x3ac   : > { %2891 = vrot.lane.b32.xlu0 %v6103_v44, %s4797_s27 }
 0x3ae   : > { %2897 = vrot.lane.b32.xlu1 %v6115_v31, %s4797_s27 }
 0x3b0   : > { %v2550_v35 = vpop.permute.xlu1 %2549  ;;  %2895 = vrot.lane.b32.xlu0 %v6123_v34, %s4797_s27 }
 0x3b1   : > { %2624 = vst.msk [vmem:[#allocation3 + $0xa8] sm:$0xff] %vm560_vm3, %v2550_v35 }
 0x3b2   : > { %2901 = vrot.lane.b32.xlu1 %v6135_v16, %s4797_s27  ;;  %v2548_v28 = vpop.permute.xlu0 %2547 }
 0x3b3   : > { %2623 = vst.msk [vmem:[#allocation3 + $0xa0] sm:$0xff] %vm560_vm3, %v2548_v28 }
 0x3b4   : > { %2899 = vrot.lane.b32.xlu0 %v6143_v12, %s4797_s27 }
 0x3b6   : > { %2905 = vrot.lane.b32.xlu1 %v6155_v4, %s4797_s27 }
 0x3b8   : > { %v2554_v43 = vpop.permute.xlu1 %2553  ;;  %2903 = vrot.lane.b32.xlu0 %v6163_v51, %s4797_s27 }
 0x3b9   : > { %2626 = vst.msk [vmem:[#allocation3 + $0xb8] sm:$0xff] %vm560_vm3, %v2554_v43 }
 0x3ba   : > { %2909 = vrot.lane.b32.xlu1 %v6172_v61, %s4797_s27  ;;  %v2552_v44 = vpop.permute.xlu0 %2551 }
 0x3bb   : > { %2625 = vst.msk [vmem:[#allocation3 + $0xb0] sm:$0xff] %vm560_vm3, %v2552_v44 }
 0x3bc   : > { %2907 = vrot.lane.b32.xlu0 %v6180_v62, %s4797_s27 }
 0x3be   : > { %2913 = vrot.lane.b32.xlu1 %v6186_v45, %s4797_s27 }
 0x3c0   : > { %v2558_v33 = vpop.permute.xlu1 %2557  ;;  %2911 = vrot.lane.b32.xlu0 %v6192_v38, %s4797_s27 }
 0x3c1   : > { %2628 = vst.msk [vmem:[#allocation3 + $0xc8] sm:$0xff] %vm560_vm3, %v2558_v33  ;;  %v4013_v33 = vld [vmem:[%s7118_s3 + $0x10] sm:$0xff] }
 0x3c2   : > { %2917 = vrot.lane.b32.xlu1 %v6198_v21, %s4797_s27  ;;  %v2556_v29 = vpop.permute.xlu0 %2555 }
 0x3c3   : > { %2627 = vst.msk [vmem:[#allocation3 + $0xc0] sm:$0xff] %vm560_vm3, %v2556_v29 }
 0x3c4   : > { %2915 = vrot.lane.b32.xlu0 %v6204_v22, %s4797_s27 }
 0x3c6   : > { %2921 = vrot.lane.b32.xlu1 %v6210_v11, %s4797_s27 }
 0x3c8   : > { %v2562_v30 = vpop.permute.xlu1 %2561  ;;  %2919 = vrot.lane.b32.xlu0 %v6216_v14, %s4797_s27 }
 0x3c9   : > { %2630 = vst.msk [vmem:[#allocation3 + $0xd8] sm:$0xff] %vm560_vm3, %v2562_v30 }
 0x3ca   : > { %2925 = vrot.lane.b32.xlu1 %v6224_v20, %s4797_s27  ;;  %v2560_v39 = vpop.permute.xlu0 %2559 }
 0x3cb   : > { %2629 = vst.msk [vmem:[#allocation3 + $0xd0] sm:$0xff] %vm560_vm3, %v2560_v39  ;;  %v4011_v39 = vld [vmem:[%s7118_s3] sm:$0xff] }
 0x3cc   : > { %2923 = vrot.lane.b32.xlu0 %v6230_v15, %s4797_s27 }
 0x3ce   : > { %2929 = vrot.lane.b32.xlu1 %v6238_v40, %s4797_s27 }
 0x3d0   : > { %v2566_v52 = vpop.permute.xlu1 %2565  ;;  %2927 = vrot.lane.b32.xlu0 %v6244_v54, %s4797_s27 }
 0x3d1   : > { %2632 = vst.msk [vmem:[#allocation3 + $0xe8] sm:$0xff] %vm560_vm3, %v2566_v52 }
 0x3d2   : > { %2933 = vrot.lane.b32.xlu1 %v6252_v37, %s4797_s27  ;;  %v2564_v55 = vpop.permute.xlu0 %2563 }
 0x3d3   : > { %2631 = vst.msk [vmem:[#allocation3 + $0xe0] sm:$0xff] %vm560_vm3, %v2564_v55 }
 0x3d4   : > { %2931 = vrot.lane.b32.xlu0 %v6258_v36, %s4797_s27 }
 0x3d6   : > { %2937 = vrot.lane.b32.xlu1 %v6266_v26, %s4797_s27 }
 0x3d8   : > { %v2570_v0 = vpop.permute.xlu1 %2569  ;;  %2935 = vrot.lane.b32.xlu0 %v6272_v27, %s4797_s27 }
 0x3d9   : > { %2634 = vst.msk [vmem:[#allocation3 + $0xf8] sm:$0xff] %vm560_vm3, %v2570_v0 }
 0x3da   : > { %2941 = vrot.lane.b32.xlu1 %v6280_v25, %s4797_s27  ;;  %v2568_v8 = vpop.permute.xlu0 %2567  ;;  %v4710_v25 = vpop.f32.mrf.mxu0 }
 0x3db   : > { %2633 = vst.msk [vmem:[#allocation3 + $0xf0] sm:$0xff] %vm560_vm3, %v2568_v8 }
 0x3dc   : > { %v2702_v7 = vpop.permute.xlu1 %2701  ;;  %2939 = vrot.lane.b32.xlu0 %v6286_v5, %s4797_s27  ;;  %v2312_v5 = vadd.f32 %v4710_v25, %v6074_v58  ;;  %v2306_v35 = vpop.f32.mrf.mxu0 }
 0x3dd   : > { %2796 = vst.msk [vmem:[#allocation3 + $0x8] sm:$0xff] %vm753_vm4, %v2702_v7  ;;  %v2307_v43 = vadd.f32 %v6074_v58, %v2306_v35  ;;  %v4015_v58 = vld [vmem:[%s7118_s3 + $0x20] sm:$0xf] }
 0x3de   : > { %3085 = vrot.lane.b32.xlu1 %v6087_v41, %s4798_s28  ;;  %v2700_v26 = vpop.permute.xlu0 %2699  ;;  %v2346_v28 = vmax.f32 %v2312_v5, 0.0  ;;  %4711 = vmatprep.subr.msk.mxu1 %vm2086_vm8, %v4015_v58 }
 0x3df   : > { %2795 = vst.msk [vmem:[#allocation3] sm:$0xff] %vm753_vm4, %v2700_v26  ;;  %4712 = vmatpush3.msk.msra.mxu1 %vm2086_vm8, %v4015_v58 }
 0x3e0   : > { %v2706_v27 = vpop.permute.xlu1 %2705  ;;  %3083 = vrot.lane.b32.xlu0 %v6093_v2, %s4798_s28  ;;  %2378 = vst.msk [vmem:[#allocation2 + $0x189] sm:$0xff] %vm225_vm0, %v2346_v28 }
 0x3e1   : > { %2798 = vst.msk [vmem:[#allocation3 + $0x18] sm:$0xff] %vm753_vm4, %v2706_v27 }
 0x3e2   : > { %3277 = vrot.lane.b32.xlu1 %v6304_v17, %s4799_s29  ;;  %v2704_v48 = vpop.permute.xlu0 %2703  ;;  %v2345_v17 = vmax.f32 %v2307_v43, 0.0 }
 0x3e3   : > { %2797 = vst.msk [vmem:[#allocation3 + $0x10] sm:$0xff] %vm753_vm4, %v2704_v48 }
 0x3e4   : > { %v2710_v41 = vpop.permute.xlu1 %2709  ;;  %3275 = vrot.lane.b32.xlu0 %v6308_v13, %s4799_s29  ;;  %2377 = vst.msk [vmem:[#allocation2 + $0x181] sm:$0xff] %vm225_vm0, %v2345_v17 }
 0x3e5   : > { %2800 = vst.msk [vmem:[#allocation3 + $0x28] sm:$0xff] %vm753_vm4, %v2710_v41 }
 0x3e6   : > { %3469 = vrot.lane.b32.xlu1 %v6115_v31, %s4800_s30  ;;  %v2708_v2 = vpop.permute.xlu0 %2707 }
 0x3e7   : > { %2799 = vst.msk [vmem:[#allocation3 + $0x20] sm:$0xff] %vm753_vm4, %v2708_v2 }
 0x3e8   : > { %v2714_v44 = vpop.permute.xlu1 %2713  ;;  %3467 = vrot.lane.b32.xlu0 %v6123_v34, %s4800_s30  ;;  %v4014_v34 = vld [vmem:[%s7118_s3 + $0x18] sm:$0xff] }
 0x3e9   : > { %2802 = vst.msk [vmem:[#allocation3 + $0x38] sm:$0xff] %vm753_vm4, %v2714_v44  ;;  %4713 = vmatprep.subr.mxu1 %v4014_v34 }
 0x3ea   : > { %3087 = vrot.lane.b32.xlu1 %v6113_v53, %s4798_s28  ;;  %v2712_v31 = vpop.permute.xlu0 %2711  ;;  %4714 = vmatpush3.msra.mxu1 %v4014_v34 }
 0x3eb   : > { %2801 = vst.msk [vmem:[#allocation3 + $0x30] sm:$0xff] %vm753_vm4, %v2712_v31  ;;  %4715 = vmatprep.subr.mxu1 %v4013_v33  ;;  %v3029_v31 = vld [vmem:[#allocation2 + $0x91] sm:$0xff] }
 0x3ec   : > { %v2718_v13 = vpop.permute.xlu1 %2717  ;;  %3659 = vrot.lane.b32.xlu0 %v6113_v53, %s4801_s6  ;;  %4716 = vmatpush3.msra.mxu1 %v4013_v33  ;;  %v4012_v53 = vld [vmem:[%s7118_s3 + $0x8] sm:$0xff] }
 0x3ed   : > { %2804 = vst.msk [vmem:[#allocation3 + $0x48] sm:$0xff] %vm753_vm4, %v2718_v13  ;;  %4717 = vmatprep.subr.mxu1 %v4012_v53 }
 0x3ee   : > { %3851 = vrot.lane.b32.xlu1 %v6316_v42, %s4802_s17  ;;  %v2716_v29 = vpop.permute.xlu0 %2715  ;;  %4718 = vmatpush3.msra.mxu1 %v4012_v53 }
 0x3ef   : > { %2803 = vst.msk [vmem:[#allocation3 + $0x40] sm:$0xff] %vm753_vm4, %v2716_v29  ;;  %4719 = vmatprep.subr.mxu1 %v4011_v39 }
 0x3f0   : > { %v2722_v30 = vpop.permute.xlu1 %2721  ;;  %3661 = vrot.lane.b32.xlu0 %v6105_v47, %s4801_s6  ;;  %4720 = vmatpush3.msra.mxu1 %v4011_v39 }
 0x3f1   : > { %2806 = vst.msk [vmem:[#allocation3 + $0x58] sm:$0xff] %vm753_vm4, %v2722_v30 }
 0x3f2   : > { %3279 = vrot.lane.b32.xlu1 %v6316_v42, %s4799_s29  ;;  %v2720_v52 = vpop.permute.xlu0 %2719 }
 0x3f3   : > { %2805 = vst.msk [vmem:[#allocation3 + $0x50] sm:$0xff] %vm753_vm4, %v2720_v52  ;;  %v3031_v52 = vld [vmem:[#allocation2 + $0xa9] sm:$0xff] }
 0x3f4   : > { %v2726_v55 = vpop.permute.xlu1 %2725  ;;  %3089 = vrot.lane.b32.xlu0 %v6105_v47, %s4798_s28 }
 0x3f5   : > { %2808 = vst.msk [vmem:[#allocation3 + $0x68] sm:$0xff] %vm753_vm4, %v2726_v55 }
 0x3f6   : > { %3281 = vrot.lane.b32.xlu1 %v6312_v18, %s4799_s29  ;;  %v2724_v0 = vpop.permute.xlu0 %2723 }
 0x3f7   : > { %2807 = vst.msk [vmem:[#allocation3 + $0x60] sm:$0xff] %vm753_vm4, %v2724_v0 }
 0x3f8   : > { %v2730_v8 = vpop.permute.xlu1 %2729  ;;  %3853 = vrot.lane.b32.xlu0 %v6312_v18, %s4802_s17 }
 0x3f9   : > { %2810 = vst.msk [vmem:[#allocation3 + $0x78] sm:$0xff] %vm753_vm4, %v2730_v8 }
 0x3fa   : > { %3473 = vrot.lane.b32.xlu1 %v6135_v16, %s4800_s30  ;;  %v2728_v42 = vpop.permute.xlu0 %2727 }
 0x3fb   : > { %2809 = vst.msk [vmem:[#allocation3 + $0x70] sm:$0xff] %vm753_vm4, %v2728_v42 }
 0x3fc   : > { %v2734_v47 = vpop.permute.xlu1 %2733  ;;  %3471 = vrot.lane.b32.xlu0 %v6143_v12, %s4800_s30 }
 0x3fd   : > { %2812 = vst.msk [vmem:[#allocation3 + $0x88] sm:$0xff] %vm753_vm4, %v2734_v47 }
 0x3fe   : > { %3091 = vrot.lane.b32.xlu1 %v6133_v10, %s4798_s28  ;;  %v2732_v7 = vpop.permute.xlu0 %2731 }
 0x3ff   : > { %2811 = vst.msk [vmem:[#allocation3 + $0x80] sm:$0xff] %vm753_vm4, %v2732_v7 }
 0x400   : > { %v2738_v18 = vpop.permute.xlu1 %2737  ;;  %3663 = vrot.lane.b32.xlu0 %v6133_v10, %s4801_s6 }
 0x401   : > { %2814 = vst.msk [vmem:[#allocation3 + $0x98] sm:$0xff] %vm753_vm4, %v2738_v18 }
 0x402   : > { %3855 = vrot.lane.b32.xlu1 %v6324_v3, %s4802_s17  ;;  %v2736_v16 = vpop.permute.xlu0 %2735 }
 0x403   : > { %2813 = vst.msk [vmem:[#allocation3 + $0x90] sm:$0xff] %vm753_vm4, %v2736_v16  ;;  %v3033_v16 = vld [vmem:[#allocation2 + $0xc1] sm:$0xff] }
 0x404   : > { %v2742_v12 = vpop.permute.xlu1 %2741  ;;  %3665 = vrot.lane.b32.xlu0 %v6125_v24, %s4801_s6 }
 0x405   : > { %2816 = vst.msk [vmem:[#allocation3 + $0xa8] sm:$0xff] %vm753_vm4, %v2742_v12 }
 0x406   : > { %3283 = vrot.lane.b32.xlu1 %v6324_v3, %s4799_s29  ;;  %v2740_v26 = vpop.permute.xlu0 %2739 }
 0x407   : > { %2815 = vst.msk [vmem:[#allocation3 + $0xa0] sm:$0xff] %vm753_vm4, %v2740_v26 }
 0x408   : > { %v2746_v10 = vpop.permute.xlu1 %2745  ;;  %3093 = vrot.lane.b32.xlu0 %v6125_v24, %s4798_s28 }
 0x409   : > { %2818 = vst.msk [vmem:[#allocation3 + $0xb8] sm:$0xff] %vm753_vm4, %v2746_v10 }
 0x40a   : > { %3285 = vrot.lane.b32.xlu1 %v6320_v50, %s4799_s29  ;;  %v2744_v27 = vpop.permute.xlu0 %2743 }
 0x40b   : > { %2817 = vst.msk [vmem:[#allocation3 + $0xb0] sm:$0xff] %vm753_vm4, %v2744_v27 }
 0x40c   : > { %v2750_v25 = vpop.permute.xlu1 %2749  ;;  %3857 = vrot.lane.b32.xlu0 %v6320_v50, %s4802_s17 }
 0x40d   : > { %2820 = vst.msk [vmem:[#allocation3 + $0xc8] sm:$0xff] %vm753_vm4, %v2750_v25 }
 0x40e   : > { %3477 = vrot.lane.b32.xlu1 %v6155_v4, %s4800_s30  ;;  %v2748_v3 = vpop.permute.xlu0 %2747 }
 0x40f   : > { %2819 = vst.msk [vmem:[#allocation3 + $0xc0] sm:$0xff] %vm753_vm4, %v2748_v3 }
 0x410   : > { %v2754_v24 = vpop.permute.xlu1 %2753  ;;  %3475 = vrot.lane.b32.xlu0 %v6163_v51, %s4800_s30 }
 0x411   : > { %2822 = vst.msk [vmem:[#allocation3 + $0xd8] sm:$0xff] %vm753_vm4, %v2754_v24  ;;  %v3800_v24 = vld [vmem:[#allocation2 + $0xca] sm:$0xff] }
 0x412   : > { %3095 = vrot.lane.b32.xlu1 %v6153_v32, %s4798_s28  ;;  %v2752_v48 = vpop.permute.xlu0 %2751 }
 0x413   : > { %2821 = vst.msk [vmem:[#allocation3 + $0xd0] sm:$0xff] %vm753_vm4, %v2752_v48 }
 0x414   : > { %v2758_v50 = vpop.permute.xlu1 %2757  ;;  %3667 = vrot.lane.b32.xlu0 %v6153_v32, %s4801_s6 }
 0x415   : > { %2824 = vst.msk [vmem:[#allocation3 + $0xe8] sm:$0xff] %vm753_vm4, %v2758_v50 }
 0x416   : > { %3859 = vrot.lane.b32.xlu1 %v6332_v63, %s4802_s17  ;;  %v2756_v4 = vpop.permute.xlu0 %2755 }
 0x417   : > { %2823 = vst.msk [vmem:[#allocation3 + $0xe0] sm:$0xff] %vm753_vm4, %v2756_v4 }
 0x418   : > { %v2762_v51 = vpop.permute.xlu1 %2761  ;;  %3669 = vrot.lane.b32.xlu0 %v6145_v46, %s4801_s6 }
 0x419   : > { %2826 = vst.msk [vmem:[#allocation3 + $0xf8] sm:$0xff] %vm753_vm4, %v2762_v51 }
 0x41a   : > { %3287 = vrot.lane.b32.xlu1 %v6332_v63, %s4799_s29  ;;  %v2760_v5 = vpop.permute.xlu0 %2759 }
 0x41b   : > { %2825 = vst.msk [vmem:[#allocation3 + $0xf0] sm:$0xff] %vm753_vm4, %v2760_v5 }
 0x41c   : > { %v2894_v32 = vpop.permute.xlu1 %2893  ;;  %3097 = vrot.lane.b32.xlu0 %v6145_v46, %s4798_s28 }
 0x41d   : > { %2988 = vst.msk [vmem:[#allocation3 + $0x8] sm:$0xff] %vm946_vm5, %v2894_v32 }
 0x41e   : > { %3289 = vrot.lane.b32.xlu1 %v6328_v56, %s4799_s29  ;;  %v2892_v35 = vpop.permute.xlu0 %2891 }
 0x41f   : > { %2987 = vst.msk [vmem:[#allocation3] sm:$0xff] %vm946_vm5, %v2892_v35 }
 0x420   : > { %v2898_v41 = vpop.permute.xlu1 %2897  ;;  %3861 = vrot.lane.b32.xlu0 %v6328_v56, %s4802_s17 }
 0x421   : > { %2990 = vst.msk [vmem:[#allocation3 + $0x18] sm:$0xff] %vm946_vm5, %v2898_v41 }
 0x422   : > { %3481 = vrot.lane.b32.xlu1 %v6172_v61, %s4800_s30  ;;  %v2896_v63 = vpop.permute.xlu0 %2895 }
 0x423   : > { %2989 = vst.msk [vmem:[#allocation3 + $0x10] sm:$0xff] %vm946_vm5, %v2896_v63 }
 0x424   : > { %v2902_v46 = vpop.permute.xlu1 %2901  ;;  %3479 = vrot.lane.b32.xlu0 %v6180_v62, %s4800_s30  ;;  %v3602_v62 = vld [vmem:[#allocation2 + $0x81] sm:$0xff] }
 0x425   : > { %2992 = vst.msk [vmem:[#allocation3 + $0x28] sm:$0xff] %vm946_vm5, %v2902_v46 }
 0x426   : > { %3099 = vrot.lane.b32.xlu1 %v6170_v59, %s4798_s28  ;;  %v2900_v28 = vpop.permute.xlu0 %2899 }
 0x427   : > { %2991 = vst.msk [vmem:[#allocation3 + $0x20] sm:$0xff] %vm946_vm5, %v2900_v28  ;;  %v3228_v28 = vld [vmem:[#allocation2 + $0xe2] sm:$0xff] }
 0x428   : > { %v2906_v56 = vpop.permute.xlu1 %2905  ;;  %3671 = vrot.lane.b32.xlu0 %v6170_v59, %s4801_s6 }
 0x429   : > { %2994 = vst.msk [vmem:[#allocation3 + $0x38] sm:$0xff] %vm946_vm5, %v2906_v56 }
 0x42a   : > { %3863 = vrot.lane.b32.xlu1 %v6340_v19, %s4802_s17  ;;  %v2904_v61 = vpop.permute.xlu0 %2903 }
 0x42b   : > { %2993 = vst.msk [vmem:[#allocation3 + $0x30] sm:$0xff] %vm946_vm5, %v2904_v61 }
 0x42c   : > { %v2910_v43 = vpop.permute.xlu1 %2909  ;;  %3673 = vrot.lane.b32.xlu0 %v3602_v62, %s4801_s6 }
 0x42d   : > { %2996 = vst.msk [vmem:[#allocation3 + $0x48] sm:$0xff] %vm946_vm5, %v2910_v43 }
 0x42e   : > { %3291 = vrot.lane.b32.xlu1 %v6340_v19, %s4799_s29  ;;  %v2908_v2 = vpop.permute.xlu0 %2907 }
 0x42f   : > { %2995 = vst.msk [vmem:[#allocation3 + $0x40] sm:$0xff] %vm946_vm5, %v2908_v2 }
 0x430   : > { %v2914_v59 = vpop.permute.xlu1 %2913  ;;  %3101 = vrot.lane.b32.xlu0 %v3602_v62, %s4798_s28 }
 0x431   : > { %2998 = vst.msk [vmem:[#allocation3 + $0x58] sm:$0xff] %vm946_vm5, %v2914_v59  ;;  %v3037_v59 = vld [vmem:[#allocation2 + $0xf1] sm:$0xff] }
 0x432   : > { %3293 = vrot.lane.b32.xlu1 %v6336_v23, %s4799_s29  ;;  %v2912_v17 = vpop.permute.xlu0 %2911 }
 0x433   : > { %2997 = vst.msk [vmem:[#allocation3 + $0x50] sm:$0xff] %vm946_vm5, %v2912_v17 }
 0x434   : > { %v2918_v44 = vpop.permute.xlu1 %2917  ;;  %3865 = vrot.lane.b32.xlu0 %v6336_v23, %s4802_s17 }
 0x435   : > { %3000 = vst.msk [vmem:[#allocation3 + $0x68] sm:$0xff] %vm946_vm5, %v2918_v44 }
 0x436   : > { %3485 = vrot.lane.b32.xlu1 %v6186_v45, %s4800_s30  ;;  %v2916_v19 = vpop.permute.xlu0 %2915 }
 0x437   : > { %2999 = vst.msk [vmem:[#allocation3 + $0x60] sm:$0xff] %vm946_vm5, %v2916_v19 }
 0x438   : > { %v2922_v58 = vpop.permute.xlu1 %2921  ;;  %3483 = vrot.lane.b32.xlu0 %v6192_v38, %s4800_s30  ;;  %v3604_v38 = vld [vmem:[#allocation2 + $0x99] sm:$0xff] }
 0x439   : > { %3002 = vst.msk [vmem:[#allocation3 + $0x78] sm:$0xff] %vm946_vm5, %v2922_v58 }
 0x43a   : > { %3103 = vrot.lane.b32.xlu1 %v3029_v31, %s4798_s28  ;;  %v2920_v34 = vpop.permute.xlu0 %2919 }
 0x43b   : > { %3001 = vst.msk [vmem:[#allocation3 + $0x70] sm:$0xff] %vm946_vm5, %v2920_v34 }
 0x43c   : > { %v2926_v23 = vpop.permute.xlu1 %2925  ;;  %3675 = vrot.lane.b32.xlu0 %v3029_v31, %s4801_s6 }
 0x43d   : > { %3004 = vst.msk [vmem:[#allocation3 + $0x88] sm:$0xff] %vm946_vm5, %v2926_v23 }
 0x43e   : > { %3867 = vrot.lane.b32.xlu1 %v6348_v1, %s4802_s17  ;;  %v2924_v45 = vpop.permute.xlu0 %2923 }
 0x43f   : > { %3003 = vst.msk [vmem:[#allocation3 + $0x80] sm:$0xff] %vm946_vm5, %v2924_v45  ;;  %v3230_v45 = vld [vmem:[#allocation2 + $0xfa] sm:$0xff] }
 0x440   : > { %v2930_v13 = vpop.permute.xlu1 %2929  ;;  %3677 = vrot.lane.b32.xlu0 %v3604_v38, %s4801_s6 }
 0x441   : > { %3006 = vst.msk [vmem:[#allocation3 + $0x98] sm:$0xff] %vm946_vm5, %v2930_v13 }
 0x442   : > { %3295 = vrot.lane.b32.xlu1 %v6348_v1, %s4799_s29  ;;  %v2928_v33 = vpop.permute.xlu0 %2927 }
 0x443   : > { %3005 = vst.msk [vmem:[#allocation3 + $0x90] sm:$0xff] %vm946_vm5, %v2928_v33 }
 0x444   : > { %v2934_v29 = vpop.permute.xlu1 %2933  ;;  %3105 = vrot.lane.b32.xlu0 %v3604_v38, %s4798_s28 }
 0x445   : > { %3008 = vst.msk [vmem:[#allocation3 + $0xa8] sm:$0xff] %vm946_vm5, %v2934_v29 }
 0x446   : > { %3297 = vrot.lane.b32.xlu1 %v6344_v49, %s4799_s29  ;;  %v2932_v53 = vpop.permute.xlu0 %2931 }
 0x447   : > { %3007 = vst.msk [vmem:[#allocation3 + $0xa0] sm:$0xff] %vm946_vm5, %v2932_v53 }
 0x448   : > { %v2938_v30 = vpop.permute.xlu1 %2937  ;;  %3869 = vrot.lane.b32.xlu0 %v6344_v49, %s4802_s17 }
 0x449   : > { %3010 = vst.msk [vmem:[#allocation3 + $0xb8] sm:$0xff] %vm946_vm5, %v2938_v30  ;;  %v3039_v30 = vld [vmem:[#allocation2 + $0x109] sm:$0xff] }
 0x44a   : > { %3489 = vrot.lane.b32.xlu1 %v6198_v21, %s4800_s30  ;;  %v2936_v1 = vpop.permute.xlu0 %2935 }
 0x44b   : > { %3009 = vst.msk [vmem:[#allocation3 + $0xb0] sm:$0xff] %vm946_vm5, %v2936_v1 }
 0x44c   : > { %v2942_v39 = vpop.permute.xlu1 %2941  ;;  %3487 = vrot.lane.b32.xlu0 %v6204_v22, %s4800_s30  ;;  %v3606_v22 = vld [vmem:[#allocation2 + $0xb1] sm:$0xff] }
 0x44d   : > { %3012 = vst.msk [vmem:[#allocation3 + $0xc8] sm:$0xff] %vm946_vm5, %v2942_v39 }
 0x44e   : > { %3107 = vrot.lane.b32.xlu1 %v3031_v52, %s4798_s28  ;;  %v2940_v55 = vpop.permute.xlu0 %2939 }
 0x44f   : > { %3011 = vst.msk [vmem:[#allocation3 + $0xc0] sm:$0xff] %vm946_vm5, %v2940_v55 }
 0x450   : > { %v3086_v49 = vpop.permute.xlu1 %3085  ;;  %3679 = vrot.lane.b32.xlu0 %v3031_v52, %s4801_s6 }
 0x451   : > { %3180 = vst.msk [vmem:[#allocation3 + $0x8] sm:$0xff] %vm1139_vm6, %v3086_v49 }
 0x452   : > { %3871 = vrot.lane.b32.xlu1 %v6358_v9, %s4802_s17  ;;  %v3084_v21 = vpop.permute.xlu0 %3083 }
 0x453   : > { %3179 = vst.msk [vmem:[#allocation3] sm:$0xff] %vm1139_vm6, %v3084_v21 }
 0x454   : > { %v3278_v0 = vpop.permute.xlu1 %3277  ;;  %3681 = vrot.lane.b32.xlu0 %v3606_v22, %s4801_s6 }
 0x455   : > { %3372 = vst.msk [vmem:[#allocation3 + $0x8] sm:$0xff] %vm1332_vm7, %v3278_v0  ;;  %v3232_v0 = vld [vmem:[#allocation2 + $0x112] sm:$0xff] }
 0x456   : > { %3299 = vrot.lane.b32.xlu1 %v6358_v9, %s4799_s29  ;;  %v3276_v8 = vpop.permute.xlu0 %3275 }
 0x457   : > { %3371 = vst.msk [vmem:[#allocation3] sm:$0xff] %vm1332_vm7, %v3276_v8 }
 0x458   : > { %v3470_v42 = vpop.permute.xlu1 %3469  ;;  %3109 = vrot.lane.b32.xlu0 %v3606_v22, %s4798_s28 }
 0x459   : > { %3564 = vst.msk [vmem:[#allocation3 + $0x8] sm:$0xff] %vm1526_vm9, %v3470_v42 }
 0x45a   : > { %3301 = vrot.lane.b32.xlu1 %v6353_v6, %s4799_s29  ;;  %v3468_v47 = vpop.permute.xlu0 %3467 }
 0x45b   : > { %3563 = vst.msk [vmem:[#allocation3] sm:$0xff] %vm1526_vm9, %v3468_v47  ;;  %v3424_v47 = vld [vmem:[#allocation2 + $0x128] sm:$0xff] }
 0x45c   : > { %v3088_v7 = vpop.permute.xlu1 %3087  ;;  %3873 = vrot.lane.b32.xlu0 %v6353_v6, %s4802_s17 }
 0x45d   : > { %3181 = vst.msk [vmem:[#allocation3 + $0x10] sm:$0xff] %vm1139_vm6, %v3088_v7 }
 0x45e   : > { %3493 = vrot.lane.b32.xlu1 %v6210_v11, %s4800_s30  ;;  %v3660_v9 = vpop.permute.xlu0 %3659 }
 0x45f   : > { %3755 = vst.msk [vmem:[#allocation3] sm:$0xff] %vm1719_vm10, %v3660_v9 }
 0x460   : > { %v3852_v18 = vpop.permute.xlu1 %3851  ;;  %3491 = vrot.lane.b32.xlu0 %v6216_v14, %s4800_s30  ;;  %v3608_v14 = vld [vmem:[#allocation2 + $0xc9] sm:$0xff] }
 0x461   : > { %3947 = vst.msk [vmem:[#allocation3] sm:$0xff] %vm1912_vm11, %v3852_v18  ;;  %v3423_v18 = vld [vmem:[#allocation2 + $0x120] sm:$0xff] }
 0x462   : > { %3111 = vrot.lane.b32.xlu1 %v3033_v16, %s4798_s28  ;;  %v3662_v12 = vpop.permute.xlu0 %3661 }
 0x463   : > { %3756 = vst.msk [vmem:[#allocation3 + $0x8] sm:$0xff] %vm1719_vm10, %v3662_v12  ;;  %v3041_v12 = vld [vmem:[#allocation2 + $0x121] sm:$0xff] }
 0x464   : > { %v3280_v6 = vpop.permute.xlu1 %3279  ;;  %3683 = vrot.lane.b32.xlu0 %v3033_v16, %s4801_s6 }
 0x465   : > { %3373 = vst.msk [vmem:[#allocation3 + $0x10] sm:$0xff] %vm1332_vm7, %v3280_v6 }
 0x466   : > { %3875 = vrot.lane.b32.xlu1 %v6368_v60, %s4802_s17  ;;  %v3090_v11 = vpop.permute.xlu0 %3089 }
 0x467   : > { %3182 = vst.msk [vmem:[#allocation3 + $0x18] sm:$0xff] %vm1139_vm6, %v3090_v11 }
 0x468   : > { %v3282_v26 = vpop.permute.xlu1 %3281  ;;  %3685 = vrot.lane.b32.xlu0 %v3608_v14, %s4801_s6  ;;  %v3979_v10 = vld [vmem:[#allocation3] sm:$0xff] }
 0x469   : > { %3374 = vst.msk [vmem:[#allocation3 + $0x18] sm:$0xff] %vm1332_vm7, %v3282_v26  ;;  %4721 = vmatprep.mubr.msk.f32.mxu1 %vm1989_vm12, %v3979_v10  ;;  %v3616_v10 = vld [vmem:[#allocation2 + $0x129] sm:$0xff] }
 0x46a   : > { %3303 = vrot.lane.b32.xlu1 %v6368_v60, %s4799_s29  ;;  %v3854_v27 = vpop.permute.xlu0 %3853 }
 0x46b   : > { %3948 = vst.msk [vmem:[#allocation3 + $0x8] sm:$0xff] %vm1912_vm11, %v3854_v27 }
 0x46c   : > { %v3474_v25 = vpop.permute.xlu1 %3473  ;;  %3113 = vrot.lane.b32.xlu0 %v3608_v14, %s4798_s28  ;;  %v3807_v14 = vld [vmem:[#allocation2 + $0x122] sm:$0xff] }
 0x46d   : > { %3566 = vst.msk [vmem:[#allocation3 + $0x18] sm:$0xff] %vm1526_vm9, %v3474_v25 }
 0x46e   : > { %3305 = vrot.lane.b32.xlu1 %v6363_v57, %s4799_s29  ;;  %v3472_v3 = vpop.permute.xlu0 %3471  ;;  %v3035_v57 = vld [vmem:[#allocation2 + $0xd9] sm:$0xff] }
 0x46f   : > { %3565 = vst.msk [vmem:[#allocation3 + $0x10] sm:$0xff] %vm1526_vm9, %v3472_v3 }
 0x470   : > { %v3092_v48 = vpop.permute.xlu1 %3091  ;;  %3877 = vrot.lane.b32.xlu0 %v3800_v24, %s4802_s17 }
 0x471   : > { %3183 = vst.msk [vmem:[#allocation3 + $0x20] sm:$0xff] %vm1139_vm6, %v3092_v48  ;;  %v3234_v48 = vld [vmem:[#allocation2 + $0x12a] sm:$0xff] }
 0x472   : > { %3497 = vrot.lane.b32.xlu1 %v6224_v20, %s4800_s30  ;;  %v3664_v60 = vpop.permute.xlu0 %3663  ;;  %v3980_v50 = vld [vmem:[#allocation3 + $0x8] sm:$0xff] }
 0x473   : > { %3757 = vst.msk [vmem:[#allocation3 + $0x10] sm:$0xff] %vm1719_vm10, %v3664_v60  ;;  %4722 = vmatmul.mubr.msk.f32.vlgmr.msra.gmra.mxu1 %vm1989_vm12, %v3980_v50  ;;  %v3801_v20 = vld [vmem:[#allocation2 + $0xda] sm:$0xff] }
 0x474   : > { %v3856_v4 = vpop.permute.xlu1 %3855  ;;  %3495 = vrot.lane.b32.xlu0 %v6230_v15, %s4800_s30  ;;  %v3610_v15 = vld [vmem:[#allocation2 + $0xe1] sm:$0xff] }
 0x475   : > { %3949 = vst.msk [vmem:[#allocation3 + $0x10] sm:$0xff] %vm1912_vm11, %v3856_v4  ;;  %v3426_v4 = vld [vmem:[#allocation2 + $0x140] sm:$0xff] }
 0x476   : > { %3115 = vrot.lane.b32.xlu1 %v3035_v57, %s4798_s28  ;;  %v3666_v51 = vpop.permute.xlu0 %3665 }
 0x477   : > { %3758 = vst.msk [vmem:[#allocation3 + $0x18] sm:$0xff] %vm1719_vm10, %v3666_v51 }
 0x478   : > { %v3284_v5 = vpop.permute.xlu1 %3283  ;;  %3687 = vrot.lane.b32.xlu0 %v3035_v57, %s4801_s6 }
 0x479   : > { %3375 = vst.msk [vmem:[#allocation3 + $0x20] sm:$0xff] %vm1332_vm7, %v3284_v5  ;;  %v3425_v5 = vld [vmem:[#allocation2 + $0x138] sm:$0xff] }
 0x47a   : > { %3879 = vrot.lane.b32.xlu1 %v3801_v20, %s4802_s17  ;;  %v3094_v32 = vpop.permute.xlu0 %3093 }
 0x47b   : > { %3184 = vst.msk [vmem:[#allocation3 + $0x28] sm:$0xff] %vm1139_vm6, %v3094_v32  ;;  %v3043_v32 = vld [vmem:[#allocation2 + $0x139] sm:$0xff] }
 0x47c   : > { %v3286_v35 = vpop.permute.xlu1 %3285  ;;  %3689 = vrot.lane.b32.xlu0 %v3610_v15, %s4801_s6  ;;  %v3981_v41 = vld [vmem:[#allocation3 + $0x10] sm:$0xff] }
 0x47d   : > { %3376 = vst.msk [vmem:[#allocation3 + $0x28] sm:$0xff] %vm1332_vm7, %v3286_v35  ;;  %4724 = vmatprep.mubr.msk.f32.mxu1 %vm1989_vm12, %v3981_v41  ;;  %v3809_v41 = vld [vmem:[#allocation2 + $0x13a] sm:$0xff] }
 0x47e   : > { %3307 = vrot.lane.b32.xlu1 %v3801_v20, %s4799_s29  ;;  %v3858_v63 = vpop.permute.xlu0 %3857 }
 0x47f   : > { %3950 = vst.msk [vmem:[#allocation3 + $0x18] sm:$0xff] %vm1912_vm11, %v3858_v63 }
 0x480   : > { %v3478_v46 = vpop.permute.xlu1 %3477  ;;  %3117 = vrot.lane.b32.xlu0 %v3610_v15, %s4798_s28 }
 0x481   : > { %3568 = vst.msk [vmem:[#allocation3 + $0x28] sm:$0xff] %vm1526_vm9, %v3478_v46  ;;  %v3618_v46 = vld [vmem:[#allocation2 + $0x141] sm:$0xff] }
 0x482   : > { %3309 = vrot.lane.b32.xlu1 %v3228_v28, %s4799_s29  ;;  %v3476_v56 = vpop.permute.xlu0 %3475 }
 0x483   : > { %3567 = vst.msk [vmem:[#allocation3 + $0x20] sm:$0xff] %vm1526_vm9, %v3476_v56 }
 0x484   : > { %v3096_v61 = vpop.permute.xlu1 %3095  ;;  %3881 = vrot.lane.b32.xlu0 %v3228_v28, %s4802_s17 }
 0x485   : > { %3185 = vst.msk [vmem:[#allocation3 + $0x30] sm:$0xff] %vm1139_vm6, %v3096_v61 }
 0x486   : > { %3501 = vrot.lane.b32.xlu1 %v6238_v40, %s4800_s30  ;;  %v3668_v62 = vpop.permute.xlu0 %3667  ;;  %v3982_v43 = vld [vmem:[#allocation3 + $0x18] sm:$0xff]  ;;  %v3803_v40 = vld [vmem:[#allocation2 + $0xf2] sm:$0xff] }
 0x487   : > { %3759 = vst.msk [vmem:[#allocation3 + $0x20] sm:$0xff] %vm1719_vm10, %v3668_v62  ;;  %4725 = vmatmul.mubr.msk.f32.gmra.mxu1 %vm1989_vm12, %v3982_v43  ;;  %v3236_v43 = vld [vmem:[#allocation2 + $0x142] sm:$0xff] }
 0x488   : > { %v3860_v2 = vpop.permute.xlu1 %3859  ;;  %3499 = vrot.lane.b32.xlu0 %v6244_v54, %s4800_s30  ;;  %v3612_v54 = vld [vmem:[#allocation2 + $0xf9] sm:$0xff] }
 0x489   : > { %3951 = vst.msk [vmem:[#allocation3 + $0x20] sm:$0xff] %vm1912_vm11, %v3860_v2 }
 0x48a   : > { %3119 = vrot.lane.b32.xlu1 %v3037_v59, %s4798_s28  ;;  %v3670_v17 = vpop.permute.xlu0 %3669 }
 0x48b   : > { %3760 = vst.msk [vmem:[#allocation3 + $0x28] sm:$0xff] %vm1719_vm10, %v3670_v17  ;;  %v2853_v17 = vld [vmem:[#allocation2 + $0x150] sm:$0xff] }
 0x48c   : > { %v3288_v44 = vpop.permute.xlu1 %3287  ;;  %3691 = vrot.lane.b32.xlu0 %v3037_v59, %s4801_s6 }
 0x48d   : > { %3377 = vst.msk [vmem:[#allocation3 + $0x30] sm:$0xff] %vm1332_vm7, %v3288_v44 }
 0x48e   : > { %3883 = vrot.lane.b32.xlu1 %v3803_v40, %s4802_s17  ;;  %v3098_v19 = vpop.permute.xlu0 %3097 }
 0x48f   : > { %3186 = vst.msk [vmem:[#allocation3 + $0x38] sm:$0xff] %vm1139_vm6, %v3098_v19 }
 0x490   : > { %v3290_v58 = vpop.permute.xlu1 %3289  ;;  %3693 = vrot.lane.b32.xlu0 %v3612_v54, %s4801_s6  ;;  %v3983_v31 = vld [vmem:[#allocation3 + $0x20] sm:$0xff] }
 0x491   : > { %3378 = vst.msk [vmem:[#allocation3 + $0x38] sm:$0xff] %vm1332_vm7, %v3290_v58  ;;  %4727 = vmatprep.mubr.msk.f32.mxu1 %vm1989_vm12, %v3983_v31  ;;  %v3428_v31 = vld [vmem:[#allocation2 + $0x158] sm:$0xff] }
 0x492   : > { %3311 = vrot.lane.b32.xlu1 %v3803_v40, %s4799_s29  ;;  %v3862_v34 = vpop.permute.xlu0 %3861 }
 0x493   : > { %3952 = vst.msk [vmem:[#allocation3 + $0x28] sm:$0xff] %vm1912_vm11, %v3862_v34 }
 0x494   : > { %v3482_v23 = vpop.permute.xlu1 %3481  ;;  %3121 = vrot.lane.b32.xlu0 %v3612_v54, %s4798_s28  ;;  %v3619_v54 = vld [vmem:[#allocation2 + $0x151] sm:$0xff] }
 0x495   : > { %3570 = vst.msk [vmem:[#allocation3 + $0x38] sm:$0xff] %vm1526_vm9, %v3482_v23 }
 0x496   : > { %3313 = vrot.lane.b32.xlu1 %v3230_v45, %s4799_s29  ;;  %v3480_v38 = vpop.permute.xlu0 %3479 }
 0x497   : > { %3569 = vst.msk [vmem:[#allocation3 + $0x30] sm:$0xff] %vm1526_vm9, %v3480_v38 }
 0x498   : > { %v3100_v13 = vpop.permute.xlu1 %3099  ;;  %3885 = vrot.lane.b32.xlu0 %v3230_v45, %s4802_s17 }
 0x499   : > { %3187 = vst.msk [vmem:[#allocation3 + $0x40] sm:$0xff] %vm1139_vm6, %v3100_v13  ;;  %v3811_v13 = vld [vmem:[#allocation2 + $0x152] sm:$0xff] }
 0x49a   : > { %3505 = vrot.lane.b32.xlu1 %v6252_v37, %s4800_s30  ;;  %v3672_v33 = vpop.permute.xlu0 %3671  ;;  %v3984_v29 = vld [vmem:[#allocation3 + $0x28] sm:$0xff]  ;;  %v3805_v37 = vld [vmem:[#allocation2 + $0x10a] sm:$0xff] }
 0x49b   : > { %3761 = vst.msk [vmem:[#allocation3 + $0x30] sm:$0xff] %vm1719_vm10, %v3672_v33  ;;  %4728 = vmatmul.mubr.msk.f32.gmra.mxu1 %vm1989_vm12, %v3984_v29  ;;  %v3620_v29 = vld [vmem:[#allocation2 + $0x159] sm:$0xff] }
 0x49c   : > { %v3864_v53 = vpop.permute.xlu1 %3863  ;;  %3503 = vrot.lane.b32.xlu0 %v6258_v36, %s4800_s30  ;;  %v3614_v36 = vld [vmem:[#allocation2 + $0x111] sm:$0xff] }
 0x49d   : > { %3953 = vst.msk [vmem:[#allocation3 + $0x30] sm:$0xff] %vm1912_vm11, %v3864_v53 }
 0x49e   : > { %3123 = vrot.lane.b32.xlu1 %v3039_v30, %s4798_s28  ;;  %v3674_v1 = vpop.permute.xlu0 %3673 }
 0x49f   : > { %3762 = vst.msk [vmem:[#allocation3 + $0x38] sm:$0xff] %vm1719_vm10, %v3674_v1 }
 0x4a0   : > { %v3292_v39 = vpop.permute.xlu1 %3291  ;;  %3695 = vrot.lane.b32.xlu0 %v3039_v30, %s4801_s6 }
 0x4a1   : > { %3379 = vst.msk [vmem:[#allocation3 + $0x40] sm:$0xff] %vm1332_vm7, %v3292_v39  ;;  %v3238_v39 = vld [vmem:[#allocation2 + $0x15a] sm:$0xff] }
 0x4a2   : > { %3887 = vrot.lane.b32.xlu1 %v3805_v37, %s4802_s17  ;;  %v3102_v52 = vpop.permute.xlu0 %3101 }
 0x4a3   : > { %3188 = vst.msk [vmem:[#allocation3 + $0x48] sm:$0xff] %vm1139_vm6, %v3102_v52 }
 0x4a4   : > { %v3294_v55 = vpop.permute.xlu1 %3293  ;;  %3697 = vrot.lane.b32.xlu0 %v3614_v36, %s4801_s6  ;;  %v3985_v49 = vld [vmem:[#allocation3 + $0x30] sm:$0xff] }
 0x4a5   : > { %3380 = vst.msk [vmem:[#allocation3 + $0x48] sm:$0xff] %vm1332_vm7, %v3294_v55  ;;  %4730 = vmatprep.mubr.msk.f32.mxu1 %vm1989_vm12, %v3985_v49  ;;  %v2855_v55 = vld [vmem:[#allocation2 + $0x168] sm:$0xff] }
 0x4a6   : > { %3315 = vrot.lane.b32.xlu1 %v3805_v37, %s4799_s29  ;;  %v3866_v21 = vpop.permute.xlu0 %3865 }
 0x4a7   : > { %3954 = vst.msk [vmem:[#allocation3 + $0x38] sm:$0xff] %vm1912_vm11, %v3866_v21 }
 0x4a8   : > { %v3486_v22 = vpop.permute.xlu1 %3485  ;;  %3125 = vrot.lane.b32.xlu0 %v3614_v36, %s4798_s28 }
 0x4a9   : > { %3572 = vst.msk [vmem:[#allocation3 + $0x48] sm:$0xff] %vm1526_vm9, %v3486_v22  ;;  %v3621_v22 = vld [vmem:[#allocation2 + $0x169] sm:$0xff] }
 0x4aa   : > { %3317 = vrot.lane.b32.xlu1 %v3232_v0, %s4799_s29  ;;  %v3484_v8 = vpop.permute.xlu0 %3483 }
 0x4ab   : > { %3571 = vst.msk [vmem:[#allocation3 + $0x40] sm:$0xff] %vm1526_vm9, %v3484_v8  ;;  %v3430_v8 = vld [vmem:[#allocation2 + $0x170] sm:$0xff] }
 0x4ac   : > { %v3104_v42 = vpop.permute.xlu1 %3103  ;;  %3889 = vrot.lane.b32.xlu0 %v3232_v0, %s4802_s17 }
 0x4ad   : > { %3189 = vst.msk [vmem:[#allocation3 + $0x50] sm:$0xff] %vm1139_vm6, %v3104_v42 }
 0x4ae   : > { %3509 = vrot.lane.b32.xlu1 %v3424_v47, %s4800_s30  ;;  %v3676_v7 = vpop.permute.xlu0 %3675  ;;  %v3986_v9 = vld [vmem:[#allocation3 + $0x38] sm:$0xff] }
 0x4af   : > { %3763 = vst.msk [vmem:[#allocation3 + $0x40] sm:$0xff] %vm1719_vm10, %v3676_v7  ;;  %4731 = vmatmul.mubr.msk.f32.gmra.mxu1 %vm1989_vm12, %v3986_v9 }
 0x4b0   : > { %v3868_v16 = vpop.permute.xlu1 %3867  ;;  %3507 = vrot.lane.b32.xlu0 %v3423_v18, %s4800_s30  ;;  %v3813_v18 = vld [vmem:[#allocation2 + $0x16a] sm:$0xff] }
 0x4b1   : > { %3955 = vst.msk [vmem:[#allocation3 + $0x40] sm:$0xff] %vm1912_vm11, %v3868_v16 }
 0x4b2   : > { %3127 = vrot.lane.b32.xlu1 %v3041_v12, %s4798_s28  ;;  %v3678_v6 = vpop.permute.xlu0 %3677 }
 0x4b3   : > { %3764 = vst.msk [vmem:[#allocation3 + $0x48] sm:$0xff] %vm1719_vm10, %v3678_v6 }
 0x4b4   : > { %v3296_v11 = vpop.permute.xlu1 %3295  ;;  %3699 = vrot.lane.b32.xlu0 %v3041_v12, %s4801_s6  ;;  %v3622_v12 = vld [vmem:[#allocation2 + $0x171] sm:$0xff] }
 0x4b5   : > { %3381 = vst.msk [vmem:[#allocation3 + $0x50] sm:$0xff] %vm1332_vm7, %v3296_v11 }
 0x4b6   : > { %3891 = vrot.lane.b32.xlu1 %v3807_v14, %s4802_s17  ;;  %v3106_v26 = vpop.permute.xlu0 %3105 }
 0x4b7   : > { %3190 = vst.msk [vmem:[#allocation3 + $0x58] sm:$0xff] %vm1139_vm6, %v3106_v26 }
 0x4b8   : > { %v3298_v27 = vpop.permute.xlu1 %3297  ;;  %3701 = vrot.lane.b32.xlu0 %v3616_v10, %s4801_s6  ;;  %v3987_v25 = vld [vmem:[#allocation3 + $0x40] sm:$0xff] }
 0x4b9   : > { %3382 = vst.msk [vmem:[#allocation3 + $0x58] sm:$0xff] %vm1332_vm7, %v3298_v27  ;;  %4733 = vmatprep.mubr.msk.f32.mxu1 %vm1989_vm12, %v3987_v25 }
 0x4ba   : > { %3319 = vrot.lane.b32.xlu1 %v3807_v14, %s4799_s29  ;;  %v3870_v3 = vpop.permute.xlu0 %3869 }
 0x4bb   : > { %3956 = vst.msk [vmem:[#allocation3 + $0x48] sm:$0xff] %vm1912_vm11, %v3870_v3  ;;  %v2857_v3 = vld [vmem:[#allocation2 + $0x180] sm:$0xff] }
 0x4bc   : > { %v3490_v24 = vpop.permute.xlu1 %3489  ;;  %3129 = vrot.lane.b32.xlu0 %v3616_v10, %s4798_s28  ;;  %v3240_v10 = vld [vmem:[#allocation2 + $0x172] sm:$0xff] }
 0x4bd   : > { %3574 = vst.msk [vmem:[#allocation3 + $0x58] sm:$0xff] %vm1526_vm9, %v3490_v24 }
 0x4be   : > { %3321 = vrot.lane.b32.xlu1 %v3234_v48, %s4799_s29  ;;  %v3488_v60 = vpop.permute.xlu0 %3487 }
 0x4bf   : > { %3573 = vst.msk [vmem:[#allocation3 + $0x50] sm:$0xff] %vm1526_vm9, %v3488_v60 }
 0x4c0   : > { %v3108_v50 = vpop.permute.xlu1 %3107  ;;  %3893 = vrot.lane.b32.xlu0 %v3234_v48, %s4802_s17 }
 0x4c1   : > { %3191 = vst.msk [vmem:[#allocation3 + $0x60] sm:$0xff] %vm1139_vm6, %v3108_v50  ;;  %v3623_v50 = vld [vmem:[#allocation2 + $0x181] sm:$0xff] }
 0x4c2   : > { %3513 = vrot.lane.b32.xlu1 %v3426_v4, %s4800_s30  ;;  %v3680_v57 = vpop.permute.xlu0 %3679  ;;  %v3988_v51 = vld [vmem:[#allocation3 + $0x48] sm:$0xff] }
 0x4c3   : > { %3765 = vst.msk [vmem:[#allocation3 + $0x50] sm:$0xff] %vm1719_vm10, %v3680_v57  ;;  %4734 = vmatmul.mubr.msk.f32.gmra.mxu1 %vm1989_vm12, %v3988_v51  ;;  %v3432_v57 = vld [vmem:[#allocation2 + $0x188] sm:$0xff] }
 0x4c4   : > { %v3872_v20 = vpop.permute.xlu1 %3871  ;;  %3511 = vrot.lane.b32.xlu0 %v3425_v5, %s4800_s30 }
 0x4c5   : > { %3957 = vst.msk [vmem:[#allocation3 + $0x50] sm:$0xff] %vm1912_vm11, %v3872_v20 }
 0x4c6   : > { %3131 = vrot.lane.b32.xlu1 %v3043_v32, %s4798_s28  ;;  %v3682_v15 = vpop.permute.xlu0 %3681 }
 0x4c7   : > { %3766 = vst.msk [vmem:[#allocation3 + $0x58] sm:$0xff] %vm1719_vm10, %v3682_v15 }
 0x4c8   : > { %v3300_v35 = vpop.permute.xlu1 %3299  ;;  %3703 = vrot.lane.b32.xlu0 %v3043_v32, %s4801_s6  ;;  %v3815_v32 = vld [vmem:[#allocation2 + $0x182] sm:$0xff] }
 0x4c9   : > { %3383 = vst.msk [vmem:[#allocation3 + $0x60] sm:$0xff] %vm1332_vm7, %v3300_v35 }
 0x4ca   : > { %3895 = vrot.lane.b32.xlu1 %v3809_v41, %s4802_s17  ;;  %v3110_v63 = vpop.permute.xlu0 %3109 }
 0x4cb   : > { %3192 = vst.msk [vmem:[#allocation3 + $0x68] sm:$0xff] %vm1139_vm6, %v3110_v63 }
 0x4cc   : > { %v3302_v28 = vpop.permute.xlu1 %3301  ;;  %3705 = vrot.lane.b32.xlu0 %v3618_v46, %s4801_s6  ;;  %v3989_v56 = vld [vmem:[#allocation3 + $0x50] sm:$0xff] }
 0x4cd   : > { %3384 = vst.msk [vmem:[#allocation3 + $0x68] sm:$0xff] %vm1332_vm7, %v3302_v28  ;;  %4736 = vmatprep.mubr.msk.f32.mxu1 %vm1989_vm12, %v3989_v56  ;;  %v3242_v56 = vld [vmem:[#allocation2 + $0x18a] sm:$0xff] }
 0x4ce   : > { %3323 = vrot.lane.b32.xlu1 %v3809_v41, %s4799_s29  ;;  %v3874_v61 = vpop.permute.xlu0 %3873  ;;  %v3624_v41 = vld [vmem:[#allocation2 + $0x189] sm:$0xff] }
 0x4cf   : > { %3958 = vst.msk [vmem:[#allocation3 + $0x58] sm:$0xff] %vm1912_vm11, %v3874_v61 }
 0x4d0   : > { %v3494_v62 = vpop.permute.xlu1 %3493  ;;  %3133 = vrot.lane.b32.xlu0 %v3618_v46, %s4798_s28 }
 0x4d1   : > { %3576 = vst.msk [vmem:[#allocation3 + $0x68] sm:$0xff] %vm1526_vm9, %v3494_v62  ;;  %v3434_v62 = vld [vmem:[#allocation2 + $0x1a0] sm:$0xff] }
 0x4d2   : > { %3325 = vrot.lane.b32.xlu1 %v3236_v43, %s4799_s29  ;;  %v3492_v2 = vpop.permute.xlu0 %3491 }
 0x4d3   : > { %3575 = vst.msk [vmem:[#allocation3 + $0x60] sm:$0xff] %vm1526_vm9, %v3492_v2 }
 0x4d4   : > { %v3112_v59 = vpop.permute.xlu1 %3111  ;;  %3897 = vrot.lane.b32.xlu0 %v3236_v43, %s4802_s17 }
 0x4d5   : > { %3193 = vst.msk [vmem:[#allocation3 + $0x70] sm:$0xff] %vm1139_vm6, %v3112_v59  ;;  %v3433_v59 = vld [vmem:[#allocation2 + $0x198] sm:$0xff] }
 0x4d6   : > { %2943 = vrot.lane.b32.xlu1 %v2853_v17, %s4797_s27  ;;  %v3684_v44 = vpop.permute.xlu0 %3683  ;;  %v3990_v40 = vld [vmem:[#allocation3 + $0x58] sm:$0xff] }
 0x4d7   : > { %3767 = vst.msk [vmem:[#allocation3 + $0x60] sm:$0xff] %vm1719_vm10, %v3684_v44  ;;  %4737 = vmatmul.mubr.msk.f32.gmra.mxu1 %vm1989_vm12, %v3990_v40  ;;  %v3626_v44 = vld [vmem:[#allocation2 + $0x1a1] sm:$0xff] }
 0x4d8   : > { %v3876_v19 = vpop.permute.xlu1 %3875  ;;  %3515 = vrot.lane.b32.xlu0 %v2853_v17, %s4800_s30 }
 0x4d9   : > { %3959 = vst.msk [vmem:[#allocation3 + $0x60] sm:$0xff] %vm1912_vm11, %v3876_v19  ;;  %v3625_v19 = vld [vmem:[#allocation2 + $0x199] sm:$0xff] }
 0x4da   : > { %3707 = vrot.lane.b32.xlu1 %v3619_v54, %s4801_s6  ;;  %v3686_v58 = vpop.permute.xlu0 %3685 }
 0x4db   : > { %3768 = vst.msk [vmem:[#allocation3 + $0x68] sm:$0xff] %vm1719_vm10, %v3686_v58  ;;  %v3818_v58 = vld [vmem:[#allocation2 + $0x1a2] sm:$0xff] }
 0x4dc   : > { %v3304_v34 = vpop.permute.xlu1 %3303  ;;  %3517 = vrot.lane.b32.xlu0 %v3428_v31, %s4800_s30 }
 0x4dd   : > { %3385 = vst.msk [vmem:[#allocation3 + $0x70] sm:$0xff] %vm1332_vm7, %v3304_v34  ;;  %v3817_v34 = vld [vmem:[#allocation2 + $0x19a] sm:$0xff] }
 0x4de   : > { %3135 = vrot.lane.b32.xlu1 %v3619_v54, %s4798_s28  ;;  %v3114_v23 = vpop.permute.xlu0 %3113 }
 0x4df   : > { %3194 = vst.msk [vmem:[#allocation3 + $0x78] sm:$0xff] %vm1139_vm6, %v3114_v23 }
 0x4e0   : > { %v3306_v45 = vpop.permute.xlu1 %3305  ;;  %2945 = vrot.lane.b32.xlu0 %v3428_v31, %s4797_s27  ;;  %v3991_v38 = vld [vmem:[#allocation3 + $0x60] sm:$0xff] }
 0x4e1   : > { %3386 = vst.msk [vmem:[#allocation3 + $0x78] sm:$0xff] %vm1332_vm7, %v3306_v45  ;;  %4739 = vmatprep.mubr.msk.f32.mxu1 %vm1989_vm12, %v3991_v38 }
 0x4e2   : > { %3899 = vrot.lane.b32.xlu1 %v3811_v13, %s4802_s17  ;;  %v3878_v33 = vpop.permute.xlu0 %3877 }
 0x4e3   : > { %3960 = vst.msk [vmem:[#allocation3 + $0x68] sm:$0xff] %vm1912_vm11, %v3878_v33 }
 0x4e4   : > { %v3498_v53 = vpop.permute.xlu1 %3497  ;;  %3709 = vrot.lane.b32.xlu0 %v3620_v29, %s4801_s6 }
 0x4e5   : > { %3578 = vst.msk [vmem:[#allocation3 + $0x78] sm:$0xff] %vm1526_vm9, %v3498_v53 }
 0x4e6   : > { %3327 = vrot.lane.b32.xlu1 %v3811_v13, %s4799_s29  ;;  %v3496_v30 = vpop.permute.xlu0 %3495 }
 0x4e7   : > { %3577 = vst.msk [vmem:[#allocation3 + $0x70] sm:$0xff] %vm1526_vm9, %v3496_v30 }
 0x4e8   : > { %v3116_v1 = vpop.permute.xlu1 %3115  ;;  %3137 = vrot.lane.b32.xlu0 %v3620_v29, %s4798_s28 }
 0x4e9   : > { %3195 = vst.msk [vmem:[#allocation3 + $0x80] sm:$0xff] %vm1139_vm6, %v3116_v1  ;;  %v6911_v1 = vld [vmem:[%s7119_s4] ss:$0 sm:$0xff] }
 0x4ea   : > { %3329 = vrot.lane.b32.xlu1 %v3238_v39, %s4799_s29  ;;  %v3688_v37 = vpop.permute.xlu0 %3687  ;;  %v3992_v52 = vld [vmem:[#allocation3 + $0x68] sm:$0xff] }
 0x4eb   : > { %3769 = vst.msk [vmem:[#allocation3 + $0x70] sm:$0xff] %vm1719_vm10, %v3688_v37  ;;  %4740 = vmatmul.mubr.msk.f32.gmra.mxu1 %vm1989_vm12, %v3992_v52 }
 0x4ec   : > { %v3880_v36 = vpop.permute.xlu1 %3879  ;;  %3901 = vrot.lane.b32.xlu0 %v3238_v39, %s4802_s17 }
 0x4ed   : > { %3961 = vst.msk [vmem:[#allocation3 + $0x70] sm:$0xff] %vm1912_vm11, %v3880_v36 }
 0x4ee   : > { %2947 = vrot.lane.b32.xlu1 %v2855_v55, %s4797_s27  ;;  %v3690_v49 = vpop.permute.xlu0 %3689 }
 0x4ef   : > { %3770 = vst.msk [vmem:[#allocation3 + $0x78] sm:$0xff] %vm1719_vm10, %v3690_v49  ;;  %v7276_v49 = vld [vmem:[#allocation5_spill] sm:$0xff] }
 0x4f0   : > { %v3308_v21 = vpop.permute.xlu1 %3307  ;;  %3519 = vrot.lane.b32.xlu0 %v2855_v55, %s4800_s30 }
 0x4f1   : > { %3387 = vst.msk [vmem:[#allocation3 + $0x80] sm:$0xff] %vm1332_vm7, %v3308_v21 }
 0x4f2   : > { %3711 = vrot.lane.b32.xlu1 %v3621_v22, %s4801_s6  ;;  %v3118_v0 = vpop.permute.xlu0 %3117 }
 0x4f3   : > { %3196 = vst.msk [vmem:[#allocation3 + $0x88] sm:$0xff] %vm1139_vm6, %v3118_v0 }
 0x4f4   : > { %v3310_v42 = vpop.permute.xlu1 %3309  ;;  %3521 = vrot.lane.b32.xlu0 %v3430_v8, %s4800_s30  ;;  %v3993_v47 = vld [vmem:[#allocation3 + $0x70] sm:$0xff] }
 0x4f5   : > { %3388 = vst.msk [vmem:[#allocation3 + $0x88] sm:$0xff] %vm1332_vm7, %v3310_v42  ;;  %4742 = vmatprep.mubr.msk.f32.mxu1 %vm1989_vm12, %v3993_v47  ;;  %v7277_v42 = vld [vmem:[#allocation4_spill] sm:$0xff] }
 0x4f6   : > { %3139 = vrot.lane.b32.xlu1 %v3621_v22, %s4798_s28  ;;  %v3882_v7 = vpop.permute.xlu0 %3881 }
 0x4f7   : > { %3962 = vst.msk [vmem:[#allocation3 + $0x78] sm:$0xff] %vm1912_vm11, %v3882_v7 }
 0x4f8   : > { %v3502_v9 = vpop.permute.xlu1 %3501  ;;  %2949 = vrot.lane.b32.xlu0 %v3430_v8, %s4797_s27 }
 0x4f9   : > { %3580 = vst.msk [vmem:[#allocation3 + $0x88] sm:$0xff] %vm1526_vm9, %v3502_v9 }
 0x4fa   : > { %3903 = vrot.lane.b32.xlu1 %v3813_v18, %s4802_s17  ;;  %v3500_v16 = vpop.permute.xlu0 %3499 }
 0x4fb   : > { %3579 = vst.msk [vmem:[#allocation3 + $0x80] sm:$0xff] %vm1526_vm9, %v3500_v16 }
 0x4fc   : > { %v3120_v6 = vpop.permute.xlu1 %3119  ;;  %3713 = vrot.lane.b32.xlu0 %v3622_v12, %s4801_s6 }
 0x4fd   : > { %3197 = vst.msk [vmem:[#allocation3 + $0x90] sm:$0xff] %vm1139_vm6, %v3120_v6 }
 0x4fe   : > { %3331 = vrot.lane.b32.xlu1 %v3813_v18, %s4799_s29  ;;  %v3692_v11 = vpop.permute.xlu0 %3691  ;;  %v3994_v14 = vld [vmem:[#allocation3 + $0x78] sm:$0xff] }
 0x4ff   : > { %3771 = vst.msk [vmem:[#allocation3 + $0x80] sm:$0xff] %vm1719_vm10, %v3692_v11  ;;  %4743 = vmatmul.mubr.msk.f32.gmra.mxu1 %vm1989_vm12, %v3994_v14 }
 0x500   : > { %v3884_v26 = vpop.permute.xlu1 %3883  ;;  %3141 = vrot.lane.b32.xlu0 %v3622_v12, %s4798_s28 }
 0x501   : > { %3963 = vst.msk [vmem:[#allocation3 + $0x80] sm:$0xff] %vm1912_vm11, %v3884_v26 }
 0x502   : > { %3333 = vrot.lane.b32.xlu1 %v3240_v10, %s4799_s29  ;;  %v3694_v27 = vpop.permute.xlu0 %3693 }
 0x503   : > { %3772 = vst.msk [vmem:[#allocation3 + $0x88] sm:$0xff] %vm1719_vm10, %v3694_v27 }
 0x504   : > { %v3312_v25 = vpop.permute.xlu1 %3311  ;;  %3905 = vrot.lane.b32.xlu0 %v3240_v10, %s4802_s17 }
 0x505   : > { %3389 = vst.msk [vmem:[#allocation3 + $0x90] sm:$0xff] %vm1332_vm7, %v3312_v25 }
 0x506   : > { %2951 = vrot.lane.b32.xlu1 %v2857_v3, %s4797_s27  ;;  %v3122_v24 = vpop.permute.xlu0 %3121 }
 0x507   : > { %3198 = vst.msk [vmem:[#allocation3 + $0x98] sm:$0xff] %vm1139_vm6, %v3122_v24 }
 0x508   : > { %v3314_v48 = vpop.permute.xlu1 %3313  ;;  %3523 = vrot.lane.b32.xlu0 %v2857_v3, %s4800_s30  ;;  %v3995_v60 = vld [vmem:[#allocation3 + $0x80] sm:$0xff] }
 0x509   : > { %3390 = vst.msk [vmem:[#allocation3 + $0x98] sm:$0xff] %vm1332_vm7, %v3314_v48  ;;  %4745 = vmatprep.mubr.msk.f32.mxu1 %vm1989_vm12, %v3995_v60  ;;  %v7278_v60 = vld [vmem:[#allocation7_spill] sm:$0xff] }
 0x50a   : > { %3715 = vrot.lane.b32.xlu1 %v3623_v50, %s4801_s6  ;;  %v3886_v4 = vpop.permute.xlu0 %3885 }
 0x50b   : > { %3964 = vst.msk [vmem:[#allocation3 + $0x88] sm:$0xff] %vm1912_vm11, %v3886_v4 }
 0x50c   : > { %v3506_v51 = vpop.permute.xlu1 %3505  ;;  %3525 = vrot.lane.b32.xlu0 %v3432_v57, %s4800_s30 }
 0x50d   : > { %3582 = vst.msk [vmem:[#allocation3 + $0x98] sm:$0xff] %vm1526_vm9, %v3506_v51 }
 0x50e   : > { %3143 = vrot.lane.b32.xlu1 %v3623_v50, %s4798_s28  ;;  %v3504_v5 = vpop.permute.xlu0 %3503 }
 0x50f   : > { %3581 = vst.msk [vmem:[#allocation3 + $0x90] sm:$0xff] %vm1526_vm9, %v3504_v5  ;;  %v7279_v5 = vld [vmem:[#allocation6_spill] sm:$0xff] }
 0x510   : > { %v3124_v20 = vpop.permute.xlu1 %3123  ;;  %2953 = vrot.lane.b32.xlu0 %v3432_v57, %s4797_s27 }
 0x511   : > { %3199 = vst.msk [vmem:[#allocation3 + $0xa0] sm:$0xff] %vm1139_vm6, %v3124_v20 }
 0x512   : > { %3907 = vrot.lane.b32.xlu1 %v3815_v32, %s4802_s17  ;;  %v3696_v15 = vpop.permute.xlu0 %3695  ;;  %v3996_v35 = vld [vmem:[#allocation3 + $0x88] sm:$0xff] }
 0x513   : > { %3773 = vst.msk [vmem:[#allocation3 + $0x90] sm:$0xff] %vm1719_vm10, %v3696_v15  ;;  %4746 = vmatmul.mubr.msk.f32.gmra.mxu1 %vm1989_vm12, %v3996_v35 }
 0x514   : > { %v3888_v63 = vpop.permute.xlu1 %3887  ;;  %3717 = vrot.lane.b32.xlu0 %v3624_v41, %s4801_s6 }
 0x515   : > { %3965 = vst.msk [vmem:[#allocation3 + $0x90] sm:$0xff] %vm1912_vm11, %v3888_v63 }
 0x516   : > { %3335 = vrot.lane.b32.xlu1 %v3815_v32, %s4799_s29  ;;  %v3698_v46 = vpop.permute.xlu0 %3697 }
 0x517   : > { %3774 = vst.msk [vmem:[#allocation3 + $0x98] sm:$0xff] %vm1719_vm10, %v3698_v46 }
 0x518   : > { %v3316_v28 = vpop.permute.xlu1 %3315  ;;  %3145 = vrot.lane.b32.xlu0 %v3624_v41, %s4798_s28 }
 0x519   : > { %3391 = vst.msk [vmem:[#allocation3 + $0xa0] sm:$0xff] %vm1332_vm7, %v3316_v28 }
 0x51a   : > { %3337 = vrot.lane.b32.xlu1 %v3242_v56, %s4799_s29  ;;  %v3126_v61 = vpop.permute.xlu0 %3125 }
 0x51b   : > { %3200 = vst.msk [vmem:[#allocation3 + $0xa8] sm:$0xff] %vm1139_vm6, %v3126_v61 }
 0x51c   : > { %v3318_v43 = vpop.permute.xlu1 %3317  ;;  %3909 = vrot.lane.b32.xlu0 %v3242_v56, %s4802_s17  ;;  %v3997_v2 = vld [vmem:[#allocation3 + $0x90] sm:$0xff] }
 0x51d   : > { %3392 = vst.msk [vmem:[#allocation3 + $0xa8] sm:$0xff] %vm1332_vm7, %v3318_v43  ;;  %4748 = vmatprep.mubr.msk.f32.mxu1 %vm1989_vm12, %v3997_v2 }
 0x51e   : > { %v3890_v17 = vpop.permute.xlu0 %3889  ;;  %3529 = vrot.lane.b32.xlu1 %v3434_v62, %s4800_s30 }
 0x51f   : > { %3966 = vst.msk [vmem:[#allocation3 + $0x98] sm:$0xff] %vm1912_vm11, %v3890_v17 }
 0x520   : > { %v3510_v40 = vpop.permute.xlu1 %3509  ;;  %3527 = vrot.lane.b32.xlu0 %v3433_v59, %s4800_s30 }
 0x521   : > { %3584 = vst.msk [vmem:[#allocation3 + $0xa8] sm:$0xff] %vm1526_vm9, %v3510_v40  ;;  %v7280_v40 = vld [vmem:[#allocation9_spill] sm:$0xff] }
 0x522   : > { %v3508_v54 = vpop.permute.xlu0 %3507  ;;  %3721 = vrot.lane.b32.xlu1 %v3626_v44, %s4801_s6 }
 0x523   : > { %3583 = vst.msk [vmem:[#allocation3 + $0xa0] sm:$0xff] %vm1526_vm9, %v3508_v54 }
 0x524   : > { %v3128_v31 = vpop.permute.xlu1 %3127  ;;  %3719 = vrot.lane.b32.xlu0 %v3625_v19, %s4801_s6  ;;  %s6923_s6 = scalar_lea.vmem %s7120_s5, %s4577_s21 }
 0x525   : > { %3201 = vst.msk [vmem:[#allocation3 + $0xb0] sm:$0xff] %vm1139_vm6, %v3128_v31 }
 0x526   : > { %v3700_v23 = vpop.permute.xlu0 %3699  ;;  %v3998_v45 = vld [vmem:[#allocation3 + $0x98] sm:$0xff]  ;;  %3913 = vrot.lane.b32.xlu1 %v3818_v58, %s4802_s17 }
 0x527   : > { %3775 = vst.msk [vmem:[#allocation3 + $0xa0] sm:$0xff] %vm1719_vm10, %v3700_v23  ;;  %4749 = vmatmul.mubr.msk.f32.gmra.mxu1 %vm1989_vm12, %v3998_v45 }
 0x528   : > { %v3892_v38 = vpop.permute.xlu1 %3891  ;;  %3911 = vrot.lane.b32.xlu0 %v3817_v34, %s4802_s17  ;;  %v7281_v34 = vld [vmem:[#allocation8_spill] sm:$0xff] }
 0x529   : > { %3967 = vst.msk [vmem:[#allocation3 + $0xa0] sm:$0xff] %vm1912_vm11, %v3892_v38 }
 0x52a   : > { %v3702_v13 = vpop.permute.xlu0 %3701 }
 0x52b   : > { %3776 = vst.msk [vmem:[#allocation3 + $0xa8] sm:$0xff] %vm1719_vm10, %v3702_v13 }
 0x52c   : > { %v3320_v33 = vpop.permute.xlu1 %3319 }
 0x52d   : > { %3393 = vst.msk [vmem:[#allocation3 + $0xb0] sm:$0xff] %vm1332_vm7, %v3320_v33 }
 0x52e   : > { %v3130_v29 = vpop.permute.xlu0 %3129 }
 0x52f   : > { %3202 = vst.msk [vmem:[#allocation3 + $0xb8] sm:$0xff] %vm1139_vm6, %v3130_v29 }
 0x530   : > { %v3322_v53 = vpop.permute.xlu1 %3321  ;;  %v3999_v30 = vld [vmem:[#allocation3 + $0xa0] sm:$0xff] }
 0x531   : > { %3394 = vst.msk [vmem:[#allocation3 + $0xb8] sm:$0xff] %vm1332_vm7, %v3322_v53  ;;  %4751 = vmatprep.mubr.msk.f32.mxu1 %vm1989_vm12, %v3999_v30 }
 0x532   : > { %v3894_v39 = vpop.permute.xlu0 %3893 }
 0x533   : > { %3968 = vst.msk [vmem:[#allocation3 + $0xa8] sm:$0xff] %vm1912_vm11, %v3894_v39  ;;  %v4723_v37 = vpop.f32.mrf.mxu1 }
 0x534   : > { %v4194_v52 = vadd.f32 %v4723_v37, %v6911_v1  ;;  %v3514_v36 = vpop.permute.xlu1 %3513 }
 0x535   : > { %3586 = vst.msk [vmem:[#allocation3 + $0xb8] sm:$0xff] %vm1526_vm9, %v3514_v36  ;;  %v4188_v55 = vpop.f32.mrf.mxu1 }
 0x536   : > { %v4348_v21 = vadd.f32 %v4194_v52, %v7276_v49  ;;  %v4189_v22 = vadd.f32 %v6911_v1, %v4188_v55  ;;  %v3512_v0 = vpop.permute.xlu0 %3511 }
 0x537   : > { %3585 = vst.msk [vmem:[#allocation3 + $0xb0] sm:$0xff] %vm1526_vm9, %v3512_v0 }
 0x538   : > { %v4380_v8 = vmax.f32 %v4348_v21, 0.0  ;;  %v4347_v47 = vadd.f32 %v4189_v22, %v7277_v42  ;;  %v3132_v7 = vpop.permute.xlu1 %3131  ;;  %v7282_v22 = vld [vmem:[#allocation11_spill] sm:$0xff] }
 0x539   : > { %3203 = vst.msk [vmem:[#allocation3 + $0xc0] sm:$0xff] %vm1139_vm6, %v3132_v7  ;;  %v7283_v7 = vld [vmem:[#allocation10_spill] sm:$0xff] }
 0x53a   : > { %4412 = vst.msk [vmem:[%s6923_s6 + $0x8] sm:$0xff] %vm225_vm0, %v4380_v8  ;;  %v4379_v9 = vmax.f32 %v4347_v47, 0.0  ;;  %v3704_v18 = vpop.permute.xlu0 %3703  ;;  %v4000_v16 = vld [vmem:[#allocation3 + $0xa8] sm:$0xff] }
 0x53b   : > { %3777 = vst.msk [vmem:[#allocation3 + $0xb0] sm:$0xff] %vm1719_vm10, %v3704_v18  ;;  %4752 = vmatmul.mubr.msk.f32.gmra.mxu1 %vm1989_vm12, %v4000_v16 }
 0x53c   : > { %4411 = vst.msk [vmem:[%s6923_s6] sm:$0xff] %vm225_vm0, %v4379_v9  ;;  %v3896_v12 = vpop.permute.xlu1 %3895 }
 0x53d   : > { %3969 = vst.msk [vmem:[#allocation3 + $0xb0] sm:$0xff] %vm1912_vm11, %v3896_v12 }
 0x53e   : > { %v3706_v6 = vpop.permute.xlu0 %3705 }
 0x53f   : > { %3778 = vst.msk [vmem:[#allocation3 + $0xb8] sm:$0xff] %vm1719_vm10, %v3706_v6 }
 0x540   : > { %v3324_v11 = vpop.permute.xlu1 %3323 }
 0x541   : > { %3395 = vst.msk [vmem:[#allocation3 + $0xc0] sm:$0xff] %vm1332_vm7, %v3324_v11 }
 0x542   : > { %v3134_v14 = vpop.permute.xlu0 %3133 }
 0x543   : > { %3204 = vst.msk [vmem:[#allocation3 + $0xc8] sm:$0xff] %vm1139_vm6, %v3134_v14 }
 0x544   : > { %v3326_v26 = vpop.permute.xlu1 %3325  ;;  %v4001_v10 = vld [vmem:[#allocation3 + $0xb0] sm:$0xff] }
 0x545   : > { %3396 = vst.msk [vmem:[#allocation3 + $0xc8] sm:$0xff] %vm1332_vm7, %v3326_v26  ;;  %4754 = vmatprep.mubr.msk.f32.mxu1 %vm1989_vm12, %v4001_v10 }
 0x546   : > { %v3898_v27 = vpop.permute.xlu0 %3897 }
 0x547   : > { %3970 = vst.msk [vmem:[#allocation3 + $0xb8] sm:$0xff] %vm1912_vm11, %v3898_v27  ;;  %v4726_v25 = vpop.f32.mrf.mxu1 }
 0x548   : > { %v4204_v3 = vadd.f32 %v4726_v25, %v6911_v1  ;;  %v2944_v24 = vpop.permute.xlu1 %2943 }
 0x549   : > { %3013 = vst.msk [vmem:[#allocation3 + $0xd0] sm:$0xff] %vm946_vm5, %v2944_v24  ;;  %v4198_v48 = vpop.f32.mrf.mxu1 }
 0x54a   : > { %v4350_v50 = vadd.f32 %v4204_v3, %v7278_v60  ;;  %v4199_v4 = vadd.f32 %v6911_v1, %v4198_v48  ;;  %v3516_v57 = vpop.permute.xlu0 %3515 }
 0x54b   : > { %3587 = vst.msk [vmem:[#allocation3 + $0xc0] sm:$0xff] %vm1526_vm9, %v3516_v57 }
 0x54c   : > { %v4382_v51 = vmax.f32 %v4350_v50, 0.0  ;;  %v4349_v20 = vadd.f32 %v4199_v4, %v7279_v5  ;;  %v3708_v32 = vpop.permute.xlu1 %3707  ;;  %v7284_v4 = vld [vmem:[#allocation13_spill] sm:$0xff] }
 0x54d   : > { %3779 = vst.msk [vmem:[#allocation3 + $0xc0] sm:$0xff] %vm1719_vm10, %v3708_v32  ;;  %v7285_v32 = vld [vmem:[#allocation12_spill] sm:$0xff] }
 0x54e   : > { %4414 = vst.msk [vmem:[%s6923_s6 + $0x18] sm:$0xff] %vm225_vm0, %v4382_v51  ;;  %v4381_v15 = vmax.f32 %v4349_v20, 0.0  ;;  %v3518_v35 = vpop.permute.xlu0 %3517  ;;  %v4002_v41 = vld [vmem:[#allocation3 + $0xb8] sm:$0xff] }
 0x54f   : > { %3588 = vst.msk [vmem:[#allocation3 + $0xc8] sm:$0xff] %vm1526_vm9, %v3518_v35  ;;  %4755 = vmatmul.mubr.msk.f32.gmra.mxu1 %vm1989_vm12, %v4002_v41 }
 0x550   : > { %4413 = vst.msk [vmem:[%s6923_s6 + $0x10] sm:$0xff] %vm225_vm0, %v4381_v15  ;;  %v3136_v63 = vpop.permute.xlu1 %3135 }
 0x551   : > { %3205 = vst.msk [vmem:[#allocation3 + $0xd0] sm:$0xff] %vm1139_vm6, %v3136_v63 }
 0x552   : > { %v2946_v46 = vpop.permute.xlu0 %2945 }
 0x553   : > { %3014 = vst.msk [vmem:[#allocation3 + $0xd8] sm:$0xff] %vm946_vm5, %v2946_v46 }
 0x554   : > { %v3900_v28 = vpop.permute.xlu1 %3899 }
 0x555   : > { %3971 = vst.msk [vmem:[#allocation3 + $0xc0] sm:$0xff] %vm1912_vm11, %v3900_v28 }
 0x556   : > { %v3710_v56 = vpop.permute.xlu0 %3709 }
 0x557   : > { %3780 = vst.msk [vmem:[#allocation3 + $0xc8] sm:$0xff] %vm1719_vm10, %v3710_v56 }
 0x558   : > { %v3328_v61 = vpop.permute.xlu1 %3327 }
 0x559   : > { %3397 = vst.msk [vmem:[#allocation3 + $0xd0] sm:$0xff] %vm1332_vm7, %v3328_v61 }
 0x55a   : > { %v3138_v62 = vpop.permute.xlu0 %3137 }
 0x55b   : > { %3206 = vst.msk [vmem:[#allocation3 + $0xd8] sm:$0xff] %vm1139_vm6, %v3138_v62  ;;  %v4729_v43 = vpop.f32.mrf.mxu1 }
 0x55c   : > { %v4214_v2 = vadd.f32 %v4729_v43, %v6911_v1  ;;  %v3330_v59 = vpop.permute.xlu1 %3329  ;;  %v4003_v17 = vld [vmem:[#allocation3 + $0xc0] sm:$0xff] }
 0x55d   : > { %3398 = vst.msk [vmem:[#allocation3 + $0xd8] sm:$0xff] %vm1332_vm7, %v3330_v59  ;;  %v4208_v44 = vpop.f32.mrf.mxu1  ;;  %4757 = vmatprep.mubr.msk.f32.mxu1 %vm1989_vm12, %v4003_v17 }
 0x55e   : > { %v4352_v19 = vadd.f32 %v4214_v2, %v7280_v40  ;;  %v4209_v54 = vadd.f32 %v6911_v1, %v4208_v44  ;;  %v3902_v58 = vpop.permute.xlu0 %3901 }
 0x55f   : > { %3972 = vst.msk [vmem:[#allocation3 + $0xc8] sm:$0xff] %vm1912_vm11, %v3902_v58 }
 0x560   : > { %v4384_v31 = vmax.f32 %v4352_v19, 0.0  ;;  %v4351_v23 = vadd.f32 %v4209_v54, %v7281_v34  ;;  %v2948_v45 = vpop.permute.xlu1 %2947  ;;  %v7286_v54 = vld [vmem:[#allocation15_spill] sm:$0xff] }
 0x561   : > { %3015 = vst.msk [vmem:[#allocation3 + $0xe0] sm:$0xff] %vm946_vm5, %v2948_v45  ;;  %v7287_v45 = vld [vmem:[#allocation14_spill] sm:$0xff] }
 0x562   : > { %4416 = vst.msk [vmem:[%s6923_s6 + $0x28] sm:$0xff] %vm225_vm0, %v4384_v31  ;;  %v4383_v38 = vmax.f32 %v4351_v23, 0.0  ;;  %v3520_v13 = vpop.permute.xlu0 %3519 }
 0x563   : > { %3589 = vst.msk [vmem:[#allocation3 + $0xd0] sm:$0xff] %vm1526_vm9, %v3520_v13 }
 0x564   : > { %4415 = vst.msk [vmem:[%s6923_s6 + $0x20] sm:$0xff] %vm225_vm0, %v4383_v38  ;;  %v3712_v33 = vpop.permute.xlu1 %3711 }
 0x565   : > { %3781 = vst.msk [vmem:[#allocation3 + $0xd0] sm:$0xff] %vm1719_vm10, %v3712_v33 }
 0x566   : > { %v3522_v29 = vpop.permute.xlu0 %3521  ;;  %v4004_v53 = vld [vmem:[#allocation3 + $0xc8] sm:$0xff] }
 0x567   : > { %3590 = vst.msk [vmem:[#allocation3 + $0xd8] sm:$0xff] %vm1526_vm9, %v3522_v29  ;;  %4758 = vmatmul.mubr.msk.f32.gmra.mxu1 %vm1989_vm12, %v4004_v53 }
 0x568   : > { %v3140_v30 = vpop.permute.xlu1 %3139 }
 0x569   : > { %3207 = vst.msk [vmem:[#allocation3 + $0xe0] sm:$0xff] %vm1139_vm6, %v3140_v30 }
 0x56a   : > { %v2950_v39 = vpop.permute.xlu0 %2949 }
 0x56b   : > { %3016 = vst.msk [vmem:[#allocation3 + $0xe8] sm:$0xff] %vm946_vm5, %v2950_v39 }
 0x56c   : > { %v3904_v37 = vpop.permute.xlu1 %3903 }
 0x56d   : > { %3973 = vst.msk [vmem:[#allocation3 + $0xd0] sm:$0xff] %vm1912_vm11, %v3904_v37  ;;  %v7288_v37 = vld [vmem:[#allocation17_spill] sm:$0xff] }
 0x56e   : > { %v3714_v52 = vpop.permute.xlu0 %3713 }
 0x56f   : > { %3782 = vst.msk [vmem:[#allocation3 + $0xd8] sm:$0xff] %vm1719_vm10, %v3714_v52  ;;  %v4732_v36 = vpop.f32.mrf.mxu1 }
 0x570   : > { %v4224_v55 = vadd.f32 %v4732_v36, %v6911_v1  ;;  %v3332_v49 = vpop.permute.xlu1 %3331 }
 0x571   : > { %3399 = vst.msk [vmem:[#allocation3 + $0xe0] sm:$0xff] %vm1332_vm7, %v3332_v49  ;;  %v4218_v21 = vpop.f32.mrf.mxu1  ;;  %v7289_v49 = vld [vmem:[#allocation16_spill] sm:$0xff] }
 0x572   : > { %v4354_v0 = vadd.f32 %v4224_v55, %v7282_v22  ;;  %v4219_v8 = vadd.f32 %v6911_v1, %v4218_v21  ;;  %v3142_v42 = vpop.permute.xlu0 %3141 }
 0x573   : > { %3208 = vst.msk [vmem:[#allocation3 + $0xe8] sm:$0xff] %vm1139_vm6, %v3142_v42 }
 0x574   : > { %v4386_v47 = vmax.f32 %v4354_v0, 0.0  ;;  %v4353_v9 = vadd.f32 %v4219_v8, %v7283_v7  ;;  %v3334_v18 = vpop.permute.xlu1 %3333  ;;  %v4005_v16 = vld [vmem:[#allocation3 + $0xd0] sm:$0xff] }
 0x575   : > { %3400 = vst.msk [vmem:[#allocation3 + $0xe8] sm:$0xff] %vm1332_vm7, %v3334_v18  ;;  %4760 = vmatprep.mubr.msk.f32.mxu1 %vm1989_vm12, %v4005_v16  ;;  %v7291_v16 = vld [vmem:[#allocation18_spill] sm:$0xff] }
 0x576   : > { %4418 = vst.msk [vmem:[%s6923_s6 + $0x38] sm:$0xff] %vm225_vm0, %v4386_v47  ;;  %v4385_v12 = vmax.f32 %v4353_v9, 0.0  ;;  %v3906_v6 = vpop.permute.xlu0 %3905  ;;  %v7290_v47 = vld [vmem:[#allocation19_spill] sm:$0xff] }
 0x577   : > { %3974 = vst.msk [vmem:[#allocation3 + $0xd8] sm:$0xff] %vm1912_vm11, %v3906_v6 }
 0x578   : > { %4417 = vst.msk [vmem:[%s6923_s6 + $0x30] sm:$0xff] %vm225_vm0, %v4385_v12  ;;  %v2952_v11 = vpop.permute.xlu1 %2951 }
 0x579   : > { %3017 = vst.msk [vmem:[#allocation3 + $0xf0] sm:$0xff] %vm946_vm5, %v2952_v11 }
 0x57a   : > { %v3524_v14 = vpop.permute.xlu0 %3523 }
 0x57b   : > { %3591 = vst.msk [vmem:[#allocation3 + $0xe0] sm:$0xff] %vm1526_vm9, %v3524_v14 }
 0x57c   : > { %v3716_v26 = vpop.permute.xlu1 %3715 }
 0x57d   : > { %3783 = vst.msk [vmem:[#allocation3 + $0xe0] sm:$0xff] %vm1719_vm10, %v3716_v26 }
 0x57e   : > { %v3526_v10 = vpop.permute.xlu0 %3525  ;;  %v4006_v27 = vld [vmem:[#allocation3 + $0xd8] sm:$0xff] }
 0x57f   : > { %3592 = vst.msk [vmem:[#allocation3 + $0xe8] sm:$0xff] %vm1526_vm9, %v3526_v10  ;;  %4761 = vmatmul.mubr.msk.f32.gmra.mxu1 %vm1989_vm12, %v4006_v27  ;;  %v7292_v10 = vld [vmem:[#allocation21_spill] sm:$0xff] }
 0x580   : > { %v3144_v25 = vpop.permute.xlu1 %3143 }
 0x581   : > { %3209 = vst.msk [vmem:[#allocation3 + $0xf0] sm:$0xff] %vm1139_vm6, %v3144_v25 }
 0x582   : > { %v2954_v3 = vpop.permute.xlu0 %2953 }
 0x583   : > { %3018 = vst.msk [vmem:[#allocation3 + $0xf8] sm:$0xff] %vm946_vm5, %v2954_v3  ;;  %v4735_v24 = vpop.f32.mrf.mxu1 }
 0x584   : > { %v4234_v48 = vadd.f32 %v4735_v24, %v6911_v1  ;;  %v3908_v60 = vpop.permute.xlu1 %3907  ;;  %v7293_v24 = vld [vmem:[#allocation20_spill] sm:$0xff] }
 0x585   : > { %3975 = vst.msk [vmem:[#allocation3 + $0xe0] sm:$0xff] %vm1912_vm11, %v3908_v60  ;;  %v4228_v50 = vpop.f32.mrf.mxu1 }
 0x586   : > { %v4356_v57 = vadd.f32 %v4234_v48, %v7284_v4  ;;  %v4229_v51 = vadd.f32 %v6911_v1, %v4228_v50  ;;  %v3718_v5 = vpop.permute.xlu0 %3717 }
 0x587   : > { %3784 = vst.msk [vmem:[#allocation3 + $0xe8] sm:$0xff] %vm1719_vm10, %v3718_v5 }
 0x588   : > { %v4388_v20 = vmax.f32 %v4356_v57, 0.0  ;;  %v4355_v15 = vadd.f32 %v4229_v51, %v7285_v32  ;;  %v3336_v35 = vpop.permute.xlu1 %3335  ;;  %v7294_v51 = vld [vmem:[#allocation23_spill] sm:$0xff] }
 0x589   : > { %3401 = vst.msk [vmem:[#allocation3 + $0xf0] sm:$0xff] %vm1332_vm7, %v3336_v35 }
 0x58a   : > { %4420 = vst.msk [vmem:[%s6923_s6 + $0x48] sm:$0xff] %vm225_vm0, %v4388_v20  ;;  %v4387_v41 = vmax.f32 %v4355_v15, 0.0  ;;  %v3146_v63 = vpop.permute.xlu0 %3145  ;;  %v7295_v15 = vld [vmem:[#allocation22_spill] sm:$0xff] }
 0x58b   : > { %3210 = vst.msk [vmem:[#allocation3 + $0xf8] sm:$0xff] %vm1139_vm6, %v3146_v63 }
 0x58c   : > { %4419 = vst.msk [vmem:[%s6923_s6 + $0x40] sm:$0xff] %vm225_vm0, %v4387_v41  ;;  %v3338_v46 = vpop.permute.xlu1 %3337  ;;  %v4007_v28 = vld [vmem:[#allocation3 + $0xe0] sm:$0xff] }
 0x58d   : > { %3402 = vst.msk [vmem:[#allocation3 + $0xf8] sm:$0xff] %vm1332_vm7, %v3338_v46  ;;  %4763 = vmatprep.mubr.msk.f32.mxu1 %vm1989_vm12, %v4007_v28 }
 0x58e   : > { %v3910_v56 = vpop.permute.xlu0 %3909 }
 0x58f   : > { %3976 = vst.msk [vmem:[#allocation3 + $0xe8] sm:$0xff] %vm1912_vm11, %v3910_v56  ;;  %v7296_v56 = vld [vmem:[#allocation25_spill] sm:$0xff] }
 0x590   : > { %v3530_v61 = vpop.permute.xlu1 %3529 }
 0x591   : > { %3594 = vst.msk [vmem:[#allocation3 + $0xf8] sm:$0xff] %vm1526_vm9, %v3530_v61 }
 0x592   : > { %v3528_v62 = vpop.permute.xlu0 %3527 }
 0x593   : > { %3593 = vst.msk [vmem:[#allocation3 + $0xf0] sm:$0xff] %vm1526_vm9, %v3528_v62 }
 0x594   : > { %v3722_v43 = vpop.permute.xlu1 %3721 }
 0x595   : > { %3786 = vst.msk [vmem:[#allocation3 + $0xf8] sm:$0xff] %vm1719_vm10, %v3722_v43 }
 0x596   : > { %v3720_v2 = vpop.permute.xlu0 %3719  ;;  %v4008_v59 = vld [vmem:[#allocation3 + $0xe8] sm:$0xff] }
 0x597   : > { %3785 = vst.msk [vmem:[#allocation3 + $0xf0] sm:$0xff] %vm1719_vm10, %v3720_v2  ;;  %v4738_v17 = vpop.f32.mrf.mxu1  ;;  %4764 = vmatmul.mubr.msk.f32.gmra.mxu1 %vm1989_vm12, %v4008_v59  ;;  %v7297_v2 = vld [vmem:[#allocation24_spill] sm:$0xff] }
 0x598   : > { %v4244_v44 = vadd.f32 %v4738_v17, %v6911_v1  ;;  %v3914_v40 = vpop.permute.xlu1 %3913 }
 0x599   : > { %v4238_v19 = vpop.f32.mrf.mxu1  ;;  %3978 = vst.msk [vmem:[#allocation3 + $0xf8] sm:$0xff] %vm1912_vm11, %v3914_v40 }
 0x59a   : > { %v4358_v58 = vadd.f32 %v4244_v44, %v7286_v54  ;;  %v4239_v31 = vadd.f32 %v6911_v1, %v4238_v19  ;;  %v3912_v34 = vpop.permute.xlu0 %3911  ;;  %v7298_v54 = vld [vmem:[#allocation27_spill] sm:$0xff] }
 0x59b   : > { %3977 = vst.msk [vmem:[#allocation3 + $0xf0] sm:$0xff] %vm1912_vm11, %v3912_v34 }
 0x59c   : > { %v4390_v23 = vmax.f32 %v4358_v58, 0.0  ;;  %v4357_v38 = vadd.f32 %v4239_v31, %v7287_v45 }
 0x59e   : > { %4422 = vst.msk [vmem:[%s6923_s6 + $0x58] sm:$0xff] %vm225_vm0, %v4390_v23  ;;  %v4389_v13 = vmax.f32 %v4357_v38, 0.0  ;;  %v7299_v23 = vld [vmem:[#allocation26_spill] sm:$0xff] }
 0x5a0   : > { %4421 = vst.msk [vmem:[%s6923_s6 + $0x50] sm:$0xff] %vm225_vm0, %v4389_v13  ;;  %v4010_v33 = vld [vmem:[#allocation3 + $0xf8] sm:$0xff] }
 0x5a2   : > { %v4009_v29 = vld [vmem:[#allocation3 + $0xf0] sm:$0xff] }
 0x5a3   : > { %4766 = vmatprep.mubr.msk.f32.mxu1 %vm1989_vm12, %v4009_v29 }
 0x5a4   : > { %4767 = vmatmul.mubr.msk.f32.gmra.mxu1 %vm1989_vm12, %v4010_v33 }
 0x5ab   : > { %v4741_v53 = vpop.f32.mrf.mxu1 }
 0x5ac   : > { %v4254_v30 = vadd.f32 %v4741_v53, %v6911_v1  ;;  %v7300_v53 = vld [vmem:[#allocation29_spill] sm:$0xff] }
 0x5ad   : > { %v4248_v39 = vpop.f32.mrf.mxu1 }
 0x5ae   : > { %v4360_v52 = vadd.f32 %v4254_v30, %v7288_v37  ;;  %v4249_v36 = vadd.f32 %v6911_v1, %v4248_v39 }
 0x5b0   : > { %v4392_v55 = vmax.f32 %v4360_v52, 0.0  ;;  %v4359_v21 = vadd.f32 %v4249_v36, %v7289_v49  ;;  %v7301_v52 = vld [vmem:[#allocation28_spill] sm:$0xff] }
 0x5b2   : > { %4424 = vst.msk [vmem:[%s6923_s6 + $0x68] sm:$0xff] %vm225_vm0, %v4392_v55  ;;  %v4391_v22 = vmax.f32 %v4359_v21, 0.0 }
 0x5b4   : > { %4423 = vst.msk [vmem:[%s6923_s6 + $0x60] sm:$0xff] %vm225_vm0, %v4391_v22 }
 0x5bf   : > { %v4744_v0 = vpop.f32.mrf.mxu1 }
 0x5c0   : > { %v4264_v8 = vadd.f32 %v4744_v0, %v6911_v1  ;;  %v7302_v0 = vld [vmem:[#allocation31_spill] sm:$0xff] }
 0x5c1   : > { %v4258_v42 = vpop.f32.mrf.mxu1 }
 0x5c2   : > { %v4362_v7 = vadd.f32 %v4264_v8, %v7290_v47  ;;  %v4259_v9 = vadd.f32 %v6911_v1, %v4258_v42 }
 0x5c4   : > { %v4394_v18 = vmax.f32 %v4362_v7, 0.0  ;;  %v4361_v12 = vadd.f32 %v4259_v9, %v7291_v16  ;;  %v7303_v7 = vld [vmem:[#allocation30_spill] sm:$0xff] }
 0x5c6   : > { %4426 = vst.msk [vmem:[%s6923_s6 + $0x78] sm:$0xff] %vm225_vm0, %v4394_v18  ;;  %v4393_v6 = vmax.f32 %v4361_v12, 0.0 }
 0x5c8   : > { %4425 = vst.msk [vmem:[%s6923_s6 + $0x70] sm:$0xff] %vm225_vm0, %v4393_v6 }
 0x5d3   : > { %v4747_v11 = vpop.f32.mrf.mxu1 }
 0x5d4   : > { %v4274_v14 = vadd.f32 %v4747_v11, %v6911_v1  ;;  %v7304_v11 = vld [vmem:[#allocation33_spill] sm:$0xff] }
 0x5d5   : > { %v4268_v26 = vpop.f32.mrf.mxu1 }
 0x5d6   : > { %v4364_v27 = vadd.f32 %v4274_v14, %v7292_v10  ;;  %v4269_v25 = vadd.f32 %v6911_v1, %v4268_v26 }
 0x5d8   : > { %v4396_v3 = vmax.f32 %v4364_v27, 0.0  ;;  %v4363_v48 = vadd.f32 %v4269_v25, %v7293_v24  ;;  %v7305_v27 = vld [vmem:[#allocation32_spill] sm:$0xff] }
 0x5da   : > { %4428 = vst.msk [vmem:[%s6923_s6 + $0x88] sm:$0xff] %vm225_vm0, %v4396_v3  ;;  %v4395_v60 = vmax.f32 %v4363_v48, 0.0 }
 0x5dc   : > { %4427 = vst.msk [vmem:[%s6923_s6 + $0x80] sm:$0xff] %vm225_vm0, %v4395_v60 }
 0x5e7   : > { %v4750_v50 = vpop.f32.mrf.mxu1 }
 0x5e8   : > { %v4284_v4 = vadd.f32 %v4750_v50, %v6911_v1  ;;  %v7306_v50 = vld [vmem:[#allocation37_spill] sm:$0xff] }
 0x5e9   : > { %v4278_v57 = vpop.f32.mrf.mxu1 }
 0x5ea   : > { %v4366_v5 = vadd.f32 %v4284_v4, %v7294_v51  ;;  %v4279_v20 = vadd.f32 %v6911_v1, %v4278_v57 }
 0x5ec   : > { %v4398_v32 = vmax.f32 %v4366_v5, 0.0  ;;  %v4365_v35 = vadd.f32 %v4279_v20, %v7295_v15  ;;  %v7307_v5 = vld [vmem:[#allocation35_spill] sm:$0xff] }
 0x5ee   : > { %4430 = vst.msk [vmem:[%s6923_s6 + $0x98] sm:$0xff] %vm225_vm0, %v4398_v32  ;;  %v4397_v41 = vmax.f32 %v4365_v35, 0.0 }
 0x5f0   : > { %4429 = vst.msk [vmem:[%s6923_s6 + $0x90] sm:$0xff] %vm225_vm0, %v4397_v41 }
 0x5fb   : > { %v4753_v63 = vpop.f32.mrf.mxu1 }
 0x5fc   : > { %v4294_v46 = vadd.f32 %v4753_v63, %v6911_v1 }
 0x5fd   : > { %v4288_v28 = vpop.f32.mrf.mxu1 }
 0x5fe   : > { %v4368_v61 = vadd.f32 %v4294_v46, %v7296_v56  ;;  %v4289_v62 = vadd.f32 %v6911_v1, %v4288_v28 }
 0x600   : > { %v4400_v43 = vmax.f32 %v4368_v61, 0.0  ;;  %v4367_v59 = vadd.f32 %v4289_v62, %v7297_v2 }
 0x602   : > { %4432 = vst.msk [vmem:[%s6923_s6 + $0xa8] sm:$0xff] %vm225_vm0, %v4400_v43  ;;  %v4399_v17 = vmax.f32 %v4367_v59, 0.0 }
 0x604   : > { %4431 = vst.msk [vmem:[%s6923_s6 + $0xa0] sm:$0xff] %vm225_vm0, %v4399_v17 }
 0x60f   : > { %v4756_v44 = vpop.f32.mrf.mxu1 }
 0x610   : > { %v4304_v40 = vadd.f32 %v4756_v44, %v6911_v1 }
 0x611   : > { %v4298_v19 = vpop.f32.mrf.mxu1 }
 0x612   : > { %v4370_v58 = vadd.f32 %v4304_v40, %v7298_v54  ;;  %v4299_v31 = vadd.f32 %v6911_v1, %v4298_v19 }
 0x614   : > { %v4402_v34 = vmax.f32 %v4370_v58, 0.0  ;;  %v4369_v45 = vadd.f32 %v4299_v31, %v7299_v23 }
 0x616   : > { %4434 = vst.msk [vmem:[%s6923_s6 + $0xb8] sm:$0xff] %vm225_vm0, %v4402_v34  ;;  %v4401_v38 = vmax.f32 %v4369_v45, 0.0 }
 0x618   : > { %4433 = vst.msk [vmem:[%s6923_s6 + $0xb0] sm:$0xff] %vm225_vm0, %v4401_v38 }
 0x627   : > { %v4759_v13 = vpop.f32.mrf.mxu1 }
 0x628   : > { %v4314_v33 = vadd.f32 %v4759_v13, %v6911_v1 }
 0x629   : > { %v4308_v29 = vpop.f32.mrf.mxu1 }
 0x62a   : > { %v4372_v30 = vadd.f32 %v4314_v33, %v7300_v53  ;;  %v4309_v39 = vadd.f32 %v6911_v1, %v4308_v29 }
 0x62c   : > { %v4404_v37 = vmax.f32 %v4372_v30, 0.0  ;;  %v4371_v36 = vadd.f32 %v4309_v39, %v7301_v52 }
 0x62e   : > { %4436 = vst.msk [vmem:[%s6923_s6 + $0xc8] sm:$0xff] %vm225_vm0, %v4404_v37  ;;  %v4403_v55 = vmax.f32 %v4371_v36, 0.0 }
 0x630   : > { %4435 = vst.msk [vmem:[%s6923_s6 + $0xc0] sm:$0xff] %vm225_vm0, %v4403_v55 }
 0x63f   : > { %v4762_v49 = vpop.f32.mrf.mxu1 }
 0x640   : > { %v4324_v21 = vadd.f32 %v4762_v49, %v6911_v1 }
 0x641   : > { %v4318_v22 = vpop.f32.mrf.mxu1 }
 0x642   : > { %v4374_v8 = vadd.f32 %v4324_v21, %v7302_v0  ;;  %v4319_v42 = vadd.f32 %v6911_v1, %v4318_v22 }
 0x644   : > { %v4406_v47 = vmax.f32 %v4374_v8, 0.0  ;;  %v4373_v9 = vadd.f32 %v4319_v42, %v7303_v7 }
 0x646   : > { %4438 = vst.msk [vmem:[%s6923_s6 + $0xd8] sm:$0xff] %vm225_vm0, %v4406_v47  ;;  %v4405_v18 = vmax.f32 %v4373_v9, 0.0 }
 0x648   : > { %4437 = vst.msk [vmem:[%s6923_s6 + $0xd0] sm:$0xff] %vm225_vm0, %v4405_v18 }
 0x657   : > { %v4765_v16 = vpop.f32.mrf.mxu1 }
 0x658   : > { %v4334_v12 = vadd.f32 %v4765_v16, %v6911_v1 }
 0x659   : > { %v4328_v6 = vpop.f32.mrf.mxu1 }
 0x65a   : > { %v4376_v14 = vadd.f32 %v4334_v12, %v7304_v11  ;;  %v4329_v26 = vadd.f32 %v6911_v1, %v4328_v6 }
 0x65c   : > { %v4408_v10 = vmax.f32 %v4376_v14, 0.0  ;;  %v4375_v25 = vadd.f32 %v4329_v26, %v7305_v27 }
 0x65e   : > { %4440 = vst.msk [vmem:[%s6923_s6 + $0xe8] sm:$0xff] %vm225_vm0, %v4408_v10  ;;  %v4407_v3 = vmax.f32 %v4375_v25, 0.0 }
 0x660   : > { %4439 = vst.msk [vmem:[%s6923_s6 + $0xe0] sm:$0xff] %vm225_vm0, %v4407_v3 }
 0x664   : > { %v4768_v24 = vpop.f32.mrf.mxu1 }
 0x665   : > { %v4344_v48 = vadd.f32 %v4768_v24, %v6911_v1 }
 0x666   : > { %v4338_v60 = vpop.f32.mrf.mxu1 }
 0x667   : > { %v4378_v4 = vadd.f32 %v4344_v48, %v7306_v50  ;;  %v4339_v57 = vadd.f32 %v6911_v1, %v4338_v60 }
 0x669   : > { %v4410_v51 = vmax.f32 %v4378_v4, 0.0  ;;  %v4377_v20 = vadd.f32 %v4339_v57, %v7307_v5 }
 0x66b   : > { %4442 = vst.msk [vmem:[%s6923_s6 + $0xf8] sm:$0xff] %vm225_vm0, %v4410_v51  ;;  %v4409_v32 = vmax.f32 %v4377_v20, 0.0 }
 0x66d   : > { %4441 = vst.msk [vmem:[%s6923_s6 + $0xf0] sm:$0xff] %vm225_vm0, %v4409_v32 }
 0x66e PF: > { %s15_s18 = sadd.s32 1, %s4792_s18  }
 0x66f   : > { %p12_p4 = scmp.ge.s32.totalorder %s15_s18, 4  }
 0x671   :  { %14 = sbr.rel (!%p12_p4) target bundleno = 1 (0x1), region = 73 }

</bundles_post_ra>
